<compile_context>
chip_gen: v5e
topology: v5e:2x2
jax: 0.10.0
libtpu: 0.0.40
codegen_flags: <defaults>
</compile_context>

<pallas_src>
import jax
import jax.numpy as jnp
from jax.experimental import pallas as pl
from jax.experimental.pallas import tpu as pltpu

LATENT = 100
LATENT_PAD = 128          # lane-aligned latent
OUT = 784
OUT_PAD = 896             # 7 * 128, lane-dense output store
DIMS = [(LATENT, 256), (256, 512), (512, 1024), (1024, OUT)]


def _round_up(x, m):
    return (x + m - 1) // m * m


def _leaky_relu(h):
    # LeakyReLU(0.2) == max(h, 0.2*h): mul+max, one fewer VPU op than where().
    return jnp.maximum(h, 0.2 * h)


def _device_kind():
    try:
        return jax.devices()[0].device_kind.lower()
    except Exception:
        return ""


def _default_max_tile_b():
    # v7x: 2 TCs but only 64 MiB VMEM -> keep per-core tile at 256.
    # v5e/v6e: 128 MiB VMEM, amortize per-step overhead with bigger tiles.
    return 256 if "v7" in _device_kind() else 512


def _default_vmem_limit():
    return (40 << 20) if "v7" in _device_kind() else (64 << 20)


def _choose_tile_b(B, max_tile_b):
    """Batch-tile size: multiple of 16; >=2 tiles once B > 128 (megacore)."""
    b16 = _round_up(B, 16)
    if b16 <= 128:
        # tiny batch: weight-DMA-bound; a single tile avoids duplicating the
        # weight stream across cores.
        return b16
    return min(max_tile_b, _round_up(pl.cdiv(b16, 2), 16))


def generator_kernel(x_ref,
                     w1_ref, b1_ref,
                     w2_ref, b2_ref,
                     w3_ref, b3_ref,
                     w4_ref, b4_ref,
                     o_ref):
    # x tile is already bf16; weights are bf16; MXU accumulates in f32;
    # bias + activation epilogues stay in f32 on the VPU.
    h = jnp.dot(x_ref[...], w1_ref[...],
                preferred_element_type=jnp.float32) + b1_ref[...]
    h = _leaky_relu(h)

    h = jnp.dot(h.astype(jnp.bfloat16), w2_ref[...],
                preferred_element_type=jnp.float32) + b2_ref[...]
    h = _leaky_relu(h)

    h = jnp.dot(h.astype(jnp.bfloat16), w3_ref[...],
                preferred_element_type=jnp.float32) + b3_ref[...]
    h = _leaky_relu(h)

    h = jnp.dot(h.astype(jnp.bfloat16), w4_ref[...],
                preferred_element_type=jnp.float32) + b4_ref[...]
    o_ref[...] = jnp.tanh(h)


def generator_forward(x, params, *, max_tile_b=None):
    """x: anything reshapeable to (B, 100) (PyTorch's x.view(B, 100)). Returns (B, 784) f32."""
    B = x.shape[0]
    x = x.reshape(B, LATENT).astype(jnp.float32)

    (w1, b1), (w2, b2), (w3, b3), (w4, b4) = params

    # ---- parameter prep (plain JAX; constant-foldable under jit) ----
    # latent padded to 128: zero rows added to w1 contribute nothing.
    w1p = jnp.pad(w1, ((0, LATENT_PAD - LATENT), (0, 0))).astype(jnp.bfloat16)
    w2p = w2.astype(jnp.bfloat16)
    w3p = w3.astype(jnp.bfloat16)
    # output padded to 896 lanes: extra columns are sliced off afterwards.
    w4p = jnp.pad(w4, ((0, 0), (0, OUT_PAD - OUT))).astype(jnp.bfloat16)
    b1p, b2p, b3p = b1.astype(jnp.float32), b2.astype(jnp.float32), b3.astype(jnp.float32)
    b4p = jnp.pad(b4.astype(jnp.float32), ((0, 0), (0, OUT_PAD - OUT)))
    # TODO(synk): for tiny-batch inference, int8 (v5e/v6e) / fp8 (v7x) weight
    # streaming would halve the weight DMA; kept bf16 here for accuracy.

    # ---- batch tiling ----
    if max_tile_b is None:
        max_tile_b = _default_max_tile_b()
    TB = _choose_tile_b(B, max_tile_b)
    Bp = _round_up(B, TB)
    n_tiles = Bp // TB
    # bf16 input tile: halves the input DMA and removes a per-tile VPU pack.
    xp = jnp.pad(x, ((0, Bp - B), (0, LATENT_PAD - LATENT))).astype(jnp.bfloat16)

    def const_spec(shape):
        # whole-array block with a constant block index: fetched once,
        # stays VMEM-resident across batch tiles.
        return pl.BlockSpec(shape, lambda i: tuple(0 for _ in shape))

    out = pl.pallas_call(
        generator_kernel,
        out_shape=jax.ShapeDtypeStruct((Bp, OUT_PAD), jnp.float32),
        grid_spec=pltpu.PrefetchScalarGridSpec(
            num_scalar_prefetch=0,
            grid=(n_tiles,),
            in_specs=[
                pl.BlockSpec((TB, LATENT_PAD), lambda i: (i, 0)),
                const_spec(w1p.shape), const_spec(b1p.shape),
                const_spec(w2p.shape), const_spec(b2p.shape),
                const_spec(w3p.shape), const_spec(b3p.shape),
                const_spec(w4p.shape), const_spec(b4p.shape),
            ],
            out_specs=pl.BlockSpec((TB, OUT_PAD), lambda i: (i, 0)),
        ),
        compiler_params=pltpu.CompilerParams(
            dimension_semantics=("parallel",),
            vmem_limit_bytes=_default_vmem_limit(),
        ),
    )(xp, w1p, b1p, w2p, b2p, w3p, b3p, w4p, b4p)

    return out[:B, :OUT]


def init_params(key):
    """Deterministic synthetic parameters matching nn.Linear shapes.

    PyTorch stores Linear weights as (out, in); here we store the transposed
    (in, out) layout directly so the kernel computes x @ W + b.
    """
    params = []
    for d_in, d_out in DIMS:
        kw, kb, key = jax.random.split(key, 3)
        bound = 1.0 / jnp.sqrt(jnp.float32(d_in))  # same scale as PyTorch default init
        w = jax.random.uniform(kw, (d_in, d_out), jnp.float32, -bound, bound)
        b = jax.random.uniform(kb, (1, d_out), jnp.float32, -bound, bound)
        params.append((w, b))
    return params


def generator_reference(x, params):
    B = x.shape[0]
    h = x.reshape(B, LATENT).astype(jnp.float32)
    (w1, b1), (w2, b2), (w3, b3), (w4, b4) = params
    h = h @ w1 + b1
    h = jnp.where(h > 0, h, 0.2 * h)
    h = h @ w2 + b2
    h = jnp.where(h > 0, h, 0.2 * h)
    h = h @ w3 + b3
    h = jnp.where(h > 0, h, 0.2 * h)
    h = h @ w4 + b4
    return jnp.tanh(h)


if __name__ == "__main__":
    key = jax.random.PRNGKey(0)
    kx, kp = jax.random.split(key)

    B = 8  # small batch
    x = jax.random.normal(kx, (B, LATENT), jnp.float32)  # latent noise z
    params = init_params(kp)

    out = generator_forward(x, params)
    out = jax.block_until_ready(out)

    ref = generator_reference(x, params)
    assert out.shape == (B, OUT)
    # bf16 weight/activation streaming -> relaxed tolerance vs. pure-f32 reference
    assert jnp.allclose(out, ref, atol=2e-2, rtol=2e-2), float(jnp.max(jnp.abs(out - ref)))

    print("KERNEL_OK")
</pallas_src>

<mosaic_0001>
module attributes {stable_mosaic.version = 11 : i64} {
  func.func @generator_kernel(%arg0: i32, %arg1: memref<16x128xbf16, #tpu.memory_space<vmem>>, %arg2: memref<128x256xbf16, #tpu.memory_space<vmem>>, %arg3: memref<1x256xf32, #tpu.memory_space<vmem>>, %arg4: memref<256x512xbf16, #tpu.memory_space<vmem>>, %arg5: memref<1x512xf32, #tpu.memory_space<vmem>>, %arg6: memref<512x1024xbf16, #tpu.memory_space<vmem>>, %arg7: memref<1x1024xf32, #tpu.memory_space<vmem>>, %arg8: memref<1024x896xbf16, #tpu.memory_space<vmem>>, %arg9: memref<1x896xf32, #tpu.memory_space<vmem>>, %arg10: memref<16x896xf32, #tpu.memory_space<vmem>>) attributes {dimension_semantics = [#tpu.dimension_semantics<parallel>], iteration_bounds = array<i64: 1>, scalar_prefetch = 0 : i64, scratch_operands = 0 : i64, tpu.core_type = #tpu.core_type<tc>, window_params = [{transform_indices = @transform_0, window_bounds = array<i64: 16, 128>}, {pipeline_mode = #tpu.pipeline_mode<synchronous>, transform_indices = @transform_1, window_bounds = array<i64: 128, 256>}, {pipeline_mode = #tpu.pipeline_mode<synchronous>, transform_indices = @transform_2, window_bounds = array<i64: 1, 256>}, {pipeline_mode = #tpu.pipeline_mode<synchronous>, transform_indices = @transform_3, window_bounds = array<i64: 256, 512>}, {pipeline_mode = #tpu.pipeline_mode<synchronous>, transform_indices = @transform_4, window_bounds = array<i64: 1, 512>}, {pipeline_mode = #tpu.pipeline_mode<synchronous>, transform_indices = @transform_5, window_bounds = array<i64: 512, 1024>}, {pipeline_mode = #tpu.pipeline_mode<synchronous>, transform_indices = @transform_6, window_bounds = array<i64: 1, 1024>}, {pipeline_mode = #tpu.pipeline_mode<synchronous>, transform_indices = @transform_7, window_bounds = array<i64: 1024, 896>}, {pipeline_mode = #tpu.pipeline_mode<synchronous>, transform_indices = @transform_8, window_bounds = array<i64: 1, 896>}, {transform_indices = @transform_9, window_bounds = array<i64: 16, 896>}]} {
    %c0 = arith.constant 0 : index
    %c0_0 = arith.constant 0 : index
    %0 = vector.load %arg1[%c0, %c0_0] : memref<16x128xbf16, #tpu.memory_space<vmem>>, vector<16x128xbf16>
    %c0_1 = arith.constant 0 : index
    %c0_2 = arith.constant 0 : index
    %1 = vector.load %arg2[%c0_1, %c0_2] : memref<128x256xbf16, #tpu.memory_space<vmem>>, vector<128x256xbf16>
    %cst = arith.constant dense<0.000000e+00> : vector<16x256xf32>
    %2 = tpu.matmul %0, %1, %cst {dimension_numbers = #tpu.dot_dimension_numbers<[1], [0], [0], [1], [0, 0, 1, 1], [], []>} : vector<16x128xbf16>, vector<128x256xbf16>, vector<16x256xf32> -> vector<16x256xf32>
    %c0_3 = arith.constant 0 : index
    %c0_4 = arith.constant 0 : index
    %3 = vector.load %arg3[%c0_3, %c0_4] : memref<1x256xf32, #tpu.memory_space<vmem>>, vector<1x256xf32>
    %4 = vector.broadcast %3 : vector<1x256xf32> to vector<16x256xf32>
    %5 = arith.addf %2, %4 : vector<16x256xf32>
    %cst_5 = arith.constant 2.000000e-01 : f32
    %6 = vector.broadcast %cst_5 : f32 to vector<16x256xf32>
    %7 = arith.mulf %6, %5 : vector<16x256xf32>
    %8 = arith.maximumf %5, %7 : vector<16x256xf32>
    %9 = arith.truncf %8 : vector<16x256xf32> to vector<16x256xbf16>
    %c0_6 = arith.constant 0 : index
    %c0_7 = arith.constant 0 : index
    %10 = vector.load %arg4[%c0_6, %c0_7] : memref<256x512xbf16, #tpu.memory_space<vmem>>, vector<256x512xbf16>
    %cst_8 = arith.constant dense<0.000000e+00> : vector<16x512xf32>
    %11 = tpu.matmul %9, %10, %cst_8 {dimension_numbers = #tpu.dot_dimension_numbers<[1], [0], [0], [1], [0, 0, 1, 1], [], []>} : vector<16x256xbf16>, vector<256x512xbf16>, vector<16x512xf32> -> vector<16x512xf32>
    %c0_9 = arith.constant 0 : index
    %c0_10 = arith.constant 0 : index
    %12 = vector.load %arg5[%c0_9, %c0_10] : memref<1x512xf32, #tpu.memory_space<vmem>>, vector<1x512xf32>
    %13 = vector.broadcast %12 : vector<1x512xf32> to vector<16x512xf32>
    %14 = arith.addf %11, %13 : vector<16x512xf32>
    %cst_11 = arith.constant 2.000000e-01 : f32
    %15 = vector.broadcast %cst_11 : f32 to vector<16x512xf32>
    %16 = arith.mulf %15, %14 : vector<16x512xf32>
    %17 = arith.maximumf %14, %16 : vector<16x512xf32>
    %18 = arith.truncf %17 : vector<16x512xf32> to vector<16x512xbf16>
    %c0_12 = arith.constant 0 : index
    %c0_13 = arith.constant 0 : index
    %19 = vector.load %arg6[%c0_12, %c0_13] : memref<512x1024xbf16, #tpu.memory_space<vmem>>, vector<512x1024xbf16>
    %cst_14 = arith.constant dense<0.000000e+00> : vector<16x1024xf32>
    %20 = tpu.matmul %18, %19, %cst_14 {dimension_numbers = #tpu.dot_dimension_numbers<[1], [0], [0], [1], [0, 0, 1, 1], [], []>} : vector<16x512xbf16>, vector<512x1024xbf16>, vector<16x1024xf32> -> vector<16x1024xf32>
    %c0_15 = arith.constant 0 : index
    %c0_16 = arith.constant 0 : index
    %21 = vector.load %arg7[%c0_15, %c0_16] : memref<1x1024xf32, #tpu.memory_space<vmem>>, vector<1x1024xf32>
    %22 = vector.broadcast %21 : vector<1x1024xf32> to vector<16x1024xf32>
    %23 = arith.addf %20, %22 : vector<16x1024xf32>
    %cst_17 = arith.constant 2.000000e-01 : f32
    %24 = vector.broadcast %cst_17 : f32 to vector<16x1024xf32>
    %25 = arith.mulf %24, %23 : vector<16x1024xf32>
    %26 = arith.maximumf %23, %25 : vector<16x1024xf32>
    %27 = arith.truncf %26 : vector<16x1024xf32> to vector<16x1024xbf16>
    %c0_18 = arith.constant 0 : index
    %c0_19 = arith.constant 0 : index
    %28 = vector.load %arg8[%c0_18, %c0_19] : memref<1024x896xbf16, #tpu.memory_space<vmem>>, vector<1024x896xbf16>
    %cst_20 = arith.constant dense<0.000000e+00> : vector<16x896xf32>
    %29 = tpu.matmul %27, %28, %cst_20 {dimension_numbers = #tpu.dot_dimension_numbers<[1], [0], [0], [1], [0, 0, 1, 1], [], []>} : vector<16x1024xbf16>, vector<1024x896xbf16>, vector<16x896xf32> -> vector<16x896xf32>
    %c0_21 = arith.constant 0 : index
    %c0_22 = arith.constant 0 : index
    %30 = vector.load %arg9[%c0_21, %c0_22] : memref<1x896xf32, #tpu.memory_space<vmem>>, vector<1x896xf32>
    %31 = vector.broadcast %30 : vector<1x896xf32> to vector<16x896xf32>
    %32 = arith.addf %29, %31 : vector<16x896xf32>
    %33 = math.tanh %32 : vector<16x896xf32>
    %c0_23 = arith.constant 0 : index
    %c0_24 = arith.constant 0 : index
    %34 = vector.load %arg10[%c0_23, %c0_24] : memref<16x896xf32, #tpu.memory_space<vmem>>, vector<16x896xf32>
    tpu.vector_store %arg10[%c0_23, %c0_24], %33 {strides = array<i32>} : memref<16x896xf32, #tpu.memory_space<vmem>>, vector<16x896xf32>,
    return
  }
  func.func @transform_0(%arg0: i32) -> (i32, i32) {
    %c0_i32 = arith.constant 0 : i32
    %c0_i32_0 = arith.constant 0 : i32
    return %arg0, %c0_i32 : i32, i32
  }
  func.func @transform_1(%arg0: i32) -> (i32, i32) {
    %c0_i32 = arith.constant 0 : i32
    %c0_i32_0 = arith.constant 0 : i32
    %c0_i32_1 = arith.constant 0 : i32
    return %c0_i32, %c0_i32_0 : i32, i32
  }
  func.func @transform_2(%arg0: i32) -> (i32, i32) {
    %c0_i32 = arith.constant 0 : i32
    %c0_i32_0 = arith.constant 0 : i32
    %c0_i32_1 = arith.constant 0 : i32
    return %c0_i32, %c0_i32_0 : i32, i32
  }
  func.func @transform_3(%arg0: i32) -> (i32, i32) {
    %c0_i32 = arith.constant 0 : i32
    %c0_i32_0 = arith.constant 0 : i32
    %c0_i32_1 = arith.constant 0 : i32
    return %c0_i32, %c0_i32_0 : i32, i32
  }
  func.func @transform_4(%arg0: i32) -> (i32, i32) {
    %c0_i32 = arith.constant 0 : i32
    %c0_i32_0 = arith.constant 0 : i32
    %c0_i32_1 = arith.constant 0 : i32
    return %c0_i32, %c0_i32_0 : i32, i32
  }
  func.func @transform_5(%arg0: i32) -> (i32, i32) {
    %c0_i32 = arith.constant 0 : i32
    %c0_i32_0 = arith.constant 0 : i32
    %c0_i32_1 = arith.constant 0 : i32
    return %c0_i32, %c0_i32_0 : i32, i32
  }
  func.func @transform_6(%arg0: i32) -> (i32, i32) {
    %c0_i32 = arith.constant 0 : i32
    %c0_i32_0 = arith.constant 0 : i32
    %c0_i32_1 = arith.constant 0 : i32
    return %c0_i32, %c0_i32_0 : i32, i32
  }
  func.func @transform_7(%arg0: i32) -> (i32, i32) {
    %c0_i32 = arith.constant 0 : i32
    %c0_i32_0 = arith.constant 0 : i32
    %c0_i32_1 = arith.constant 0 : i32
    return %c0_i32, %c0_i32_0 : i32, i32
  }
  func.func @transform_8(%arg0: i32) -> (i32, i32) {
    %c0_i32 = arith.constant 0 : i32
    %c0_i32_0 = arith.constant 0 : i32
    %c0_i32_1 = arith.constant 0 : i32
    return %c0_i32, %c0_i32_0 : i32, i32
  }
  func.func @transform_9(%arg0: i32) -> (i32, i32) {
    %c0_i32 = arith.constant 0 : i32
    %c0_i32_0 = arith.constant 0 : i32
    return %arg0, %c0_i32 : i32, i32
  }
}

</mosaic_0001>

<bundles_post_ra>
// kernel: tpu_custom_call.1
= control target key start
LH: loop header
LB: loop body
LE: loop exit
PB: predicated region body
PF: predicated region fallthrough
CT: control target
= control target key end

     0   :  { %14 = vsyncpa [#allocation3], 0  ;;  %s11161_s0 = inlined_call_operand.hbm [shape: bf16[16,128], index: 0, kind: input, shape index: {}]   ;;  %s11162_s1 = inlined_call_operand.hbm [shape: bf16[128,256], index: 1, kind: input, shape index: {}]   ;;  %s11163_s2 = inlined_call_operand.hbm [shape: f32[1,256], index: 2, kind: input, shape index: {}]   ;;  %s11164_s3 = inlined_call_operand.hbm [shape: bf16[256,512], index: 3, kind: input, shape index: {}]   ;;  %s11165_s4 = inlined_call_operand.hbm [shape: f32[1,512], index: 4, kind: input, shape index: {}]   ;;  %s11166_s5 = inlined_call_operand.hbm [shape: bf16[512,1024], index: 5, kind: input, shape index: {}]   ;;  %s11167_s6 = inlined_call_operand.hbm [shape: f32[1,1024], index: 6, kind: input, shape index: {}]   ;;  %s11168_s7 = inlined_call_operand.hbm [shape: bf16[1024,896], index: 7, kind: input, shape index: {}]   ;;  %s11169_s8 = inlined_call_operand.hbm [shape: f32[1,896], index: 8, kind: input, shape index: {}]   ;;  %s11170_s9 = inlined_call_operand.hbm [shape: f32[16,896], index: 9, kind: output, shape index: {}]  }
   0x1   :  { %15 = vsyncpa [#allocation6], 0 }
   0x2   :  { %16 = vsyncpa [#allocation9], 0 }
   0x3   :  { %17 = vsyncpa [#allocation12], 0 }
   0x4   :  { %18 = vsyncpa [#allocation15], 0  ;;  %s37_s11 = sshll.u32 %s11162_s1, 4  ;;  %s38_s11 = int_to_ptr.hbm [resolvable:$true] %s37_s11 }
   0x5   :  { %19 = vsyncpa [#allocation4], 0  ;;  %s10777_s12 = smov [#allocation5]   ;;  %s61_s16 = sshll.u32 %s11164_s3, 4  ;;  %s62_s16 = int_to_ptr.hbm [resolvable:$true] %s61_s16 }
   0x6   :  { %s39_s13 = sshll.u32 %s10777_s12, 4  ;;  %s10778_s17 = smov 128   ;;  %s40_s13 = int_to_ptr.vmem [resolvable:$true] %s39_s13 }
   0x7   :  { %s10779_s18 = smov 8   ;;  %s10780_s19 = smov [#allocation8]  }
   0x8   :  { %45 = dma.hbm_to_vmem [thread:$0]  %s38_s11, 2048, %s40_s13, [#allocation6], %s10778_s17, %s10778_s17, %s10779_s18  }
   0x9   :  { %s63_s20 = sshll.u32 %s10780_s19, 4  ;;  %s10781_s21 = smov 256   ;;  %s64_s20 = int_to_ptr.vmem [resolvable:$true] %s63_s20 }
   0xa   :  { %s10782_s22 = smov 16   ;;  %s85_s24 = sshll.u32 %s11166_s5, 4  ;;  %s86_s24 = int_to_ptr.hbm [resolvable:$true] %s85_s24 }
   0xb   :  { %69 = dma.hbm_to_vmem [thread:$0]  %s62_s16, 8192, %s64_s20, [#allocation9], %s10781_s21, %s10781_s21, %s10782_s22  }
   0xc   :  { %s10783_s25 = smov [#allocation11]   ;;  %s109_s28 = sshll.u32 %s11168_s7, 4  ;;  %s110_s28 = int_to_ptr.hbm [resolvable:$true] %s109_s28 }
   0xd   :  { %s87_s26 = sshll.u32 %s10783_s25, 4  ;;  %s10784_s29 = smov 512   ;;  %s88_s26 = int_to_ptr.vmem [resolvable:$true] %s87_s26 }
   0xe   :  { %s10785_s30 = smov 32   ;;  %s10786_s10 = smov [#allocation14]  }
   0xf   :  { %93 = dma.hbm_to_vmem [thread:$0]  %s86_s24, 32768, %s88_s26, [#allocation12], %s10784_s29, %s10784_s29, %s10785_s30  }
  0x10   :  { %s111_s11 = sshll.u32 %s10786_s10, 4  ;;  %s10787_s12 = smov 448   ;;  %s112_s11 = int_to_ptr.vmem [resolvable:$true] %s111_s11 }
  0x11   :  { %s10788_s13 = smov 28   ;;  %s24_s15 = sshll.u32 %s11161_s0, 4  ;;  %s25_s15 = int_to_ptr.hbm [resolvable:$true] %s24_s15 }
  0x12   :  { %117 = dma.hbm_to_vmem [thread:$0]  %s110_s28, 57344, %s112_s11, [#allocation15], %s10787_s12, %s10787_s12, %s10788_s13  }
  0x13   :  { %s10789_s16 = smov [#allocation2]   ;;  %s51_s19 = sshll.u32 %s11163_s2, 4  ;;  %s52_s19 = int_to_ptr.hbm [resolvable:$true] %s51_s19 }
  0x14   :  { %s26_s17 = sshll.u32 %s10789_s16, 4  ;;  %s10790_s20 = smov 64   ;;  %s27_s17 = int_to_ptr.vmem [resolvable:$true] %s26_s17 }
  0x15   :  { %s10791_s21 = smov 4   ;;  %s10792_s22 = smov [#allocation7]  }
  0x16   :  { %32 = dma.hbm_to_vmem [thread:$0]  %s25_s15, 128, %s27_s17, [#allocation3], %s10790_s20, %s10790_s20, %s10791_s21  }
  0x17   :  { %s53_s1 = sshll.u32 %s10792_s22, 4  ;;  %s75_s25 = sshll.u32 %s11165_s4, 4  ;;  %s54_s1 = int_to_ptr.vmem [resolvable:$true] %s53_s1  ;;  %s76_s25 = int_to_ptr.hbm [resolvable:$true] %s75_s25 }
  0x18   :  { %56 = dma.hbm_to_vmem [thread:$0]  %s52_s19, 32, %s54_s1, [#allocation6]  }
  0x19   :  { %s99_s27 = sshll.u32 %s11167_s6, 4  ;;  %s10793_s3 = smov [#allocation10]   ;;  %s100_s27 = int_to_ptr.hbm [resolvable:$true] %s99_s27 }
  0x1a   :  { %s77_s28 = sshll.u32 %s10793_s3, 4  ;;  %s10794_s2 = smov [#allocation13]   ;;  %s78_s28 = int_to_ptr.vmem [resolvable:$true] %s77_s28 }
  0x1b   :  { %80 = dma.hbm_to_vmem [thread:$0]  %s76_s25, 64, %s78_s28, [#allocation9]  }
  0x1c   :  { %s101_s29 = sshll.u32 %s10794_s2, 4  ;;  %s123_s11 = sshll.u32 %s11169_s8, 4  ;;  %s102_s29 = int_to_ptr.vmem [resolvable:$true] %s101_s29  ;;  %s124_s11 = int_to_ptr.hbm [resolvable:$true] %s123_s11 }
  0x1d   :  { %104 = dma.hbm_to_vmem [thread:$0]  %s100_s27, 128, %s102_s29, [#allocation12]  }
  0x1e   :  { %s10795_s4 = smov [#allocation16]  }
  0x1f   :  { %s125_s12 = sshll.u32 %s10795_s4, 4  ;;  %s126_s12 = int_to_ptr.vmem [resolvable:$true] %s125_s12 }
  0x20   :  { %128 = dma.hbm_to_vmem [thread:$0]  %s124_s11, 112, %s126_s12, [#allocation15]  }
  0x21   :  { %10765 = dma.done.wait [#allocation3], 128  }
  0x22   :  { %10766 = vsyncadd [#allocation3], 4294967168 }
  0x23   :  { %10767 = dma.done.wait [#allocation6], 2080  }
  0x24   :  { %10768 = vsyncadd [#allocation6], 4294965216 }
  0x25   :  { %10769 = dma.done.wait [#allocation9], 8256  }
  0x26   :  { %10770 = vsyncadd [#allocation9], 4294959040 }
  0x27   :  { %10771 = dma.done.wait [#allocation12], 32896  }
  0x28   :  { %10772 = vsyncadd [#allocation12], 4294934400 }
  0x29   :  { %10773 = dma.done.wait [#allocation15], 57456  }
  0x2a   :  { %10774 = vsyncadd [#allocation15], 4294909840  ;;  %v6610_v0 = vld [vmem:[#allocation5 + $0x70] sm:$0xf]  ;;  %v9704_v1 = vld [vmem:[#allocation5 + $0x74] sm:$0xf0] }
  0x2b   :  { %v9703_v2 = vld [vmem:[#allocation5 + $0x74] sm:$0xf]  ;;  %v6611_v3 = vor.u32 %v9704_v1, %v6610_v0  ;;  %v6612_v4 = vld [vmem:[#allocation5 + $0x78] sm:$0xf0]  ;;  %v6602_v5 = vld [vmem:[#allocation5 + $0x60] sm:$0xf] }
  0x2c   :  { %v9702_v6 = vld [vmem:[#allocation5 + $0x64] sm:$0xf0]  ;;  %v6615_v7 = vor.u32 %v9703_v2, %v6612_v4  ;;  %v9701_v8 = vld [vmem:[#allocation5 + $0x64] sm:$0xf]  ;;  %v6604_v9 = vld [vmem:[#allocation5 + $0x68] sm:$0xf0] }
  0x2d   :  { %275 = vmatpush.bf16.msra.mxu0 %v6611_v3  ;;  %v6603_v10 = vor.u32 %v9702_v6, %v6602_v5  ;;  %v6607_v11 = vor.u32 %v9701_v8, %v6604_v9  ;;  %v6594_v12 = vld [vmem:[#allocation5 + $0x50] sm:$0xf]  ;;  %v9700_v13 = vld [vmem:[#allocation5 + $0x54] sm:$0xf0]  ;;  %v9699_v14 = vld [vmem:[#allocation5 + $0x54] sm:$0xf] }
  0x2e   :  { %289 = vmatpush.bf16.msra.mxu1 %v6615_v7  ;;  %v6596_v15 = vld [vmem:[#allocation5 + $0x58] sm:$0xf0]  ;;  %v6595_v16 = vor.u32 %v9700_v13, %v6594_v12  ;;  %v6586_v18 = vld [vmem:[#allocation5 + $0x40] sm:$0xf]  ;;  %v9698_v19 = vld [vmem:[#allocation5 + $0x44] sm:$0xf0] }
  0x2f   :  { %v6599_v17 = vor.u32 %v9699_v14, %v6596_v15  ;;  %v9697_v20 = vld [vmem:[#allocation5 + $0x44] sm:$0xf]  ;;  %v6588_v21 = vld [vmem:[#allocation5 + $0x48] sm:$0xf0]  ;;  %v6587_v22 = vor.u32 %v9698_v19, %v6586_v18  ;;  %v9735_v24 = vld [vmem:[#allocation8 + $0xec] sm:$0xf0] }
  0x30   :  { %v6730_v23 = vld [vmem:[#allocation8 + $0xe0] sm:$0xf]  ;;  %v6591_v26 = vor.u32 %v9697_v20, %v6588_v21  ;;  %v6578_v27 = vld [vmem:[#allocation5 + $0x30] sm:$0xf]  ;;  %v9696_v28 = vld [vmem:[#allocation5 + $0x34] sm:$0xf0] }
  0x31   :  { %276 = vmatpush.bf16.msra.mxu0 %v6603_v10  ;;  %v6858_v25 = vld [vmem:[#allocation8 + $0x1e0] sm:$0xf]  ;;  %v6731_v29 = vor.u32 %v9735_v24, %v6730_v23  ;;  %v9767_v30 = vld [vmem:[#allocation8 + $0x1ec] sm:$0xf0]  ;;  %v6580_v32 = vld [vmem:[#allocation5 + $0x38] sm:$0xf0]  ;;  %v6579_v38 = vor.u32 %v9696_v28, %v6578_v27 }
  0x32   :  { %290 = vmatpush.bf16.msra.mxu1 %v6607_v11  ;;  %v9695_v31 = vld [vmem:[#allocation5 + $0x34] sm:$0xf]  ;;  %v6859_v33 = vor.u32 %v9767_v30, %v6858_v25  ;;  %v6714_v34 = vld [vmem:[#allocation8 + $0xc0] sm:$0xf]  ;;  %v9694_v40 = vld [vmem:[#allocation5 + $0x24] sm:$0xf0] }
  0x33   :  { %707 = vmatpush.bf16.msra.mxu2 %v6731_v29  ;;  %v9731_v35 = vld [vmem:[#allocation8 + $0xcc] sm:$0xf0]  ;;  %v6842_v36 = vld [vmem:[#allocation8 + $0x1c0] sm:$0xf]  ;;  %v6583_v43 = vor.u32 %v9695_v31, %v6580_v32  ;;  %v6572_v47 = vld [vmem:[#allocation5 + $0x28] sm:$0xf0] }
  0x34   :  { %v9763_v37 = vld [vmem:[#allocation8 + $0x1cc] sm:$0xf0]  ;;  %v6570_v39 = vld [vmem:[#allocation5 + $0x20] sm:$0xf]  ;;  %721 = vmatpush.bf16.msra.mxu3 %v6859_v33  ;;  %v6715_v41 = vor.u32 %v9731_v35, %v6714_v34  ;;  %v9693_v44 = vld [vmem:[#allocation5 + $0x24] sm:$0xf] }
  0x35   :  { %277 = vmatpush.bf16.msra.mxu0 %v6595_v16  ;;  %v6843_v42 = vor.u32 %v9763_v37, %v6842_v36  ;;  %v6698_v45 = vld [vmem:[#allocation8 + $0xa0] sm:$0xf]  ;;  %v9727_v46 = vld [vmem:[#allocation8 + $0xac] sm:$0xf0]  ;;  %v6571_v51 = vor.u32 %v9694_v40, %v6570_v39  ;;  %v6575_v56 = vor.u32 %v9693_v44, %v6572_v47  ;;  %v9692_v57 = vld [vmem:[#allocation5 + $0x14] sm:$0xf0] }
  0x36   :  { %291 = vmatpush.bf16.msra.mxu1 %v6599_v17  ;;  %v6826_v48 = vld [vmem:[#allocation8 + $0x1a0] sm:$0xf]  ;;  %v9759_v49 = vld [vmem:[#allocation8 + $0x1ac] sm:$0xf0]  ;;  %v6699_v50 = vor.u32 %v9727_v46, %v6698_v45  ;;  %v6564_v61 = vld [vmem:[#allocation5 + $0x18] sm:$0xf0] }
  0x37   :  { %708 = vmatpush.bf16.msra.mxu2 %v6715_v41  ;;  %v6562_v52 = vld [vmem:[#allocation5 + $0x10] sm:$0xf]  ;;  %v6827_v53 = vor.u32 %v9759_v49, %v6826_v48  ;;  %v6682_v54 = vld [vmem:[#allocation8 + $0x80] sm:$0xf]  ;;  %v9691_v60 = vld [vmem:[#allocation5 + $0x14] sm:$0xf] }
  0x38   :  { %722 = vmatpush.bf16.msra.mxu3 %v6843_v42  ;;  %v9723_v55 = vld [vmem:[#allocation8 + $0x8c] sm:$0xf0]  ;;  %v6810_v58 = vld [vmem:[#allocation8 + $0x180] sm:$0xf]  ;;  %v6563_v0 = vor.u32 %v9692_v57, %v6562_v52  ;;  %v9690_v1 = vld [vmem:[#allocation5 + $0x4] sm:$0xf0]  ;;  %v6567_v5 = vor.u32 %v9691_v60, %v6564_v61 }
  0x39   :  { %278 = vmatpush.bf16.msra.mxu0 %v6587_v22  ;;  %v9755_v59 = vld [vmem:[#allocation8 + $0x18c] sm:$0xf0]  ;;  %v6554_v62 = vld [vmem:[#allocation5] sm:$0xf]  ;;  %v6683_v63 = vor.u32 %v9723_v55, %v6682_v54  ;;  %v9689_v6 = vld [vmem:[#allocation5 + $0x4] sm:$0xf] }
  0x3a   :  { %292 = vmatpush.bf16.msra.mxu1 %v6591_v26  ;;  %v6811_v2 = vor.u32 %v9755_v59, %v6810_v58  ;;  %v6666_v3 = vld [vmem:[#allocation8 + $0x60] sm:$0xf]  ;;  %v9719_v4 = vld [vmem:[#allocation8 + $0x6c] sm:$0xf0]  ;;  %v6556_v9 = vld [vmem:[#allocation5 + $0x8] sm:$0xf0]  ;;  %v6555_v15 = vor.u32 %v9690_v1, %v6554_v62 }
  0x3b   :  { %709 = vmatpush.bf16.msra.mxu2 %v6699_v50  ;;  %v6794_v7 = vld [vmem:[#allocation8 + $0x160] sm:$0xf]  ;;  %v9751_v8 = vld [vmem:[#allocation8 + $0x16c] sm:$0xf0]  ;;  %v9733_v10 = vld [vmem:[#allocation8 + $0xe4] sm:$0xf]  ;;  %v6667_v14 = vor.u32 %v9719_v4, %v6666_v3  ;;  %v6559_v19 = vor.u32 %v9689_v6, %v6556_v9 }
  0x3c   :  { %723 = vmatpush.bf16.msra.mxu3 %v6827_v53  ;;  %v6732_v11 = vld [vmem:[#allocation8 + $0xf0] sm:$0xf0]  ;;  %v9765_v12 = vld [vmem:[#allocation8 + $0x1e4] sm:$0xf]  ;;  %v6795_v16 = vor.u32 %v9751_v8, %v6794_v7  ;;  %v6650_v17 = vld [vmem:[#allocation8 + $0x40] sm:$0xf] }
  0x3d   :  { %279 = vmatpush.bf16.msra.mxu0 %v6579_v38  ;;  %v6860_v13 = vld [vmem:[#allocation8 + $0x1f0] sm:$0xf0]  ;;  %v9715_v18 = vld [vmem:[#allocation8 + $0x4c] sm:$0xf0]  ;;  %v6735_v20 = vor.u32 %v9733_v10, %v6732_v11  ;;  %v6778_v21 = vld [vmem:[#allocation8 + $0x140] sm:$0xf] }
  0x3e   :  { %293 = vmatpush.bf16.msra.mxu1 %v6583_v43  ;;  %v9747_v22 = vld [vmem:[#allocation8 + $0x14c] sm:$0xf0]  ;;  %v6863_v23 = vor.u32 %v9765_v12, %v6860_v13  ;;  %v9729_v24 = vld [vmem:[#allocation8 + $0xc4] sm:$0xf]  ;;  %v6716_v25 = vld [vmem:[#allocation8 + $0xd0] sm:$0xf0]  ;;  %v6651_v29 = vor.u32 %v9715_v18, %v6650_v17 }
  0x3f   :  { %710 = vmatpush.bf16.msra.mxu2 %v6683_v63  ;;  %v9688_v26 = vld [vmem:[#allocation2] sm:$0xff]  ;;  %v9761_v27 = vld [vmem:[#allocation8 + $0x1c4] sm:$0xf]  ;;  %v6779_v30 = vor.u32 %v9747_v22, %v6778_v21  ;;  %v6634_v31 = vld [vmem:[#allocation8 + $0x20] sm:$0xf]  ;;  %v6719_v33 = vor.u32 %v9729_v24, %v6716_v25  ;;  %s10796_s6 = smov [#allocation17]  }
  0x40   :  { %724 = vmatpush.bf16.msra.mxu3 %v6811_v2  ;;  %v6844_v28 = vld [vmem:[#allocation8 + $0x1d0] sm:$0xf0]  ;;  %v9711_v32 = vld [vmem:[#allocation8 + $0x2c] sm:$0xf0]  ;;  %v6762_v34 = vld [vmem:[#allocation8 + $0x120] sm:$0xf] }
  0x41   :  { %280 = vmatpush.bf16.msra.mxu0 %v6571_v51  ;;  %v9743_v35 = vld [vmem:[#allocation8 + $0x12c] sm:$0xf0]  ;;  %v6847_v36 = vor.u32 %v9761_v27, %v6844_v28  ;;  %v9725_v37 = vld [vmem:[#allocation8 + $0xa4] sm:$0xf]  ;;  %v6700_v38 = vld [vmem:[#allocation8 + $0xb0] sm:$0xf0]  ;;  %v6635_v41 = vor.u32 %v9711_v32, %v6634_v31 }
  0x42   :  { %294 = vmatpush.bf16.msra.mxu1 %v6575_v56  ;;  %v9757_v39 = vld [vmem:[#allocation8 + $0x1a4] sm:$0xf]  ;;  %v6828_v40 = vld [vmem:[#allocation8 + $0x1b0] sm:$0xf0]  ;;  %v6763_v42 = vor.u32 %v9743_v35, %v6762_v34  ;;  %v6703_v43 = vor.u32 %v9725_v37, %v6700_v38  ;;  %v9707_v6 = vld [vmem:[#allocation8 + $0xc] sm:$0xf0] }
  0x43   :  { %711 = vmatpush.bf16.msra.mxu2 %v6667_v14  ;;  %v6831_v44 = vor.u32 %v9757_v39, %v6828_v40  ;;  %v9721_v45 = vld [vmem:[#allocation8 + $0x84] sm:$0xf]  ;;  %v6684_v46 = vld [vmem:[#allocation8 + $0x90] sm:$0xf0]  ;;  %v6746_v7 = vld [vmem:[#allocation8 + $0x100] sm:$0xf] }
  0x44   :  { %725 = vmatpush.bf16.msra.mxu3 %v6795_v16  ;;  %v9753_v47 = vld [vmem:[#allocation8 + $0x184] sm:$0xf]  ;;  %v6812_v48 = vld [vmem:[#allocation8 + $0x190] sm:$0xf0]  ;;  %v6687_v49 = vor.u32 %v9721_v45, %v6684_v46  ;;  %v9739_v9 = vld [vmem:[#allocation8 + $0x10c] sm:$0xf0] }
  0x45   :  { %281 = vmatpush.bf16.msra.mxu0 %v6563_v0  ;;  %v6815_v50 = vor.u32 %v9753_v47, %v6812_v48  ;;  %v9717_v51 = vld [vmem:[#allocation8 + $0x64] sm:$0xf]  ;;  %v6668_v52 = vld [vmem:[#allocation8 + $0x70] sm:$0xf0]  ;;  %v6747_v11 = vor.u32 %v9739_v9, %v6746_v7  ;;  %v6738_v17 = vld [vmem:[#allocation8 + $0xe8] sm:$0xf] }
  0x46   :  { %295 = vmatpush.bf16.msra.mxu1 %v6567_v5  ;;  %v9749_v53 = vld [vmem:[#allocation8 + $0x164] sm:$0xf]  ;;  %v6796_v54 = vld [vmem:[#allocation8 + $0x170] sm:$0xf0]  ;;  %v6671_v55 = vor.u32 %v9717_v51, %v6668_v52  ;;  %v6618_v5 = vld [vmem:[#allocation8] sm:$0xf] }
  0x47   :  { %712 = vmatpush.bf16.msra.mxu2 %v6651_v29  ;;  %v6799_v56 = vor.u32 %v9749_v53, %v6796_v54  ;;  %v9713_v57 = vld [vmem:[#allocation8 + $0x44] sm:$0xf]  ;;  %v6652_v58 = vld [vmem:[#allocation8 + $0x50] sm:$0xf0]  ;;  %v6619_v8 = vor.u32 %v9707_v6, %v6618_v5  ;;  %v9736_v18 = vld [vmem:[#allocation8 + $0xf4] sm:$0xf0] }
  0x48   :  { %726 = vmatpush.bf16.msra.mxu3 %v6779_v30  ;;  %v9745_v59 = vld [vmem:[#allocation8 + $0x144] sm:$0xf]  ;;  %v6780_v60 = vld [vmem:[#allocation8 + $0x150] sm:$0xf0]  ;;  %v6655_v61 = vor.u32 %v9713_v57, %v6652_v58  ;;  %v9768_v21 = vld [vmem:[#allocation8 + $0x1f4] sm:$0xf0] }
  0x49   :  { %282 = vmatpush.bf16.msra.mxu0 %v6555_v15  ;;  %v6783_v62 = vor.u32 %v9745_v59, %v6780_v60  ;;  %v9709_v63 = vld [vmem:[#allocation8 + $0x24] sm:$0xf]  ;;  %v6636_v0 = vld [vmem:[#allocation8 + $0x30] sm:$0xf0]  ;;  %v9734_v22 = vld [vmem:[#allocation8 + $0xec] sm:$0xf] }
  0x4a   :  { %296 = vmatpush.bf16.msra.mxu1 %v6559_v19  ;;  %v9741_v1 = vld [vmem:[#allocation8 + $0x124] sm:$0xf]  ;;  %v6764_v2 = vld [vmem:[#allocation8 + $0x130] sm:$0xf0]  ;;  %v6639_v3 = vor.u32 %v9709_v63, %v6636_v0  ;;  %v6866_v19 = vld [vmem:[#allocation8 + $0x1e8] sm:$0xf] }
  0x4b   :  { %713 = vmatpush.bf16.msra.mxu2 %v6635_v41  ;;  %v6767_v4 = vor.u32 %v9741_v1, %v6764_v2  ;;  %v9705_v10 = vld [vmem:[#allocation8 + $0x4] sm:$0xf]  ;;  %v6620_v12 = vld [vmem:[#allocation8 + $0x10] sm:$0xf0]  ;;  %v6867_v24 = vor.u32 %v9768_v21, %v6866_v19  ;;  %v6868_v27 = vld [vmem:[#allocation8 + $0x1f8] sm:$0xf0] }
  0x4c   :  { %283 = vmatmul.bf16.vlgmr.msra.gmra.mxu0 %v9688_v26  ;;  %727 = vmatpush.bf16.msra.mxu3 %v6763_v42  ;;  %v9737_v13 = vld [vmem:[#allocation8 + $0x104] sm:$0xf]  ;;  %v6748_v14 = vld [vmem:[#allocation8 + $0x110] sm:$0xf0]  ;;  %v6623_v15 = vor.u32 %v9705_v10, %v6620_v12  ;;  %v6722_v28 = vld [vmem:[#allocation8 + $0xc8] sm:$0xf] }
  0x4d   :  { %735 = vmatpush.bf16.msrb.mxu0 %v6735_v20  ;;  %297 = vmatmul.bf16.vlgmr.msra.gmra.mxu1 %v9688_v26  ;;  %v6751_v16 = vor.u32 %v9737_v13, %v6748_v14  ;;  %v6739_v20 = vor.u32 %v9736_v18, %v6738_v17  ;;  %v9766_v26 = vld [vmem:[#allocation8 + $0x1ec] sm:$0xf]  ;;  %v9732_v30 = vld [vmem:[#allocation8 + $0xd4] sm:$0xf0]  ;;  %v6850_v31 = vld [vmem:[#allocation8 + $0x1c8] sm:$0xf] }
  0x4e   :  { %749 = vmatpush.bf16.msrb.mxu1 %v6863_v23  ;;  %v6740_v23 = vld [vmem:[#allocation8 + $0xf8] sm:$0xf0]  ;;  %v6871_v29 = vor.u32 %v9766_v26, %v6868_v27  ;;  %v9764_v32 = vld [vmem:[#allocation8 + $0x1d4] sm:$0xf0]  ;;  %v9730_v35 = vld [vmem:[#allocation8 + $0xcc] sm:$0xf] }
  0x4f   :  { %714 = vmatpush.bf16.msra.mxu2 %v6619_v8  ;;  %v6743_v25 = vor.u32 %v9734_v22, %v6740_v23  ;;  %v6851_v34 = vor.u32 %v9764_v32, %v6850_v31  ;;  %v9762_v37 = vld [vmem:[#allocation8 + $0x1cc] sm:$0xf]  ;;  %v6852_v39 = vld [vmem:[#allocation8 + $0x1d8] sm:$0xf0]  ;;  %v6706_v41 = vld [vmem:[#allocation8 + $0xa8] sm:$0xf] }
  0x50   :  { %728 = vmatpush.bf16.msra.mxu3 %v6747_v11  ;;  %v6855_v40 = vor.u32 %v9762_v37, %v6852_v39  ;;  %v9728_v42 = vld [vmem:[#allocation8 + $0xb4] sm:$0xf0]  ;;  %v9726_v46 = vld [vmem:[#allocation8 + $0xac] sm:$0xf]  ;;  %v6708_v47 = vld [vmem:[#allocation8 + $0xb8] sm:$0xf0] }
  0x51   :  { %736 = vmatpush.bf16.msrb.mxu0 %v6719_v33  ;;  %v6723_v33 = vor.u32 %v9732_v30, %v6722_v28  ;;  %v9760_v45 = vld [vmem:[#allocation8 + $0x1b4] sm:$0xf0]  ;;  %v6836_v51 = vld [vmem:[#allocation8 + $0x1b8] sm:$0xf0]  ;;  %v6690_v53 = vld [vmem:[#allocation8 + $0x88] sm:$0xf] }
  0x52   :  { %750 = vmatpush.bf16.msrb.mxu1 %v6847_v36  ;;  %v6724_v36 = vld [vmem:[#allocation8 + $0xd8] sm:$0xf0]  ;;  %v9724_v54 = vld [vmem:[#allocation8 + $0x94] sm:$0xf0]  ;;  %v9722_v58 = vld [vmem:[#allocation8 + $0x8c] sm:$0xf] }
  0x53   :  { %763 = vmatpush.bf16.msrb.mxu2 %v6739_v20  ;;  %v6727_v38 = vor.u32 %v9730_v35, %v6724_v36  ;;  %v9756_v57 = vld [vmem:[#allocation8 + $0x194] sm:$0xf0]  ;;  %v6692_v59 = vld [vmem:[#allocation8 + $0x98] sm:$0xf0]  ;;  %v6674_v1 = vld [vmem:[#allocation8 + $0x68] sm:$0xf] }
  0x54   :  { %777 = vmatpush.bf16.msrb.mxu3 %v6867_v24  ;;  %v6820_v63 = vld [vmem:[#allocation8 + $0x198] sm:$0xf0]  ;;  %v9720_v2 = vld [vmem:[#allocation8 + $0x74] sm:$0xf0]  ;;  %v9718_v6 = vld [vmem:[#allocation8 + $0x6c] sm:$0xf] }
  0x55   :  { %737 = vmatpush.bf16.msrb.mxu0 %v6703_v43  ;;  %v6834_v43 = vld [vmem:[#allocation8 + $0x1a8] sm:$0xf]  ;;  %v9752_v5 = vld [vmem:[#allocation8 + $0x174] sm:$0xf0]  ;;  %v6676_v7 = vld [vmem:[#allocation8 + $0x78] sm:$0xf0] }
  0x56   :  { %751 = vmatpush.bf16.msrb.mxu1 %v6831_v44  ;;  %v6707_v44 = vor.u32 %v9728_v42, %v6706_v41  ;;  %v6835_v48 = vor.u32 %v9760_v45, %v6834_v43  ;;  %v6679_v9 = vor.u32 %v9718_v6, %v6676_v7  ;;  %v9750_v10 = vld [vmem:[#allocation8 + $0x16c] sm:$0xf]  ;;  %v6804_v11 = vld [vmem:[#allocation8 + $0x178] sm:$0xf0]  ;;  %v6658_v12 = vld [vmem:[#allocation8 + $0x48] sm:$0xf] }
  0x57   :  { %764 = vmatpush.bf16.msrb.mxu2 %v6723_v33  ;;  %v6807_v13 = vor.u32 %v9750_v10, %v6804_v11  ;;  %v9716_v14 = vld [vmem:[#allocation8 + $0x54] sm:$0xf0]  ;;  %v9714_v17 = vld [vmem:[#allocation8 + $0x4c] sm:$0xf]  ;;  %v6660_v18 = vld [vmem:[#allocation8 + $0x58] sm:$0xf0] }
  0x58   :  { %778 = vmatpush.bf16.msrb.mxu3 %v6851_v34  ;;  %v9746_v19 = vld [vmem:[#allocation8 + $0x14c] sm:$0xf]  ;;  %v6659_v20 = vor.u32 %v9716_v14, %v6658_v12  ;;  %v6788_v21 = vld [vmem:[#allocation8 + $0x158] sm:$0xf0]  ;;  %v6663_v23 = vor.u32 %v9714_v17, %v6660_v18  ;;  %v6642_v24 = vld [vmem:[#allocation8 + $0x28] sm:$0xf] }
  0x59   :  { %738 = vmatpush.bf16.msrb.mxu0 %v6687_v49  ;;  %v6711_v49 = vor.u32 %v9726_v46, %v6708_v47  ;;  %v6770_v26 = vld [vmem:[#allocation8 + $0x128] sm:$0xf]  ;;  %v6791_v27 = vor.u32 %v9746_v19, %v6788_v21  ;;  %v9744_v28 = vld [vmem:[#allocation8 + $0x134] sm:$0xf0]  ;;  %v6644_v30 = vld [vmem:[#allocation8 + $0x38] sm:$0xf0] }
  0x5a   :  { %752 = vmatpush.bf16.msrb.mxu1 %v6815_v50  ;;  %v9758_v50 = vld [vmem:[#allocation8 + $0x1ac] sm:$0xf]  ;;  %v6772_v32 = vld [vmem:[#allocation8 + $0x138] sm:$0xf0]  ;;  %v6771_v34 = vor.u32 %v9744_v28, %v6770_v26  ;;  %v6626_v36 = vld [vmem:[#allocation8 + $0x8] sm:$0xf] }
  0x5b   :  { %v6839_v52 = vor.u32 %v9758_v50, %v6836_v51  ;;  %765 = vmatpush.bf16.msrb.mxu2 %v6707_v44  ;;  %v9742_v31 = vld [vmem:[#allocation8 + $0x12c] sm:$0xf]  ;;  %v9708_v37 = vld [vmem:[#allocation8 + $0x14] sm:$0xf0]  ;;  %v6628_v42 = vld [vmem:[#allocation8 + $0x18] sm:$0xf0] }
  0x5c   :  { %779 = vmatpush.bf16.msrb.mxu3 %v6835_v48  ;;  %v6775_v39 = vor.u32 %v9742_v31, %v6772_v32  ;;  %v9706_v41 = vld [vmem:[#allocation8 + $0xc] sm:$0xf]  ;;  %v6756_v44 = vld [vmem:[#allocation8 + $0x118] sm:$0xf0]  ;;  %v6627_v45 = vor.u32 %v9708_v37, %v6626_v36  ;;  %v10021_v7 = vld [vmem:[#allocation11 + $0x7dc] sm:$0xf0] }
  0x5d   :  { %739 = vmatpush.bf16.msrb.mxu0 %v6671_v55  ;;  %v6818_v55 = vld [vmem:[#allocation8 + $0x188] sm:$0xf]  ;;  %v9738_v43 = vld [vmem:[#allocation8 + $0x10c] sm:$0xf]  ;;  %v183_v46 = vld [vmem:[#allocation7] sm:$0x3]  ;;  %v6631_v48 = vor.u32 %v9706_v41, %v6628_v42 }
  0x5e   :  { %753 = vmatpush.bf16.msrb.mxu1 %v6799_v56  ;;  %v6691_v56 = vor.u32 %v9724_v54, %v6690_v53  ;;  %v6819_v60 = vor.u32 %v9756_v57, %v6818_v55  ;;  %v185_v51 = vperm.slane %v183_v46, 0  ;;  %v186_v53 = vperm.slane %v183_v46, 1  ;;  %v7322_v14 = vld [vmem:[#allocation11 + $0x380] sm:$0xf]  ;;  %s6529_s8 = sshll.u32 %s10796_s6, 4  ;;  %s6531_s5 = sshll.u32 %s11170_s9, 4  ;;  %s6530_s8 = int_to_ptr.vmem [resolvable:$true] %s6529_s8  ;;  %s6532_s5 = int_to_ptr.hbm [resolvable:$true] %s6531_s5 }
  0x5f   :  { %v7066_v18 = vld [vmem:[#allocation11 + $0x180] sm:$0xf]  ;;  %s10797_s15 = smov 896   ;;  %s10798_s16 = smov 56  }
  0x60   :  { %766 = vmatpush.bf16.msrb.mxu2 %v6691_v56  ;;  %780 = vmatpush.bf16.msrb.mxu3 %v6819_v60  ;;  %v9821_v19 = vld [vmem:[#allocation11 + $0x19c] sm:$0xf0] }
  0x61   :  { %740 = vmatpush.bf16.msrb.mxu0 %v6655_v61  ;;  %v6695_v61 = vor.u32 %v9722_v58, %v6692_v59  ;;  %v7834_v21 = vld [vmem:[#allocation11 + $0x780] sm:$0xf] }
  0x62   :  { %754 = vmatpush.bf16.msrb.mxu1 %v6783_v62  ;;  %v9754_v62 = vld [vmem:[#allocation8 + $0x18c] sm:$0xf]  ;;  %v9877_v28 = vld [vmem:[#allocation11 + $0x35c] sm:$0xf0] }
  0x63   :  { %v6823_v0 = vor.u32 %v9754_v62, %v6820_v63  ;;  %v7354_v62 = vld [vmem:[#allocation11 + $0x3c0] sm:$0xf] }
  0x64   :  { %v9813_v31 = vld [vmem:[#allocation11 + $0x15c] sm:$0xf0] }
  0x65   :  { %741 = vmatpush.bf16.msrb.mxu0 %v6639_v3  ;;  %v6802_v3 = vld [vmem:[#allocation8 + $0x168] sm:$0xf]  ;;  %v7546_v36 = vld [vmem:[#allocation11 + $0x540] sm:$0xf] }
  0x66   :  { %755 = vmatpush.bf16.msrb.mxu1 %v6767_v4  ;;  %v6675_v4 = vor.u32 %v9720_v2, %v6674_v1  ;;  %v6803_v8 = vor.u32 %v9752_v5, %v6802_v3  ;;  %v7098_v1 = vld [vmem:[#allocation11 + $0x1c0] sm:$0xf] }
  0x67   :  { %v9829_v3 = vld [vmem:[#allocation11 + $0x1dc] sm:$0xf0] }
  0x68   :  { %767 = vmatpush.bf16.msrb.mxu2 %v6675_v4  ;;  %781 = vmatpush.bf16.msrb.mxu3 %v6803_v8  ;;  %v7866_v4 = vld [vmem:[#allocation11 + $0x7c0] sm:$0xf] }
  0x69   :  { %742 = vmatpush.bf16.msrb.mxu0 %v6623_v15  ;;  %v6786_v15 = vld [vmem:[#allocation8 + $0x148] sm:$0xf]  ;;  %v7610_v8 = vld [vmem:[#allocation11 + $0x5c0] sm:$0xf] }
  0x6a   :  { %756 = vmatpush.bf16.msrb.mxu1 %v6751_v16  ;;  %v9748_v16 = vld [vmem:[#allocation8 + $0x154] sm:$0xf0]  ;;  %v9941_v37 = vld [vmem:[#allocation11 + $0x55c] sm:$0xf0] }
  0x6b   :  { %v6787_v22 = vor.u32 %v9748_v16, %v6786_v15  ;;  %v9885_v15 = vld [vmem:[#allocation11 + $0x39c] sm:$0xf0]  ;;  %v7099_v16 = vor.u32 %v9829_v3, %v7098_v1  ;;  %v7547_v46 = vor.u32 %v9941_v37, %v7546_v36  ;;  %v7068_v36 = vld [vmem:[#allocation11 + $0x1a0] sm:$0xf0] }
  0x6c   :  { %768 = vmatpush.bf16.msrb.mxu2 %v6659_v20  ;;  %v7867_v20 = vor.u32 %v10021_v7, %v7866_v4  ;;  %v7323_v26 = vor.u32 %v9885_v15, %v7322_v14  ;;  %v7002_v42 = vld [vmem:[#allocation11 + $0x100] sm:$0xf] }
  0x6d   :  { %791 = vmatpush.bf16.msra.mxu0 %v6743_v25  ;;  %v9712_v25 = vld [vmem:[#allocation8 + $0x34] sm:$0xf0]  ;;  %782 = vmatpush.bf16.msrb.mxu3 %v6787_v22  ;;  %v9853_v1 = vld [vmem:[#allocation11 + $0x29c] sm:$0xf0] }
  0x6e   :  { %805 = vmatpush.bf16.msra.mxu1 %v6871_v29  ;;  %v9710_v29 = vld [vmem:[#allocation8 + $0x2c] sm:$0xf]  ;;  %v6643_v33 = vor.u32 %v9712_v25, %v6642_v24  ;;  %v7578_v24 = vld [vmem:[#allocation11 + $0x580] sm:$0xf] }
  0x6f   :  { %v6647_v35 = vor.u32 %v9710_v29, %v6644_v30  ;;  %v9949_v25 = vld [vmem:[#allocation11 + $0x59c] sm:$0xf0]  ;;  %v7067_v29 = vor.u32 %v9821_v19, %v7066_v18 }
  0x70   :  { %769 = vmatpush.bf16.msrb.mxu2 %v6643_v33  ;;  %v7034_v30 = vld [vmem:[#allocation11 + $0x140] sm:$0xf] }
  0x71   :  { %792 = vmatpush.bf16.msra.mxu0 %v6727_v38  ;;  %v6754_v38 = vld [vmem:[#allocation8 + $0x108] sm:$0xf]  ;;  %783 = vmatpush.bf16.msrb.mxu3 %v6771_v34  ;;  %v7802_v33 = vld [vmem:[#allocation11 + $0x740] sm:$0xf]  ;;  %v7579_v34 = vor.u32 %v9949_v25, %v7578_v24  ;;  %v7035_v41 = vor.u32 %v9813_v31, %v7034_v30 }
  0x72   :  { %806 = vmatpush.bf16.msra.mxu1 %v6855_v40  ;;  %v9740_v40 = vld [vmem:[#allocation8 + $0x114] sm:$0xf0]  ;;  %v9789_v3 = vld [vmem:[#allocation11 + $0x9c] sm:$0xf0]  ;;  %v7100_v24 = vld [vmem:[#allocation11 + $0x1e0] sm:$0xf0] }
  0x73   :  { %v6755_v47 = vor.u32 %v9740_v40, %v6754_v38  ;;  %v9869_v40 = vld [vmem:[#allocation11 + $0x31c] sm:$0xf0]  ;;  %v7324_v30 = vld [vmem:[#allocation11 + $0x3a0] sm:$0xf0] }
  0x74   :  { %770 = vmatpush.bf16.msrb.mxu2 %v6627_v45  ;;  %v7770_v45 = vld [vmem:[#allocation11 + $0x700] sm:$0xf] }
  0x75   :  { %793 = vmatpush.bf16.msra.mxu0 %v6711_v49  ;;  %v6759_v49 = vor.u32 %v9738_v43, %v6756_v44  ;;  %784 = vmatpush.bf16.msrb.mxu3 %v6755_v47  ;;  %v9805_v43 = vld [vmem:[#allocation11 + $0x11c] sm:$0xf0] }
  0x76   :  { %807 = vmatpush.bf16.msra.mxu1 %v6839_v52  ;;  %v9997_v47 = vld [vmem:[#allocation11 + $0x71c] sm:$0xf0] }
  0x77   :  { %v9981_v7 = vld [vmem:[#allocation11 + $0x69c] sm:$0xf0] }
  0x78   :  { %v9781_v14 = vld [vmem:[#allocation11 + $0x5c] sm:$0xf0] }
  0x79   :  { %794 = vmatpush.bf16.msra.mxu0 %v6695_v61  ;;  %v9837_v18 = vld [vmem:[#allocation11 + $0x21c] sm:$0xf0] }
  0x7a   :  { %808 = vmatpush.bf16.msra.mxu1 %v6823_v0  ;;  %v9893_v0 = vld [vmem:[#allocation11 + $0x3dc] sm:$0xf0] }
  0x7d   :  { %795 = vmatpush.bf16.msra.mxu0 %v6679_v9  ;;  %v9957_v9 = vld [vmem:[#allocation11 + $0x5dc] sm:$0xf0] }
  0x7e   :  { %809 = vmatpush.bf16.msra.mxu1 %v6807_v13  ;;  %v7355_v13 = vor.u32 %v9893_v0, %v7354_v62  ;;  %v7611_v22 = vor.u32 %v9957_v9, %v7610_v8  ;;  %v7162_v9 = vld [vmem:[#allocation11 + $0x240] sm:$0xf] }
  0x81   :  { %796 = vmatpush.bf16.msra.mxu0 %v6663_v23  ;;  %v10013_v23 = vld [vmem:[#allocation11 + $0x79c] sm:$0xf0] }
  0x82   :  { %810 = vmatpush.bf16.msra.mxu1 %v6791_v27  ;;  %v7290_v27 = vld [vmem:[#allocation11 + $0x340] sm:$0xf]  ;;  %v7835_v32 = vor.u32 %v10013_v23, %v7834_v21  ;;  %v9825_v23 = vld [vmem:[#allocation11 + $0x1c4] sm:$0xf] }
  0x83   :  { %v7291_v38 = vor.u32 %v9877_v28, %v7290_v27  ;;  %v6874_v21 = vld [vmem:[#allocation11] sm:$0xf]  ;;  %v7103_v28 = vor.u32 %v9825_v23, %v7100_v24  ;;  %v6940_v23 = vld [vmem:[#allocation11 + $0xa0] sm:$0xf0] }
  0x84   :  { %v9945_v24 = vld [vmem:[#allocation11 + $0x584] sm:$0xf] }
  0x85   :  { %797 = vmatpush.bf16.msra.mxu0 %v6647_v35  ;;  %v10005_v35 = vld [vmem:[#allocation11 + $0x75c] sm:$0xf0] }
  0x86   :  { %811 = vmatpush.bf16.msra.mxu1 %v6775_v39  ;;  %v7258_v39 = vld [vmem:[#allocation11 + $0x300] sm:$0xf]  ;;  %v7803_v44 = vor.u32 %v10005_v35, %v7802_v33  ;;  %v7292_v33 = vld [vmem:[#allocation11 + $0x360] sm:$0xf0] }
  0x87   :  { %v9817_v35 = vld [vmem:[#allocation11 + $0x184] sm:$0xf] }
  0x88   :  { %v7071_v37 = vor.u32 %v9817_v35, %v7068_v36  ;;  %v6908_v35 = vld [vmem:[#allocation11 + $0x60] sm:$0xf0] }
  0x89   :  { %798 = vmatpush.bf16.msra.mxu0 %v6631_v48  ;;  %v7514_v48 = vld [vmem:[#allocation11 + $0x500] sm:$0xf] }
  0x8a   :  { %812 = vmatpush.bf16.msra.mxu1 %v6759_v49  ;;  %v9933_v49 = vld [vmem:[#allocation11 + $0x51c] sm:$0xf0] }
  0xc9   :  { %v284_v50 = vpop.f32.mrf.mxu0 }
  0xca   :  { %v298_v52 = vpop.f32.mrf.mxu1  ;;  %v285_v54 = vadd.f32 %v284_v50, %v185_v51  ;;  %v7259_v50 = vor.u32 %v9869_v40, %v7258_v39  ;;  %v9973_v39 = vld [vmem:[#allocation11 + $0x65c] sm:$0xf0] }
  0xcb   :  { %v299_v55 = vadd.f32 %v298_v52, %v186_v53  ;;  %v9861_v52 = vld [vmem:[#allocation11 + $0x2dc] sm:$0xf0] }
  0xcc   :  { %v303_v57 = vmul.f32 0.2, %v285_v54 }
  0xcd   :  { %v304_v60 = vmul.f32 0.2, %v299_v55 }
  0xce   :  { %v307_v5 = vmax.f32 %v285_v54, %v303_v57  ;;  %v6970_v54 = vld [vmem:[#allocation11 + $0xc0] sm:$0xf] }
  0xcf   :  { %v308_v10 = vmax.f32 %v299_v55, %v304_v60  ;;  %v9797_v55 = vld [vmem:[#allocation11 + $0xdc] sm:$0xf0] }
  0xd0   :  { %v7738_v57 = vld [vmem:[#allocation11 + $0x6c0] sm:$0xf]  ;;  %v6971_v0 = vor.u32 %v9797_v55, %v6970_v54  ;;  %v7228_v54 = vld [vmem:[#allocation11 + $0x2e0] sm:$0xf0] }
  0xd1   :  { %v286_v56 = vpop.f32.mrf.mxu0  ;;  %v7482_v60 = vld [vmem:[#allocation11 + $0x4c0] sm:$0xf]  ;;  %v10017_v55 = vld [vmem:[#allocation11 + $0x7c4] sm:$0xf] }
  0xd2   :  { %v287_v58 = vadd.f32 %v286_v56, %v185_v51  ;;  %v300_v59 = vpop.f32.mrf.mxu1  ;;  %v7226_v51 = vld [vmem:[#allocation11 + $0x2c0] sm:$0xf]  ;;  %v7771_v56 = vor.u32 %v9997_v47, %v7770_v45  ;;  %v9809_v47 = vld [vmem:[#allocation11 + $0x144] sm:$0xf] }
  0xd3   :  { %v301_v61 = vadd.f32 %v300_v59, %v186_v53  ;;  %v7003_v53 = vor.u32 %v9805_v43, %v7002_v42  ;;  %v9989_v59 = vld [vmem:[#allocation11 + $0x6dc] sm:$0xf0]  ;;  %v7227_v62 = vor.u32 %v9861_v52, %v7226_v51  ;;  %v7260_v42 = vld [vmem:[#allocation11 + $0x320] sm:$0xf0] }
  0xd4   :  { %v305_v63 = vmul.f32 0.2, %v287_v58  ;;  %v7739_v4 = vor.u32 %v9989_v59, %v7738_v57  ;;  %v9917_v45 = vld [vmem:[#allocation11 + $0x49c] sm:$0xf0]  ;;  %v7868_v57 = vld [vmem:[#allocation11 + $0x7e0] sm:$0xf0] }
  0xd5   :  { %v306_v2 = vmul.f32 0.2, %v301_v61  ;;  %v9965_v51 = vld [vmem:[#allocation11 + $0x61c] sm:$0xf0] }
  0xd6   :  { %v309_v6 = vmax.f32 %v287_v58, %v305_v63  ;;  %v7515_v58 = vor.u32 %v9933_v49, %v7514_v48  ;;  %v7194_v63 = vld [vmem:[#allocation11 + $0x280] sm:$0xf]  ;;  %v7036_v48 = vld [vmem:[#allocation11 + $0x160] sm:$0xf0] }
  0xd7   :  { %v310_v11 = vmax.f32 %v301_v61, %v306_v2  ;;  %v9925_v61 = vld [vmem:[#allocation11 + $0x4dc] sm:$0xf0]  ;;  %v7195_v8 = vor.u32 %v9853_v1, %v7194_v63  ;;  %v7039_v49 = vor.u32 %v9809_v47, %v7036_v48  ;;  %v7004_v63 = vld [vmem:[#allocation11 + $0x120] sm:$0xf0] }
  0xd8   :  { %v10876_v12 = vpack.c.bf16 %v309_v6, %v307_v5  ;;  %v6938_v2 = vld [vmem:[#allocation11 + $0x80] sm:$0xf]  ;;  %v7483_v5 = vor.u32 %v9925_v61, %v7482_v60  ;;  %v7871_v60 = vor.u32 %v10017_v55, %v7868_v57  ;;  %v9849_v1 = vld [vmem:[#allocation11 + $0x284] sm:$0xf]  ;;  %v10888_v55 = vld [vmem:[#allocation10] sm:$0xf] }
  0xd9   :  { %v10878_v17 = vpack.c.bf16 %v310_v11, %v308_v10  ;;  %v7706_v6 = vld [vmem:[#allocation11 + $0x680] sm:$0xf]  ;;  %v6939_v10 = vor.u32 %v9789_v3, %v6938_v2  ;;  %v7196_v2 = vld [vmem:[#allocation11 + $0x2a0] sm:$0xf0] }
  0xda   :  { %715 = vmatmul.bf16.vlgmr.msra.gmra.mxu2 %v10876_v12  ;;  %743 = vmatmul.bf16.vlgmr.msrb.gmra.mxu0 %v10876_v12  ;;  %v9845_v11 = vld [vmem:[#allocation11 + $0x25c] sm:$0xf0]  ;;  %v7707_v15 = vor.u32 %v9981_v7, %v7706_v6  ;;  %v10009_v3 = vld [vmem:[#allocation11 + $0x784] sm:$0xf] }
  0xdb   :  { %729 = vmatmul.bf16.vlgmr.msra.gmra.mxu3 %v10878_v17  ;;  %757 = vmatmul.bf16.vlgmr.msrb.gmra.mxu1 %v10878_v17  ;;  %v9909_v59 = vld [vmem:[#allocation11 + $0x45c] sm:$0xf0]  ;;  %v7516_v47 = vld [vmem:[#allocation11 + $0x520] sm:$0xf0] }
  0xdc   :  { %2407 = vmatpush.bf16.msra.mxu3 %v7355_v13  ;;  %2393 = vmatpush.bf16.msra.mxu2 %v7099_v16  ;;  %v6906_v13 = vld [vmem:[#allocation11 + $0x40] sm:$0xf]  ;;  %v7163_v16 = vor.u32 %v9845_v11, %v7162_v9  ;;  %v6972_v11 = vld [vmem:[#allocation11 + $0xe0] sm:$0xf0] }
  0xdd   :  { %2435 = vmatpush.bf16.msrb.mxu1 %v7867_v20  ;;  %2421 = vmatpush.bf16.msrb.mxu0 %v7611_v22  ;;  %v6907_v19 = vor.u32 %v9781_v14, %v6906_v13  ;;  %v9889_v20 = vld [vmem:[#allocation11 + $0x3c4] sm:$0xf]  ;;  %v7386_v6 = vld [vmem:[#allocation11 + $0x400] sm:$0xf] }
  0xde   :  { %v7356_v22 = vld [vmem:[#allocation11 + $0x3e0] sm:$0xf0]  ;;  %v9901_v7 = vld [vmem:[#allocation11 + $0x41c] sm:$0xf0] }
  0xdf   :  { %v7359_v27 = vor.u32 %v9889_v20, %v7356_v22  ;;  %v7387_v9 = vor.u32 %v9901_v7, %v7386_v6  ;;  %v9953_v13 = vld [vmem:[#allocation11 + $0x5c4] sm:$0xf] }
  0xe0   :  { %2408 = vmatpush.bf16.msra.mxu3 %v7323_v26  ;;  %2394 = vmatpush.bf16.msra.mxu2 %v7067_v29  ;;  %v9881_v29 = vld [vmem:[#allocation11 + $0x384] sm:$0xf] }
  0xe1   :  { %2436 = vmatpush.bf16.msrb.mxu1 %v7835_v32  ;;  %2422 = vmatpush.bf16.msrb.mxu0 %v7579_v34  ;;  %v7327_v31 = vor.u32 %v9881_v29, %v7324_v30  ;;  %v9873_v32 = vld [vmem:[#allocation11 + $0x344] sm:$0xf] }
  0xe2   :  { %v7295_v34 = vor.u32 %v9873_v32, %v7292_v33  ;;  %v9785_v22 = vld [vmem:[#allocation11 + $0x84] sm:$0xf] }
  0xe3   :  { %v7132_v29 = vld [vmem:[#allocation11 + $0x220] sm:$0xf0] }
  0xe4   :  { %2409 = vmatpush.bf16.msra.mxu3 %v7291_v38  ;;  %2395 = vmatpush.bf16.msra.mxu2 %v7035_v41  ;;  %v7674_v38 = vld [vmem:[#allocation11 + $0x640] sm:$0xf]  ;;  %v9865_v41 = vld [vmem:[#allocation11 + $0x304] sm:$0xf] }
  0xe5   :  { %2437 = vmatpush.bf16.msrb.mxu1 %v7803_v44  ;;  %2423 = vmatpush.bf16.msrb.mxu0 %v7547_v46  ;;  %v7675_v40 = vor.u32 %v9973_v39, %v7674_v38  ;;  %v7263_v43 = vor.u32 %v9865_v41, %v7260_v42  ;;  %v7450_v44 = vld [vmem:[#allocation11 + $0x480] sm:$0xf]  ;;  %v7772_v32 = vld [vmem:[#allocation11 + $0x720] sm:$0xf0] }
  0xe6   :  { %v7451_v46 = vor.u32 %v9917_v45, %v7450_v44  ;;  %v7548_v38 = vld [vmem:[#allocation11 + $0x560] sm:$0xf0] }
  0xe7   :  { %v7740_v41 = vld [vmem:[#allocation11 + $0x6e0] sm:$0xf0] }
  0xe8   :  { %2410 = vmatpush.bf16.msra.mxu3 %v7259_v50  ;;  %2396 = vmatpush.bf16.msra.mxu2 %v7003_v53  ;;  %v7642_v50 = vld [vmem:[#allocation11 + $0x600] sm:$0xf]  ;;  %v9857_v53 = vld [vmem:[#allocation11 + $0x2c4] sm:$0xf] }
  0xe9   :  { %2438 = vmatpush.bf16.msrb.mxu1 %v7771_v56  ;;  %2424 = vmatpush.bf16.msrb.mxu0 %v7515_v58  ;;  %v7643_v52 = vor.u32 %v9965_v51, %v7642_v50  ;;  %v7231_v56 = vor.u32 %v9857_v53, %v7228_v54  ;;  %v7418_v58 = vld [vmem:[#allocation11 + $0x440] sm:$0xf]  ;;  %v6876_v44 = vld [vmem:[#allocation11 + $0x20] sm:$0xf0] }
  0xea   :  { %771 = vmatmul.bf16.vlgmr.msrb.gmra.mxu2 %v10876_v12  ;;  %799 = vmatmul.bf16.vlgmr.msra.gmra.mxu0 %v10876_v12  ;;  %v7130_v12 = vld [vmem:[#allocation11 + $0x200] sm:$0xf]  ;;  %v7419_v61 = vor.u32 %v9909_v59, %v7418_v58  ;;  %v7708_v50 = vld [vmem:[#allocation11 + $0x6a0] sm:$0xf0] }
  0xeb   :  { %785 = vmatmul.bf16.vlgmr.msrb.gmra.mxu3 %v10878_v17  ;;  %813 = vmatmul.bf16.vlgmr.msra.gmra.mxu1 %v10878_v17  ;;  %v9773_v17 = vld [vmem:[#allocation11 + $0x1c] sm:$0xf0]  ;;  %v7131_v25 = vor.u32 %v9837_v18, %v7130_v12  ;;  %v9841_v12 = vld [vmem:[#allocation11 + $0x244] sm:$0xf] }
  0xec   :  { %2411 = vmatpush.bf16.msra.mxu3 %v7227_v62  ;;  %2397 = vmatpush.bf16.msra.mxu2 %v6971_v0  ;;  %v6875_v26 = vor.u32 %v9773_v17, %v6874_v21  ;;  %v9801_v62 = vld [vmem:[#allocation11 + $0x104] sm:$0xf] }
  0xed   :  { %2439 = vmatpush.bf16.msrb.mxu1 %v7739_v4  ;;  %2425 = vmatpush.bf16.msrb.mxu0 %v7483_v5  ;;  %v7007_v0 = vor.u32 %v9801_v62, %v7004_v63  ;;  %v7199_v4 = vor.u32 %v9849_v1, %v7196_v2  ;;  %v7836_v5 = vld [vmem:[#allocation11 + $0x7a0] sm:$0xf0] }
  0xee   :  { %v7164_v18 = vld [vmem:[#allocation11 + $0x260] sm:$0xf0] }
  0xef   :  { %v7167_v20 = vor.u32 %v9841_v12, %v7164_v18  ;;  %v7804_v21 = vld [vmem:[#allocation11 + $0x760] sm:$0xf0] }
  0xf0   :  { %2412 = vmatpush.bf16.msra.mxu3 %v7195_v8  ;;  %2398 = vmatpush.bf16.msra.mxu2 %v6939_v10  ;;  %v7839_v8 = vor.u32 %v10009_v3, %v7836_v5  ;;  %v9793_v10 = vld [vmem:[#allocation11 + $0xc4] sm:$0xf] }
  0xf1   :  { %2440 = vmatpush.bf16.msrb.mxu1 %v7707_v15  ;;  %2426 = vmatpush.bf16.msrb.mxu0 %v7451_v46  ;;  %v6975_v14 = vor.u32 %v9793_v10, %v6972_v11  ;;  %v7612_v15 = vld [vmem:[#allocation11 + $0x5e0] sm:$0xf0] }
  0xf2   :  { %v9929_v46 = vld [vmem:[#allocation11 + $0x504] sm:$0xf] }
  0xf3   :  { %v7519_v48 = vor.u32 %v9929_v46, %v7516_v47  ;;  %v7484_v53 = vld [vmem:[#allocation11 + $0x4e0] sm:$0xf0]  ;;  %v381_v46 = vperm.slane %v10888_v55, 2  ;;  %v7298_v47 = vld [vmem:[#allocation11 + $0x348] sm:$0xf] }
  0xf4   :  { %2413 = vmatpush.bf16.msra.mxu3 %v7163_v16  ;;  %2399 = vmatpush.bf16.msra.mxu2 %v6907_v19  ;;  %v7615_v16 = vor.u32 %v9953_v13, %v7612_v15  ;;  %v10001_v19 = vld [vmem:[#allocation11 + $0x744] sm:$0xf] }
  0xf5   :  { %2441 = vmatpush.bf16.msrb.mxu1 %v7675_v40  ;;  %2427 = vmatpush.bf16.msrb.mxu0 %v7419_v61  ;;  %v7807_v17 = vor.u32 %v10001_v19, %v7804_v21  ;;  %v9985_v40 = vld [vmem:[#allocation11 + $0x6c4] sm:$0xf]  ;;  %v380_v61 = vperm.slane %v10888_v55, 1 }
  0xf6   :  { %v7743_v42 = vor.u32 %v9985_v40, %v7740_v41  ;;  %v7676_v57 = vld [vmem:[#allocation11 + $0x660] sm:$0xf0]  ;;  %v7106_v41 = vld [vmem:[#allocation11 + $0x1c8] sm:$0xf] }
  0xf7   :  { %v9913_v59 = vld [vmem:[#allocation11 + $0x484] sm:$0xf] }
  0xf8   :  { %2414 = vmatpush.bf16.msra.mxu3 %v7131_v25  ;;  %2400 = vmatpush.bf16.msra.mxu2 %v6875_v26  ;;  %v6943_v25 = vor.u32 %v9785_v22, %v6940_v23  ;;  %v7580_v26 = vld [vmem:[#allocation11 + $0x5a0] sm:$0xf0]  ;;  %v7362_v23 = vld [vmem:[#allocation11 + $0x3c8] sm:$0xf] }
  0xf9   :  { %2442 = vmatpush.bf16.msrb.mxu1 %v7643_v52  ;;  %2428 = vmatpush.bf16.msrb.mxu0 %v7387_v9  ;;  %v9921_v52 = vld [vmem:[#allocation11 + $0x4c4] sm:$0xf] }
  0xfa   :  { %v7487_v54 = vor.u32 %v9921_v52, %v7484_v53  ;;  %v7644_v1 = vld [vmem:[#allocation11 + $0x620] sm:$0xf0] }
  0xfb   :  { %v7420_v5 = vld [vmem:[#allocation11 + $0x460] sm:$0xf0] }
  0xfc   :  { %2463 = vmatpush.bf16.msrb.mxu3 %v7359_v27  ;;  %2449 = vmatpush.bf16.msrb.mxu2 %v7103_v28  ;;  %v7583_v27 = vor.u32 %v9945_v24, %v7580_v26  ;;  %v9833_v28 = vld [vmem:[#allocation11 + $0x204] sm:$0xf]  ;;  %v9894_v24 = vld [vmem:[#allocation11 + $0x3e4] sm:$0xf0] }
  0xfd   :  { %2491 = vmatpush.bf16.msra.mxu1 %v7871_v60  ;;  %2477 = vmatpush.bf16.msra.mxu0 %v7615_v16  ;;  %v7135_v30 = vor.u32 %v9833_v28, %v7132_v29  ;;  %v7452_v60 = vld [vmem:[#allocation11 + $0x4a0] sm:$0xf0] }
  0xfe   :  { %v7455_v62 = vor.u32 %v9913_v59, %v7452_v60  ;;  %v9897_v10 = vld [vmem:[#allocation11 + $0x404] sm:$0xf] }
 0x100   :  { %2464 = vmatpush.bf16.msrb.mxu3 %v7327_v31  ;;  %2450 = vmatpush.bf16.msrb.mxu2 %v7071_v37  ;;  %v9993_v31 = vld [vmem:[#allocation11 + $0x704] sm:$0xf] }
 0x101   :  { %2492 = vmatpush.bf16.msra.mxu1 %v7839_v8  ;;  %2478 = vmatpush.bf16.msra.mxu0 %v7583_v27  ;;  %v7775_v33 = vor.u32 %v9993_v31, %v7772_v32  ;;  %v9937_v37 = vld [vmem:[#allocation11 + $0x544] sm:$0xf]  ;;  %v379_v8 = vperm.slane %v10888_v55, 0  ;;  %v7363_v32 = vor.u32 %v9894_v24, %v7362_v23 }
 0x102   :  { %v7551_v39 = vor.u32 %v9937_v37, %v7548_v38  ;;  %v7330_v37 = vld [vmem:[#allocation11 + $0x388] sm:$0xf] }
 0x103   :  { %v9886_v38 = vld [vmem:[#allocation11 + $0x3a4] sm:$0xf0] }
 0x104   :  { %2465 = vmatpush.bf16.msrb.mxu3 %v7295_v34  ;;  %2451 = vmatpush.bf16.msrb.mxu2 %v7039_v49  ;;  %v9777_v34 = vld [vmem:[#allocation11 + $0x44] sm:$0xf] }
 0x105   :  { %2493 = vmatpush.bf16.msra.mxu1 %v7807_v17  ;;  %v6911_v36 = vor.u32 %v9777_v34, %v6908_v35  ;;  %2479 = vmatpush.bf16.msra.mxu0 %v7551_v39  ;;  %v9977_v49 = vld [vmem:[#allocation11 + $0x684] sm:$0xf] }
 0x106   :  { %v7711_v51 = vor.u32 %v9977_v49, %v7708_v50 }
 0x108   :  { %2466 = vmatpush.bf16.msrb.mxu3 %v7263_v43  ;;  %2452 = vmatpush.bf16.msrb.mxu2 %v7007_v0  ;;  %v9769_v43 = vld [vmem:[#allocation11 + $0x4] sm:$0xf] }
 0x109   :  { %2494 = vmatpush.bf16.msra.mxu1 %v7775_v33  ;;  %v6879_v45 = vor.u32 %v9769_v43, %v6876_v44  ;;  %2480 = vmatpush.bf16.msra.mxu0 %v7519_v48  ;;  %v9961_v0 = vld [vmem:[#allocation11 + $0x604] sm:$0xf]  ;;  %v7331_v43 = vor.u32 %v9886_v38, %v7330_v37  ;;  %v9878_v48 = vld [vmem:[#allocation11 + $0x364] sm:$0xf0] }
 0x10a   :  { %v7647_v3 = vor.u32 %v9961_v0, %v7644_v1  ;;  %v7170_v37 = vld [vmem:[#allocation11 + $0x248] sm:$0xf] }
 0x10c   :  { %2467 = vmatpush.bf16.msrb.mxu3 %v7231_v56  ;;  %2453 = vmatpush.bf16.msrb.mxu2 %v6975_v14  ;;  %v9969_v56 = vld [vmem:[#allocation11 + $0x644] sm:$0xf] }
 0x10d   :  { %2495 = vmatpush.bf16.msra.mxu1 %v7743_v42  ;;  %v7679_v58 = vor.u32 %v9969_v56, %v7676_v57  ;;  %2481 = vmatpush.bf16.msra.mxu0 %v7487_v54  ;;  %v7388_v14 = vld [vmem:[#allocation11 + $0x420] sm:$0xf0]  ;;  %v9830_v42 = vld [vmem:[#allocation11 + $0x1e4] sm:$0xf0] }
 0x10e   :  { %v7391_v16 = vor.u32 %v9897_v10, %v7388_v14  ;;  %v7107_v50 = vor.u32 %v9830_v42, %v7106_v41  ;;  %v7074_v54 = vld [vmem:[#allocation11 + $0x188] sm:$0xf] }
 0x10f   :  { %v9822_v56 = vld [vmem:[#allocation11 + $0x1a4] sm:$0xf0] }
 0x110   :  { %2468 = vmatpush.bf16.msrb.mxu3 %v7199_v4  ;;  %2454 = vmatpush.bf16.msrb.mxu2 %v6943_v25  ;;  %v9905_v4 = vld [vmem:[#allocation11 + $0x444] sm:$0xf]  ;;  %v10022_v10 = vld [vmem:[#allocation11 + $0x7e4] sm:$0xf0] }
 0x111   :  { %2496 = vmatpush.bf16.msra.mxu1 %v7711_v51  ;;  %2482 = vmatpush.bf16.msra.mxu0 %v7455_v62  ;;  %v7423_v7 = vor.u32 %v9905_v4, %v7420_v5  ;;  %v9870_v62 = vld [vmem:[#allocation11 + $0x324] sm:$0xf0] }
 0x112   :  { %v7234_v5 = vld [vmem:[#allocation11 + $0x2c8] sm:$0xf] }
 0x113   :  { %v7810_v41 = vld [vmem:[#allocation11 + $0x748] sm:$0xf] }
 0x114   :  { %2469 = vmatpush.bf16.msrb.mxu3 %v7167_v20  ;;  %2455 = vmatpush.bf16.msrb.mxu2 %v6911_v36  ;;  %v10006_v42 = vld [vmem:[#allocation11 + $0x764] sm:$0xf0] }
 0x115   :  { %2497 = vmatpush.bf16.msra.mxu1 %v7679_v58  ;;  %2483 = vmatpush.bf16.msra.mxu0 %v7423_v7  ;;  %v7299_v58 = vor.u32 %v9878_v48, %v7298_v47  ;;  %v9790_v47 = vld [vmem:[#allocation11 + $0xa4] sm:$0xf0] }
 0x116   :  { %v7586_v48 = vld [vmem:[#allocation11 + $0x588] sm:$0xf] }
 0x118   :  { %2470 = vmatpush.bf16.msrb.mxu3 %v7135_v30  ;;  %2456 = vmatpush.bf16.msrb.mxu2 %v6879_v45  ;;  %v382_v30 = vperm.slane %v10888_v55, 3 }
 0x119   :  { %2498 = vmatpush.bf16.msra.mxu1 %v7647_v3  ;;  %2484 = vmatpush.bf16.msra.mxu0 %v7391_v16  ;;  %v9814_v3 = vld [vmem:[#allocation11 + $0x164] sm:$0xf0] }
 0x157   :  { %v744_v63 = vpop.f32.mrf.mxu0 }
 0x158   :  { %v758_v2 = vpop.f32.mrf.mxu1  ;;  %v745_v6 = vadd.f32 %v744_v63, %v380_v61  ;;  %v7075_v63 = vor.u32 %v9822_v56, %v7074_v54  ;;  %v9838_v54 = vld [vmem:[#allocation11 + $0x224] sm:$0xf0] }
 0x159   :  { %v7778_v56 = vld [vmem:[#allocation11 + $0x708] sm:$0xf] }
 0x15a   :  { %v759_v11 = vadd.f32 %v758_v2, %v745_v6  ;;  %v7042_v2 = vld [vmem:[#allocation11 + $0x148] sm:$0xf] }
 0x15b   :  { %v9862_v6 = vld [vmem:[#allocation11 + $0x2e4] sm:$0xf0] }
 0x15c   :  { %v820_v20 = vmul.f32 0.2, %v759_v11 }
 0x15d   :  { %v716_v9 = vpop.f32.mrf.mxu2 }
 0x15e   :  { %v730_v13 = vpop.f32.mrf.mxu3  ;;  %v717_v12 = vadd.f32 %v716_v9, %v379_v8  ;;  %v828_v26 = vmax.f32 %v759_v11, %v820_v20  ;;  %v7874_v9 = vld [vmem:[#allocation11 + $0x7c8] sm:$0xf]  ;;  %v7235_v20 = vor.u32 %v9862_v6, %v7234_v5 }
 0x15f   :  { %v746_v15 = vpop.f32.mrf.mxu0  ;;  %v9990_v5 = vld [vmem:[#allocation11 + $0x6e4] sm:$0xf0] }
 0x160   :  { %v747_v18 = vadd.f32 %v746_v15, %v380_v61  ;;  %v760_v19 = vpop.f32.mrf.mxu1  ;;  %v731_v17 = vadd.f32 %v730_v13, %v717_v12  ;;  %v7266_v61 = vld [vmem:[#allocation11 + $0x308] sm:$0xf]  ;;  %v7043_v13 = vor.u32 %v9814_v3, %v7042_v2 }
 0x161   :  { %v7267_v4 = vor.u32 %v9870_v62, %v7266_v61  ;;  %v7010_v12 = vld [vmem:[#allocation11 + $0x108] sm:$0xf]  ;;  %v7364_v61 = vld [vmem:[#allocation11 + $0x3e8] sm:$0xf0] }
 0x162   :  { %v761_v21 = vadd.f32 %v760_v19, %v747_v18  ;;  %v819_v33 = vmul.f32 0.2, %v731_v17  ;;  %v9806_v18 = vld [vmem:[#allocation11 + $0x124] sm:$0xf0] }
 0x163   :  { %v6914_v62 = vld [vmem:[#allocation11 + $0x48] sm:$0xf] }
 0x164   :  { %v824_v22 = vmul.f32 0.2, %v761_v21  ;;  %v827_v44 = vmax.f32 %v731_v17, %v819_v33  ;;  %v7202_v17 = vld [vmem:[#allocation11 + $0x288] sm:$0xf] }
 0x165   :  { %v718_v25 = vpop.f32.mrf.mxu2  ;;  %v9958_v33 = vld [vmem:[#allocation11 + $0x5e4] sm:$0xf0] }
 0x166   :  { %v832_v27 = vmax.f32 %v761_v21, %v824_v22  ;;  %v719_v28 = vadd.f32 %v718_v25, %v379_v8  ;;  %v732_v29 = vpop.f32.mrf.mxu3  ;;  %v7875_v21 = vor.u32 %v10022_v10, %v7874_v9  ;;  %v9854_v22 = vld [vmem:[#allocation11 + $0x2a4] sm:$0xf0]  ;;  %v7332_v9 = vld [vmem:[#allocation11 + $0x3a8] sm:$0xf0] }
 0x167   :  { %v800_v31 = vpop.f32.mrf.mxu0  ;;  %v6882_v10 = vld [vmem:[#allocation11 + $0x8] sm:$0xf] }
 0x168   :  { %v10893_v34 = vpack.c.bf16 %v832_v27, %v828_v26  ;;  %v733_v35 = vadd.f32 %v732_v29, %v719_v28  ;;  %v814_v36 = vpop.f32.mrf.mxu1  ;;  %v801_v40 = vadd.f32 %v800_v31, %v382_v30  ;;  %v7842_v26 = vld [vmem:[#allocation11 + $0x788] sm:$0xf]  ;;  %v7011_v28 = vor.u32 %v9806_v18, %v7010_v12  ;;  %v7108_v12 = vld [vmem:[#allocation11 + $0x1e8] sm:$0xf0] }
 0x169   :  { %v10014_v27 = vld [vmem:[#allocation11 + $0x7a4] sm:$0xf0] }
 0x16a   :  { %v823_v39 = vmul.f32 0.2, %v733_v35  ;;  %2415 = vmatmul.bf16.vlgmr.msra.gmra.mxu3 %v10893_v34  ;;  %v815_v52 = vadd.f32 %v814_v36, %v801_v40  ;;  %v6978_v29 = vld [vmem:[#allocation11 + $0xc8] sm:$0xf]  ;;  %v7843_v36 = vor.u32 %v10014_v27, %v7842_v26 }
 0x16b   :  { %2519 = vmatpush.bf16.msra.mxu3 %v7363_v32  ;;  %v7618_v32 = vld [vmem:[#allocation11 + $0x5c8] sm:$0xf] }
 0x16c   :  { %v831_v45 = vmax.f32 %v733_v35, %v823_v39  ;;  %v822_v0 = vmul.f32 0.2, %v815_v52  ;;  %v7203_v35 = vor.u32 %v9854_v22, %v7202_v17  ;;  %v9846_v40 = vld [vmem:[#allocation11 + $0x264] sm:$0xf0]  ;;  %v9874_v22 = vld [vmem:[#allocation11 + $0x34c] sm:$0xf] }
 0x16d   :  { %v772_v49 = vpop.f32.mrf.mxu2  ;;  %v7490_v26 = vld [vmem:[#allocation11 + $0x4c8] sm:$0xf] }
 0x16e   :  { %v10897_v51 = vpack.c.bf16 %v831_v45, %v827_v44  ;;  %v786_v53 = vpop.f32.mrf.mxu3  ;;  %v773_v59 = vadd.f32 %v772_v49, %v381_v46  ;;  %v830_v14 = vmax.f32 %v815_v52, %v822_v0  ;;  %v7619_v44 = vor.u32 %v9958_v33, %v7618_v32  ;;  %v6946_v45 = vld [vmem:[#allocation11 + $0x88] sm:$0xf] }
 0x16f   :  { %2520 = vmatpush.bf16.msra.mxu3 %v7331_v43  ;;  %v802_v57 = vpop.f32.mrf.mxu0  ;;  %v9950_v49 = vld [vmem:[#allocation11 + $0x5a4] sm:$0xf0]  ;;  %v7811_v52 = vor.u32 %v10006_v42, %v7810_v41  ;;  %v9810_v42 = vld [vmem:[#allocation11 + $0x14c] sm:$0xf] }
 0x170   :  { %v803_v60 = vadd.f32 %v802_v57, %v382_v30  ;;  %2401 = vmatmul.bf16.vlgmr.msra.gmra.mxu2 %v10897_v51  ;;  %v816_v55 = vpop.f32.mrf.mxu1  ;;  %v787_v7 = vadd.f32 %v786_v53, %v773_v59  ;;  %v9798_v30 = vld [vmem:[#allocation11 + $0xe4] sm:$0xf0]  ;;  %v7587_v59 = vor.u32 %v9950_v49, %v7586_v48  ;;  %v9858_v48 = vld [vmem:[#allocation11 + $0x2cc] sm:$0xf] }
 0x171   :  { %2505 = vmatpush.bf16.msra.mxu2 %v7107_v50  ;;  %v6979_v43 = vor.u32 %v9798_v30, %v6978_v29  ;;  %v7171_v50 = vor.u32 %v9846_v40, %v7170_v37  ;;  %v7138_v53 = vld [vmem:[#allocation11 + $0x208] sm:$0xf]  ;;  %v9818_v29 = vld [vmem:[#allocation11 + $0x18c] sm:$0xf] }
 0x172   :  { %v817_v1 = vadd.f32 %v816_v55, %v803_v60  ;;  %v821_v23 = vmul.f32 0.2, %v787_v7  ;;  %v9998_v57 = vld [vmem:[#allocation11 + $0x724] sm:$0xf0]  ;;  %v9890_v60 = vld [vmem:[#allocation11 + $0x3cc] sm:$0xf] }
 0x173   :  { %2521 = vmatpush.bf16.msra.mxu3 %v7299_v58  ;;  %v6947_v58 = vor.u32 %v9790_v47, %v6946_v45  ;;  %v9782_v55 = vld [vmem:[#allocation11 + $0x64] sm:$0xf0]  ;;  %v7779_v2 = vor.u32 %v9998_v57, %v7778_v56  ;;  %v7367_v3 = vor.u32 %v9890_v60, %v7364_v61  ;;  %v7076_v30 = vld [vmem:[#allocation11 + $0x1a8] sm:$0xf0] }
 0x174   :  { %v826_v8 = vmul.f32 0.2, %v817_v1  ;;  %v829_v38 = vmax.f32 %v787_v7, %v821_v23  ;;  %v9942_v0 = vld [vmem:[#allocation11 + $0x564] sm:$0xf0]  ;;  %v6915_v6 = vor.u32 %v9782_v55, %v6914_v62  ;;  %v7300_v23 = vld [vmem:[#allocation11 + $0x368] sm:$0xf0] }
 0x175   :  { %2506 = vmatpush.bf16.msra.mxu2 %v7075_v63  ;;  %v774_v11 = vpop.f32.mrf.mxu2  ;;  %v7554_v63 = vld [vmem:[#allocation11 + $0x548] sm:$0xf]  ;;  %v7268_v37 = vld [vmem:[#allocation11 + $0x328] sm:$0xf0] }
 0x176   :  { %v834_v15 = vmax.f32 %v817_v1, %v826_v8  ;;  %v775_v16 = vadd.f32 %v774_v11, %v381_v46  ;;  %v788_v19 = vpop.f32.mrf.mxu3  ;;  %v7139_v1 = vor.u32 %v9838_v54, %v7138_v53  ;;  %v7555_v7 = vor.u32 %v9942_v0, %v7554_v63  ;;  %v9882_v8 = vld [vmem:[#allocation11 + $0x38c] sm:$0xf]  ;;  %v9774_v11 = vld [vmem:[#allocation11 + $0x24] sm:$0xf0] }
 0x177   :  { %2522 = vmatpush.bf16.msra.mxu3 %v7267_v4  ;;  %v7746_v4 = vld [vmem:[#allocation11 + $0x6c8] sm:$0xf]  ;;  %v7335_v18 = vor.u32 %v9882_v8, %v7332_v9  ;;  %v7876_v53 = vld [vmem:[#allocation11 + $0x7e8] sm:$0xf0] }
 0x178   :  { %v10900_v24 = vpack.c.bf16 %v834_v15, %v830_v14  ;;  %v789_v25 = vadd.f32 %v788_v19, %v775_v16  ;;  %v9934_v14 = vld [vmem:[#allocation11 + $0x524] sm:$0xf0]  ;;  %v7747_v15 = vor.u32 %v9990_v5, %v7746_v4  ;;  %v9826_v16 = vld [vmem:[#allocation11 + $0x1cc] sm:$0xf] }
 0x179   :  { %2507 = vmatpush.bf16.msra.mxu2 %v7043_v13  ;;  %v7522_v13 = vld [vmem:[#allocation11 + $0x508] sm:$0xf]  ;;  %v7012_v60 = vld [vmem:[#allocation11 + $0x128] sm:$0xf0] }
 0x17a   :  { %v825_v31 = vmul.f32 0.2, %v789_v25  ;;  %2443 = vmatmul.bf16.vlgmr.msrb.gmra.mxu1 %v10900_v24  ;;  %2471 = vmatmul.bf16.vlgmr.msrb.gmra.mxu3 %v10893_v34  ;;  %v7714_v19 = vld [vmem:[#allocation11 + $0x688] sm:$0xf]  ;;  %v7523_v17 = vor.u32 %v9934_v14, %v7522_v13  ;;  %v9850_v55 = vld [vmem:[#allocation11 + $0x28c] sm:$0xf] }
 0x17b   :  { %2523 = vmatpush.bf16.msra.mxu3 %v7235_v20  ;;  %2547 = vmatpush.bf16.msrb.mxu1 %v7875_v21  ;;  %v9982_v20 = vld [vmem:[#allocation11 + $0x6a4] sm:$0xf0]  ;;  %v6883_v21 = vor.u32 %v9774_v11, %v6882_v10  ;;  %v7204_v0 = vld [vmem:[#allocation11 + $0x2a8] sm:$0xf0] }
 0x17c   :  { %v833_v39 = vmax.f32 %v789_v25, %v825_v31  ;;  %v7111_v25 = vor.u32 %v9826_v16, %v7108_v12  ;;  %v9926_v27 = vld [vmem:[#allocation11 + $0x4e4] sm:$0xf0]  ;;  %v7303_v31 = vor.u32 %v9874_v22, %v7300_v23  ;;  %v9954_v8 = vld [vmem:[#allocation11 + $0x5cc] sm:$0xf]  ;;  %v7207_v10 = vor.u32 %v9850_v55, %v7204_v0  ;;  %v7306_v55 = vld [vmem:[#allocation11 + $0x350] sm:$0xf] }
 0x17d   :  { %2508 = vmatpush.bf16.msra.mxu2 %v7011_v28  ;;  %v7715_v28 = vor.u32 %v9982_v20, %v7714_v19  ;;  %v7682_v32 = vld [vmem:[#allocation11 + $0x648] sm:$0xf]  ;;  %v7620_v9 = vld [vmem:[#allocation11 + $0x5e8] sm:$0xf0] }
 0x17e   :  { %v10904_v46 = vpack.c.bf16 %v833_v39, %v829_v38  ;;  %v9974_v33 = vld [vmem:[#allocation11 + $0x664] sm:$0xf0]  ;;  %v7079_v38 = vor.u32 %v9818_v29, %v7076_v30  ;;  %v9842_v13 = vld [vmem:[#allocation11 + $0x24c] sm:$0xf]  ;;  %v7623_v19 = vor.u32 %v9954_v8, %v7620_v9 }
 0x17f   :  { %2524 = vmatpush.bf16.msra.mxu3 %v7203_v35  ;;  %2548 = vmatpush.bf16.msrb.mxu1 %v7843_v36  ;;  %v7491_v35 = vor.u32 %v9926_v27, %v7490_v26  ;;  %v9866_v36 = vld [vmem:[#allocation11 + $0x30c] sm:$0xf]  ;;  %v7458_v39 = vld [vmem:[#allocation11 + $0x488] sm:$0xf]  ;;  %v7683_v41 = vor.u32 %v9974_v33, %v7682_v32  ;;  %v7370_v32 = vld [vmem:[#allocation11 + $0x3d0] sm:$0xf] }
 0x180   :  { %2429 = vmatmul.bf16.vlgmr.msrb.gmra.mxu0 %v10904_v46  ;;  %2457 = vmatmul.bf16.vlgmr.msrb.gmra.mxu2 %v10897_v51  ;;  %v9918_v40 = vld [vmem:[#allocation11 + $0x4a4] sm:$0xf0]  ;;  %v10002_v16 = vld [vmem:[#allocation11 + $0x74c] sm:$0xf]  ;;  %v9895_v33 = vld [vmem:[#allocation11 + $0x3ec] sm:$0xf0] }
 0x181   :  { %2509 = vmatpush.bf16.msra.mxu2 %v6979_v43  ;;  %2533 = vmatpush.bf16.msrb.mxu0 %v7619_v44  ;;  %v7044_v43 = vld [vmem:[#allocation11 + $0x168] sm:$0xf0]  ;;  %v7271_v44 = vor.u32 %v9866_v36, %v7268_v37  ;;  %v7650_v45 = vld [vmem:[#allocation11 + $0x608] sm:$0xf]  ;;  %v7459_v49 = vor.u32 %v9918_v40, %v7458_v39 }
 0x182   :  { %v9966_v47 = vld [vmem:[#allocation11 + $0x624] sm:$0xf0]  ;;  %v7047_v54 = vor.u32 %v9810_v42, %v7044_v43  ;;  %v7812_v12 = vld [vmem:[#allocation11 + $0x768] sm:$0xf0] }
 0x183   :  { %2525 = vmatpush.bf16.msra.mxu3 %v7171_v50  ;;  %2549 = vmatpush.bf16.msrb.mxu1 %v7811_v52  ;;  %v7236_v50 = vld [vmem:[#allocation11 + $0x2e8] sm:$0xf0]  ;;  %v7426_v56 = vld [vmem:[#allocation11 + $0x448] sm:$0xf] }
 0x184   :  { %v10018_v52 = vld [vmem:[#allocation11 + $0x7cc] sm:$0xf]  ;;  %v9910_v57 = vld [vmem:[#allocation11 + $0x464] sm:$0xf0]  ;;  %v7239_v61 = vor.u32 %v9858_v48, %v7236_v50  ;;  %v9887_v48 = vld [vmem:[#allocation11 + $0x3ac] sm:$0xf0] }
 0x185   :  { %2510 = vmatpush.bf16.msra.mxu2 %v6947_v58  ;;  %2534 = vmatpush.bf16.msrb.mxu0 %v7587_v59  ;;  %v7651_v58 = vor.u32 %v9966_v47, %v7650_v45  ;;  %v9802_v59 = vld [vmem:[#allocation11 + $0x10c] sm:$0xf]  ;;  %v7879_v62 = vor.u32 %v10018_v52, %v7876_v53  ;;  %v7427_v63 = vor.u32 %v9910_v57, %v7426_v56  ;;  %v7394_v4 = vld [vmem:[#allocation11 + $0x408] sm:$0xf]  ;;  %v7338_v47 = vld [vmem:[#allocation11 + $0x390] sm:$0xf] }
 0x186   :  { %v9902_v5 = vld [vmem:[#allocation11 + $0x424] sm:$0xf0]  ;;  %v9786_v20 = vld [vmem:[#allocation11 + $0x8c] sm:$0xf]  ;;  %v7114_v56 = vld [vmem:[#allocation11 + $0x1d0] sm:$0xf] }
 0x187   :  { %2526 = vmatpush.bf16.msra.mxu3 %v7139_v1  ;;  %2550 = vmatpush.bf16.msrb.mxu1 %v7779_v2  ;;  %v10010_v1 = vld [vmem:[#allocation11 + $0x78c] sm:$0xf]  ;;  %v7395_v14 = vor.u32 %v9902_v5, %v7394_v4  ;;  %v9831_v57 = vld [vmem:[#allocation11 + $0x1ec] sm:$0xf0] }
 0x188   :  { %v7844_v2 = vld [vmem:[#allocation11 + $0x7a8] sm:$0xf0]  ;;  %v7115_v0 = vor.u32 %v9831_v57, %v7114_v56  ;;  %v7082_v4 = vld [vmem:[#allocation11 + $0x190] sm:$0xf] }
 0x189   :  { %2511 = vmatpush.bf16.msra.mxu2 %v6915_v6  ;;  %2535 = vmatpush.bf16.msrb.mxu0 %v7555_v7  ;;  %v9794_v6 = vld [vmem:[#allocation11 + $0xcc] sm:$0xf]  ;;  %v7847_v11 = vor.u32 %v10010_v1, %v7844_v2  ;;  %v9823_v5 = vld [vmem:[#allocation11 + $0x1ac] sm:$0xf0] }
 0x18a   :  { %2499 = vmatmul.bf16.vlgmr.msra.gmra.mxu1 %v10900_v24  ;;  %2527 = vmatmul.bf16.vlgmr.msra.gmra.mxu3 %v10893_v34  ;;  %v6980_v7 = vld [vmem:[#allocation11 + $0xe8] sm:$0xf0] }
 0x18b   :  { %2575 = vmatpush.bf16.msrb.mxu3 %v7367_v3  ;;  %2551 = vmatpush.bf16.msrb.mxu1 %v7747_v15  ;;  %v7015_v3 = vor.u32 %v9802_v59, %v7012_v60  ;;  %v7172_v15 = vld [vmem:[#allocation11 + $0x268] sm:$0xf0] }
 0x18c   :  { %v7588_v22 = vld [vmem:[#allocation11 + $0x5a8] sm:$0xf0]  ;;  %v7175_v23 = vor.u32 %v9842_v13, %v7172_v15  ;;  %v7083_v13 = vor.u32 %v9823_v5, %v7082_v4  ;;  %v9999_v4 = vld [vmem:[#allocation11 + $0x72c] sm:$0xf0] }
 0x18d   :  { %2512 = vmatpush.bf16.msra.mxu2 %v6883_v21  ;;  %2536 = vmatpush.bf16.msrb.mxu0 %v7523_v17  ;;  %v6948_v21 = vld [vmem:[#allocation11 + $0xa8] sm:$0xf0] }
 0x18e   :  { %v9946_v17 = vld [vmem:[#allocation11 + $0x58c] sm:$0xf]  ;;  %v6951_v30 = vor.u32 %v9786_v20, %v6948_v21 }
 0x18f   :  { %2576 = vmatpush.bf16.msrb.mxu3 %v7335_v18  ;;  %2552 = vmatpush.bf16.msrb.mxu1 %v7715_v28  ;;  %v6983_v18 = vor.u32 %v9794_v6, %v6980_v7  ;;  %v9834_v26 = vld [vmem:[#allocation11 + $0x20c] sm:$0xf] }
 0x190   :  { %2485 = vmatmul.bf16.vlgmr.msra.gmra.mxu0 %v10904_v46  ;;  %2513 = vmatmul.bf16.vlgmr.msra.gmra.mxu2 %v10897_v51  ;;  %v7140_v27 = vld [vmem:[#allocation11 + $0x228] sm:$0xf0] }
 0x191   :  { %2561 = vmatpush.bf16.msrb.mxu2 %v7111_v25  ;;  %2537 = vmatpush.bf16.msrb.mxu0 %v7491_v35  ;;  %v7815_v25 = vor.u32 %v10002_v16, %v7812_v12  ;;  %v9994_v28 = vld [vmem:[#allocation11 + $0x70c] sm:$0xf]  ;;  %v7143_v39 = vor.u32 %v9834_v26, %v7140_v27  ;;  %v7050_v12 = vld [vmem:[#allocation11 + $0x150] sm:$0xf] }
 0x192   :  { %v7780_v29 = vld [vmem:[#allocation11 + $0x728] sm:$0xf0]  ;;  %v10023_v26 = vld [vmem:[#allocation11 + $0x7ec] sm:$0xf0] }
 0x193   :  { %2577 = vmatpush.bf16.msrb.mxu3 %v7303_v31  ;;  %2553 = vmatpush.bf16.msrb.mxu1 %v7683_v41  ;;  %v7591_v31 = vor.u32 %v9946_v17, %v7588_v22  ;;  %v9778_v35 = vld [vmem:[#allocation11 + $0x4c] sm:$0xf]  ;;  %v7783_v40 = vor.u32 %v9994_v28, %v7780_v29  ;;  %v7371_v41 = vor.u32 %v9895_v33, %v7370_v32  ;;  %v7242_v17 = vld [vmem:[#allocation11 + $0x2d0] sm:$0xf] }
 0x194   :  { %v6916_v36 = vld [vmem:[#allocation11 + $0x68] sm:$0xf0]  ;;  %v9807_v32 = vld [vmem:[#allocation11 + $0x12c] sm:$0xf0] }
 0x195   :  { %2562 = vmatpush.bf16.msrb.mxu2 %v7079_v38  ;;  %2538 = vmatpush.bf16.msrb.mxu0 %v7459_v49  ;;  %v9938_v37 = vld [vmem:[#allocation11 + $0x54c] sm:$0xf] }
 0x196   :  { %v7556_v38 = vld [vmem:[#allocation11 + $0x568] sm:$0xf0] }
 0x197   :  { %2578 = vmatpush.bf16.msrb.mxu3 %v7271_v44  ;;  %2554 = vmatpush.bf16.msrb.mxu1 %v7651_v58  ;;  %v9986_v42 = vld [vmem:[#allocation11 + $0x6cc] sm:$0xf]  ;;  %v6919_v44 = vor.u32 %v9778_v35, %v6916_v36  ;;  %v7559_v45 = vor.u32 %v9938_v37, %v7556_v38  ;;  %v7339_v58 = vor.u32 %v9887_v48, %v7338_v47  ;;  %v7210_v36 = vld [vmem:[#allocation11 + $0x290] sm:$0xf] }
 0x198   :  { %v7748_v43 = vld [vmem:[#allocation11 + $0x6e8] sm:$0xf0]  ;;  %v9855_v38 = vld [vmem:[#allocation11 + $0x2ac] sm:$0xf0] }
 0x199   :  { %2563 = vmatpush.bf16.msrb.mxu2 %v7047_v54  ;;  %2539 = vmatpush.bf16.msrb.mxu0 %v7427_v63  ;;  %v9770_v49 = vld [vmem:[#allocation11 + $0xc] sm:$0xf]  ;;  %v7751_v54 = vor.u32 %v9986_v42, %v7748_v43  ;;  %v9879_v63 = vld [vmem:[#allocation11 + $0x36c] sm:$0xf0] }
 0x19a   :  { %2555 = vmatmul.bf16.vlgmr.msrb.gmra.mxu1 %v10900_v24  ;;  %v6884_v50 = vld [vmem:[#allocation11 + $0x28] sm:$0xf0]  ;;  %v7307_v6 = vor.u32 %v9879_v63, %v7306_v55  ;;  %v7626_v47 = vld [vmem:[#allocation11 + $0x5d0] sm:$0xf] }
 0x19b   :  { %2579 = vmatpush.bf16.msrb.mxu3 %v7239_v61  ;;  %2603 = vmatpush.bf16.msra.mxu1 %v7879_v62  ;;  %v9930_v52 = vld [vmem:[#allocation11 + $0x50c] sm:$0xf]  ;;  %v6887_v61 = vor.u32 %v9770_v49, %v6884_v50  ;;  %v9959_v48 = vld [vmem:[#allocation11 + $0x5ec] sm:$0xf0]  ;;  %v7211_v49 = vor.u32 %v9855_v38, %v7210_v36  ;;  %v9875_v36 = vld [vmem:[#allocation11 + $0x354] sm:$0xf] }
 0x19c   :  { %v7524_v53 = vld [vmem:[#allocation11 + $0x528] sm:$0xf0]  ;;  %v7627_v57 = vor.u32 %v9959_v48, %v7626_v47  ;;  %v9951_v55 = vld [vmem:[#allocation11 + $0x5ac] sm:$0xf0]  ;;  %v7308_v38 = vld [vmem:[#allocation11 + $0x370] sm:$0xf0] }
 0x19d   :  { %2564 = vmatpush.bf16.msrb.mxu2 %v7015_v3  ;;  %2540 = vmatpush.bf16.msrb.mxu0 %v7395_v14  ;;  %v9978_v59 = vld [vmem:[#allocation11 + $0x68c] sm:$0xf]  ;;  %v7527_v62 = vor.u32 %v9930_v52, %v7524_v53  ;;  %v7178_v53 = vld [vmem:[#allocation11 + $0x250] sm:$0xf] }
 0x19e   :  { %v7716_v60 = vld [vmem:[#allocation11 + $0x6a8] sm:$0xf0]  ;;  %v7690_v47 = vld [vmem:[#allocation11 + $0x650] sm:$0xf] }
 0x19f   :  { %2580 = vmatpush.bf16.msrb.mxu3 %v7207_v10  ;;  %2604 = vmatpush.bf16.msra.mxu1 %v7847_v11  ;;  %v9922_v1 = vld [vmem:[#allocation11 + $0x4cc] sm:$0xf]  ;;  %v7719_v3 = vor.u32 %v9978_v59, %v7716_v60  ;;  %v7274_v10 = vld [vmem:[#allocation11 + $0x310] sm:$0xf] }
 0x1a0   :  { %2541 = vmatmul.bf16.vlgmr.msrb.gmra.mxu0 %v10904_v46  ;;  %v7492_v2 = vld [vmem:[#allocation11 + $0x4e8] sm:$0xf0]  ;;  %v9871_v11 = vld [vmem:[#allocation11 + $0x32c] sm:$0xf0] }
 0x1a1   :  { %2565 = vmatpush.bf16.msrb.mxu2 %v6983_v18  ;;  %2589 = vmatpush.bf16.msra.mxu0 %v7623_v19  ;;  %v9970_v7 = vld [vmem:[#allocation11 + $0x64c] sm:$0xf]  ;;  %v7495_v9 = vor.u32 %v9922_v1, %v7492_v2  ;;  %v9815_v18 = vld [vmem:[#allocation11 + $0x16c] sm:$0xf0]  ;;  %v7275_v19 = vor.u32 %v9871_v11, %v7274_v10 }
 0x1a2   :  { %v7684_v8 = vld [vmem:[#allocation11 + $0x668] sm:$0xf0]  ;;  %v7051_v27 = vor.u32 %v9815_v18, %v7050_v12  ;;  %v10007_v59 = vld [vmem:[#allocation11 + $0x76c] sm:$0xf0] }
 0x1a3   :  { %2581 = vmatpush.bf16.msrb.mxu3 %v7175_v23  ;;  %2605 = vmatpush.bf16.msra.mxu1 %v7815_v25  ;;  %v9914_v14 = vld [vmem:[#allocation11 + $0x48c] sm:$0xf]  ;;  %v7687_v16 = vor.u32 %v9970_v7, %v7684_v8  ;;  %v9863_v23 = vld [vmem:[#allocation11 + $0x2ec] sm:$0xf0]  ;;  %v9891_v7 = vld [vmem:[#allocation11 + $0x3d4] sm:$0xf] }
 0x1a4   :  { %v7460_v15 = vld [vmem:[#allocation11 + $0x4a8] sm:$0xf0]  ;;  %v7882_v25 = vld [vmem:[#allocation11 + $0x7d0] sm:$0xf]  ;;  %v7243_v33 = vor.u32 %v9863_v23, %v7242_v17  ;;  %v7372_v8 = vld [vmem:[#allocation11 + $0x3f0] sm:$0xf0] }
 0x1a5   :  { %2566 = vmatpush.bf16.msrb.mxu2 %v6951_v30  ;;  %2590 = vmatpush.bf16.msra.mxu0 %v7591_v31  ;;  %v9962_v20 = vld [vmem:[#allocation11 + $0x60c] sm:$0xf]  ;;  %v7463_v22 = vor.u32 %v9914_v14, %v7460_v15  ;;  %v7018_v31 = vld [vmem:[#allocation11 + $0x110] sm:$0xf]  ;;  %v7883_v35 = vor.u32 %v10023_v26, %v7882_v25  ;;  %v7340_v17 = vld [vmem:[#allocation11 + $0x3b0] sm:$0xf0] }
 0x1a6   :  { %v7652_v21 = vld [vmem:[#allocation11 + $0x628] sm:$0xf0]  ;;  %v6954_v60 = vld [vmem:[#allocation11 + $0x90] sm:$0xf] }
 0x1a7   :  { %2582 = vmatpush.bf16.msrb.mxu3 %v7143_v39  ;;  %2606 = vmatpush.bf16.msra.mxu1 %v7783_v40  ;;  %v9906_v28 = vld [vmem:[#allocation11 + $0x44c] sm:$0xf]  ;;  %v7655_v30 = vor.u32 %v9962_v20, %v7652_v21  ;;  %v7850_v39 = vld [vmem:[#allocation11 + $0x790] sm:$0xf]  ;;  %v9883_v21 = vld [vmem:[#allocation11 + $0x394] sm:$0xf] }
 0x1a8   :  { %v7428_v29 = vld [vmem:[#allocation11 + $0x468] sm:$0xf0]  ;;  %v10015_v40 = vld [vmem:[#allocation11 + $0x7ac] sm:$0xf0] }
 0x1a9   :  { %2567 = vmatpush.bf16.msrb.mxu2 %v6919_v44  ;;  %2591 = vmatpush.bf16.msra.mxu0 %v7559_v45  ;;  %v7431_v37 = vor.u32 %v9906_v28, %v7428_v29  ;;  %v9898_v42 = vld [vmem:[#allocation11 + $0x40c] sm:$0xf]  ;;  %v6986_v44 = vld [vmem:[#allocation11 + $0xd0] sm:$0xf]  ;;  %v7851_v50 = vor.u32 %v10015_v40, %v7850_v39  ;;  %v7116_v28 = vld [vmem:[#allocation11 + $0x1f0] sm:$0xf0] }
 0x1aa   :  { %2583 = vmatmul.bf16.vlgmr.msrb.gmra.mxu3 %v10893_v34  ;;  %v7396_v43 = vld [vmem:[#allocation11 + $0x428] sm:$0xf0]  ;;  %v9799_v45 = vld [vmem:[#allocation11 + $0xec] sm:$0xf0] }
 0x1ab   :  { %2631 = vmatpush.bf16.msra.mxu3 %v7371_v41  ;;  %2607 = vmatpush.bf16.msra.mxu1 %v7751_v54  ;;  %v7019_v41 = vor.u32 %v9807_v32, %v7018_v31  ;;  %v7399_v52 = vor.u32 %v9898_v42, %v7396_v43  ;;  %v9847_v54 = vld [vmem:[#allocation11 + $0x26c] sm:$0xf0]  ;;  %v6987_v56 = vor.u32 %v9799_v45, %v6986_v44  ;;  %v7084_v42 = vld [vmem:[#allocation11 + $0x1b0] sm:$0xf0] }
 0x1ac   :  { %v7179_v63 = vor.u32 %v9847_v54, %v7178_v53  ;;  %v9839_v2 = vld [vmem:[#allocation11 + $0x22c] sm:$0xf0]  ;;  %v7311_v44 = vor.u32 %v9875_v36, %v7308_v38  ;;  %v7596_v36 = vld [vmem:[#allocation11 + $0x5b0] sm:$0xf0] }
 0x1ad   :  { %2568 = vmatpush.bf16.msrb.mxu2 %v6887_v61  ;;  %2592 = vmatpush.bf16.msra.mxu0 %v7527_v62  ;;  %v9791_v61 = vld [vmem:[#allocation11 + $0xac] sm:$0xf0]  ;;  %v9835_v38 = vld [vmem:[#allocation11 + $0x214] sm:$0xf] }
 0x1ae   :  { %v7594_v62 = vld [vmem:[#allocation11 + $0x590] sm:$0xf]  ;;  %v6955_v5 = vor.u32 %v9791_v61, %v6954_v60 }
 0x1af   :  { %2632 = vmatpush.bf16.msra.mxu3 %v7339_v58  ;;  %2608 = vmatpush.bf16.msra.mxu1 %v7719_v3  ;;  %v7818_v58 = vld [vmem:[#allocation11 + $0x750] sm:$0xf] }
 0x1b0   :  { %2569 = vmatmul.bf16.vlgmr.msrb.gmra.mxu2 %v10897_v51  ;;  %v7819_v1 = vor.u32 %v10007_v59, %v7818_v58  ;;  %v7786_v3 = vld [vmem:[#allocation11 + $0x710] sm:$0xf] }
 0x1b1   :  { %2617 = vmatpush.bf16.msra.mxu2 %v7115_v0  ;;  %2593 = vmatpush.bf16.msra.mxu0 %v7495_v9  ;;  %v7146_v0 = vld [vmem:[#allocation11 + $0x210] sm:$0xf]  ;;  %v7787_v15 = vor.u32 %v9999_v4, %v7786_v3 }
 0x1b2   :  { %v6922_v9 = vld [vmem:[#allocation11 + $0x50] sm:$0xf]  ;;  %v7147_v14 = vor.u32 %v9839_v2, %v7146_v0  ;;  %v7884_v2 = vld [vmem:[#allocation11 + $0x7f0] sm:$0xf0] }
 0x1b3   :  { %2633 = vmatpush.bf16.msra.mxu3 %v7307_v6  ;;  %2609 = vmatpush.bf16.msra.mxu1 %v7687_v16  ;;  %v7595_v6 = vor.u32 %v9951_v55, %v7594_v62  ;;  %v9783_v10 = vld [vmem:[#allocation11 + $0x6c] sm:$0xf0]  ;;  %v7375_v16 = vor.u32 %v9891_v7, %v7372_v8  ;;  %v9859_v55 = vld [vmem:[#allocation11 + $0x2d4] sm:$0xf] }
 0x1b4   :  { %v7562_v11 = vld [vmem:[#allocation11 + $0x550] sm:$0xf] }
 0x1b5   :  { %2618 = vmatpush.bf16.msra.mxu2 %v7083_v13  ;;  %2594 = vmatpush.bf16.msra.mxu0 %v7463_v22  ;;  %v9943_v13 = vld [vmem:[#allocation11 + $0x56c] sm:$0xf0] }
 0x1b6   :  { %v7754_v12 = vld [vmem:[#allocation11 + $0x6d0] sm:$0xf]  ;;  %v7563_v20 = vor.u32 %v9943_v13, %v7562_v11  ;;  %v7212_v11 = vld [vmem:[#allocation11 + $0x2b0] sm:$0xf0] }
 0x1b7   :  { %2634 = vmatpush.bf16.msra.mxu3 %v7275_v19  ;;  %2610 = vmatpush.bf16.msra.mxu1 %v7655_v30  ;;  %v9991_v18 = vld [vmem:[#allocation11 + $0x6ec] sm:$0xf0]  ;;  %v6923_v19 = vor.u32 %v9783_v10, %v6922_v9  ;;  %v7343_v30 = vor.u32 %v9883_v21, %v7340_v17  ;;  %v9851_v10 = vld [vmem:[#allocation11 + $0x294] sm:$0xf] }
 0x1b8   :  { %v6890_v22 = vld [vmem:[#allocation11 + $0x10] sm:$0xf]  ;;  %v7755_v29 = vor.u32 %v9991_v18, %v7754_v12  ;;  %v9955_v21 = vld [vmem:[#allocation11 + $0x5d4] sm:$0xf] }
 0x1b9   :  { %2619 = vmatpush.bf16.msra.mxu2 %v7051_v27  ;;  %2595 = vmatpush.bf16.msra.mxu0 %v7431_v37  ;;  %v9775_v23 = vld [vmem:[#allocation11 + $0x2c] sm:$0xf0]  ;;  %v9827_v27 = vld [vmem:[#allocation11 + $0x1d4] sm:$0xf] }
 0x1ba   :  { %2611 = vmatmul.bf16.vlgmr.msra.gmra.mxu1 %v10900_v24  ;;  %v7530_v25 = vld [vmem:[#allocation11 + $0x510] sm:$0xf]  ;;  %v6891_v31 = vor.u32 %v9775_v23, %v6890_v22  ;;  %v7119_v37 = vor.u32 %v9827_v27, %v7116_v28  ;;  %v7628_v17 = vld [vmem:[#allocation11 + $0x5f0] sm:$0xf0]  ;;  %v7215_v22 = vor.u32 %v9851_v10, %v7212_v11  ;;  %v7314_v10 = vld [vmem:[#allocation11 + $0x358] sm:$0xf] }
 0x1bb   :  { %2635 = vmatpush.bf16.msra.mxu3 %v7243_v33  ;;  %2659 = vmatpush.bf16.msrb.mxu1 %v7883_v35  ;;  %v9935_v26 = vld [vmem:[#allocation11 + $0x52c] sm:$0xf0]  ;;  %v9843_v27 = vld [vmem:[#allocation11 + $0x254] sm:$0xf] }
 0x1bc   :  { %v7531_v32 = vor.u32 %v9935_v26, %v7530_v25  ;;  %v7722_v33 = vld [vmem:[#allocation11 + $0x690] sm:$0xf]  ;;  %v7180_v28 = vld [vmem:[#allocation11 + $0x270] sm:$0xf0] }
 0x1bd   :  { %2620 = vmatpush.bf16.msra.mxu2 %v7019_v41  ;;  %2596 = vmatpush.bf16.msra.mxu0 %v7399_v52  ;;  %v9983_v35 = vld [vmem:[#allocation11 + $0x6ac] sm:$0xf0]  ;;  %v9819_v41 = vld [vmem:[#allocation11 + $0x194] sm:$0xf] }
 0x1be   :  { %v7498_v39 = vld [vmem:[#allocation11 + $0x4d0] sm:$0xf]  ;;  %v7723_v43 = vor.u32 %v9983_v35, %v7722_v33  ;;  %v7276_v52 = vld [vmem:[#allocation11 + $0x330] sm:$0xf0] }
 0x1bf   :  { %2636 = vmatpush.bf16.msra.mxu3 %v7211_v49  ;;  %2660 = vmatpush.bf16.msrb.mxu1 %v7851_v50  ;;  %v9927_v40 = vld [vmem:[#allocation11 + $0x4ec] sm:$0xf0]  ;;  %v9867_v49 = vld [vmem:[#allocation11 + $0x314] sm:$0xf]  ;;  %v7087_v50 = vor.u32 %v9819_v41, %v7084_v42 }
 0x1c0   :  { %2597 = vmatmul.bf16.vlgmr.msra.gmra.mxu0 %v10904_v46  ;;  %v7499_v45 = vor.u32 %v9927_v40, %v7498_v39  ;;  %v9975_v48 = vld [vmem:[#allocation11 + $0x66c] sm:$0xf0]  ;;  %v7279_v60 = vor.u32 %v9867_v49, %v7276_v52  ;;  %v6956_v33 = vld [vmem:[#allocation11 + $0xb0] sm:$0xf0] }
 0x1c1   :  { %2621 = vmatpush.bf16.msra.mxu2 %v6987_v56  ;;  %2645 = vmatpush.bf16.msrb.mxu0 %v7627_v57  ;;  %v7466_v53 = vld [vmem:[#allocation11 + $0x490] sm:$0xf]  ;;  %v9811_v56 = vld [vmem:[#allocation11 + $0x154] sm:$0xf]  ;;  %v7691_v58 = vor.u32 %v9975_v48, %v7690_v47  ;;  %v9896_v47 = vld [vmem:[#allocation11 + $0x3f4] sm:$0xf0] }
 0x1c2   :  { %v9919_v54 = vld [vmem:[#allocation11 + $0x4ac] sm:$0xf0]  ;;  %v7052_v57 = vld [vmem:[#allocation11 + $0x170] sm:$0xf0] }
 0x1c3   :  { %2637 = vmatpush.bf16.msra.mxu3 %v7179_v63  ;;  %2661 = vmatpush.bf16.msrb.mxu1 %v7819_v1  ;;  %v7658_v59 = vld [vmem:[#allocation11 + $0x610] sm:$0xf]  ;;  %v7467_v61 = vor.u32 %v9919_v54, %v7466_v53  ;;  %v7244_v63 = vld [vmem:[#allocation11 + $0x2f0] sm:$0xf0]  ;;  %v7055_v0 = vor.u32 %v9811_v56, %v7052_v57 }
 0x1c4   :  { %v9967_v62 = vld [vmem:[#allocation11 + $0x62c] sm:$0xf0]  ;;  %v10019_v1 = vld [vmem:[#allocation11 + $0x7d4] sm:$0xf]  ;;  %v7247_v8 = vor.u32 %v9859_v55, %v7244_v63 }
 0x1c5   :  { %2622 = vmatpush.bf16.msra.mxu2 %v6955_v5  ;;  %2646 = vmatpush.bf16.msrb.mxu0 %v7595_v6  ;;  %v7434_v3 = vld [vmem:[#allocation11 + $0x450] sm:$0xf]  ;;  %v9803_v5 = vld [vmem:[#allocation11 + $0x114] sm:$0xf]  ;;  %v7659_v7 = vor.u32 %v9967_v62, %v7658_v59  ;;  %v7887_v9 = vor.u32 %v10019_v1, %v7884_v2  ;;  %v9888_v62 = vld [vmem:[#allocation11 + $0x3b4] sm:$0xf0] }
 0x1c6   :  { %v9911_v4 = vld [vmem:[#allocation11 + $0x46c] sm:$0xf0]  ;;  %v7020_v6 = vld [vmem:[#allocation11 + $0x130] sm:$0xf0]  ;;  %v7122_v2 = vld [vmem:[#allocation11 + $0x1d8] sm:$0xf] }
 0x1c7   :  { %2638 = vmatpush.bf16.msra.mxu3 %v7147_v14  ;;  %2662 = vmatpush.bf16.msrb.mxu1 %v7787_v15  ;;  %v7435_v13 = vor.u32 %v9911_v4, %v7434_v3  ;;  %v7023_v14 = vor.u32 %v9803_v5, %v7020_v6  ;;  %v10011_v15 = vld [vmem:[#allocation11 + $0x794] sm:$0xf]  ;;  %v7402_v12 = vld [vmem:[#allocation11 + $0x410] sm:$0xf]  ;;  %v9832_v3 = vld [vmem:[#allocation11 + $0x1f4] sm:$0xf0] }
 0x1c8   :  { %v9903_v18 = vld [vmem:[#allocation11 + $0x42c] sm:$0xf0]  ;;  %v9947_v35 = vld [vmem:[#allocation11 + $0x594] sm:$0xf]  ;;  %v7123_v11 = vor.u32 %v9832_v3, %v7122_v2  ;;  %v7186_v2 = vld [vmem:[#allocation11 + $0x258] sm:$0xf] }
 0x1c9   :  { %2623 = vmatpush.bf16.msra.mxu2 %v6923_v19  ;;  %2647 = vmatpush.bf16.msrb.mxu0 %v7563_v20  ;;  %v9795_v19 = vld [vmem:[#allocation11 + $0xd4] sm:$0xf]  ;;  %v7403_v25 = vor.u32 %v9903_v18, %v7402_v12  ;;  %v9824_v12 = vld [vmem:[#allocation11 + $0x1b4] sm:$0xf0] }
 0x1ca   :  { %2639 = vmatmul.bf16.vlgmr.msra.gmra.mxu3 %v10893_v34  ;;  %v6988_v20 = vld [vmem:[#allocation11 + $0xf0] sm:$0xf0]  ;;  %v9848_v3 = vld [vmem:[#allocation11 + $0x274] sm:$0xf0] }
 0x1cb   :  { %2687 = vmatpush.bf16.msrb.mxu3 %v7375_v16  ;;  %2663 = vmatpush.bf16.msrb.mxu1 %v7755_v29  ;;  %v7852_v16 = vld [vmem:[#allocation11 + $0x7b0] sm:$0xf0]  ;;  %v6991_v26 = vor.u32 %v9795_v19, %v6988_v20 }
 0x1cc   :  { %v7855_v23 = vor.u32 %v10011_v15, %v7852_v16  ;;  %v10003_v29 = vld [vmem:[#allocation11 + $0x754] sm:$0xf]  ;;  %v7090_v16 = vld [vmem:[#allocation11 + $0x198] sm:$0xf] }
 0x1cd   :  { %2624 = vmatpush.bf16.msra.mxu2 %v6891_v31  ;;  %2648 = vmatpush.bf16.msrb.mxu0 %v7531_v32  ;;  %v7820_v31 = vld [vmem:[#allocation11 + $0x770] sm:$0xf0] }
 0x1ce   :  { %v9787_v32 = vld [vmem:[#allocation11 + $0x94] sm:$0xf]  ;;  %v7823_v39 = vor.u32 %v10003_v29, %v7820_v31  ;;  %v9816_v29 = vld [vmem:[#allocation11 + $0x174] sm:$0xf0] }
 0x1cf   :  { %2688 = vmatpush.bf16.msrb.mxu3 %v7343_v30  ;;  %2664 = vmatpush.bf16.msrb.mxu1 %v7723_v43  ;;  %v7631_v30 = vor.u32 %v9955_v21, %v7628_v17  ;;  %v6959_v40 = vor.u32 %v9787_v32, %v6956_v33  ;;  %v7148_v41 = vld [vmem:[#allocation11 + $0x230] sm:$0xf0] }
 0x1d0   :  { %2625 = vmatmul.bf16.vlgmr.msra.gmra.mxu2 %v10897_v51  ;;  %v9995_v42 = vld [vmem:[#allocation11 + $0x714] sm:$0xf]  ;;  %v7151_v53 = vor.u32 %v9835_v38, %v7148_v41 }
 0x1d1   :  { %2673 = vmatpush.bf16.msrb.mxu2 %v7119_v37  ;;  %2649 = vmatpush.bf16.msrb.mxu0 %v7499_v45  ;;  %v7183_v37 = vor.u32 %v9843_v27, %v7180_v28  ;;  %v7788_v43 = vld [vmem:[#allocation11 + $0x730] sm:$0xf0]  ;;  %v7378_v45 = vld [vmem:[#allocation11 + $0x3d8] sm:$0xf] }
 0x1d2   :  { %v9779_v48 = vld [vmem:[#allocation11 + $0x54] sm:$0xf]  ;;  %v7791_v54 = vor.u32 %v9995_v42, %v7788_v43  ;;  %v7379_v56 = vor.u32 %v9896_v47, %v7378_v45  ;;  %v7058_v28 = vld [vmem:[#allocation11 + $0x158] sm:$0xf] }
 0x1d3   :  { %2689 = vmatpush.bf16.msrb.mxu3 %v7311_v44  ;;  %2665 = vmatpush.bf16.msrb.mxu1 %v7691_v58  ;;  %v7599_v44 = vor.u32 %v9947_v35, %v7596_v36  ;;  %v6924_v49 = vld [vmem:[#allocation11 + $0x70] sm:$0xf0]  ;;  %v7250_v36 = vld [vmem:[#allocation11 + $0x2d8] sm:$0xf]  ;;  %v7059_v38 = vor.u32 %v9816_v29, %v7058_v28 }
 0x1d4   :  { %v7564_v52 = vld [vmem:[#allocation11 + $0x570] sm:$0xf0]  ;;  %v6927_v59 = vor.u32 %v9779_v48, %v6924_v49  ;;  %v7026_v43 = vld [vmem:[#allocation11 + $0x118] sm:$0xf] }
 0x1d5   :  { %2674 = vmatpush.bf16.msrb.mxu2 %v7087_v50  ;;  %2650 = vmatpush.bf16.msrb.mxu0 %v7467_v61  ;;  %v9939_v50 = vld [vmem:[#allocation11 + $0x554] sm:$0xf]  ;;  %v7346_v61 = vld [vmem:[#allocation11 + $0x398] sm:$0xf] }
 0x1d6   :  { %v9987_v57 = vld [vmem:[#allocation11 + $0x6d4] sm:$0xf]  ;;  %v7347_v5 = vor.u32 %v9888_v62, %v7346_v61  ;;  %v7218_v49 = vld [vmem:[#allocation11 + $0x298] sm:$0xf] }
 0x1d7   :  { %2690 = vmatpush.bf16.msrb.mxu3 %v7279_v60  ;;  %2666 = vmatpush.bf16.msrb.mxu1 %v7659_v7  ;;  %v7756_v58 = vld [vmem:[#allocation11 + $0x6f0] sm:$0xf0]  ;;  %v7567_v60 = vor.u32 %v9939_v50, %v7564_v52  ;;  %v9856_v50 = vld [vmem:[#allocation11 + $0x2b4] sm:$0xf0] }
 0x1d8   :  { %v9771_v55 = vld [vmem:[#allocation11 + $0x14] sm:$0xf]  ;;  %v7759_v4 = vor.u32 %v9987_v57, %v7756_v58  ;;  %v7634_v61 = vld [vmem:[#allocation11 + $0x5d8] sm:$0xf] }
 0x1d9   :  { %2675 = vmatpush.bf16.msrb.mxu2 %v7055_v0  ;;  %2651 = vmatpush.bf16.msrb.mxu0 %v7435_v13  ;;  %v6892_v63 = vld [vmem:[#allocation11 + $0x30] sm:$0xf0]  ;;  %v9880_v13 = vld [vmem:[#allocation11 + $0x374] sm:$0xf0] }
 0x1da   :  { %2667 = vmatmul.bf16.vlgmr.msrb.gmra.mxu1 %v10900_v24  ;;  %v9931_v0 = vld [vmem:[#allocation11 + $0x514] sm:$0xf]  ;;  %v6895_v6 = vor.u32 %v9771_v55, %v6892_v63  ;;  %v7315_v19 = vor.u32 %v9880_v13, %v7314_v10  ;;  %v9960_v62 = vld [vmem:[#allocation11 + $0x5f4] sm:$0xf0]  ;;  %v7219_v55 = vor.u32 %v9856_v50, %v7218_v49 }
 0x1db   :  { %2691 = vmatpush.bf16.msrb.mxu3 %v7247_v8  ;;  %2715 = vmatpush.bf16.msra.mxu1 %v7887_v9  ;;  %v7532_v1 = vld [vmem:[#allocation11 + $0x530] sm:$0xf0]  ;;  %v9952_v10 = vld [vmem:[#allocation11 + $0x5b4] sm:$0xf0] }
 0x1dc   :  { %v7535_v7 = vor.u32 %v9931_v0, %v7532_v1  ;;  %v9979_v8 = vld [vmem:[#allocation11 + $0x694] sm:$0xf]  ;;  %v7154_v13 = vld [vmem:[#allocation11 + $0x218] sm:$0xf] }
 0x1dd   :  { %2676 = vmatpush.bf16.msrb.mxu2 %v7023_v14  ;;  %2652 = vmatpush.bf16.msrb.mxu0 %v7403_v25  ;;  %v7724_v9 = vld [vmem:[#allocation11 + $0x6b0] sm:$0xf0]  ;;  %v9872_v25 = vld [vmem:[#allocation11 + $0x334] sm:$0xf0] }
 0x1de   :  { %v9923_v14 = vld [vmem:[#allocation11 + $0x4d4] sm:$0xf]  ;;  %v7727_v18 = vor.u32 %v9979_v8, %v7724_v9  ;;  %v9792_v8 = vld [vmem:[#allocation11 + $0xb4] sm:$0xf0] }
 0x1df   :  { %2692 = vmatpush.bf16.msrb.mxu3 %v7215_v22  ;;  %2716 = vmatpush.bf16.msra.mxu1 %v7855_v23  ;;  %v7500_v15 = vld [vmem:[#allocation11 + $0x4f0] sm:$0xf0]  ;;  %v7282_v22 = vld [vmem:[#allocation11 + $0x318] sm:$0xf]  ;;  %v7091_v23 = vor.u32 %v9824_v12, %v7090_v16 }
 0x1e0   :  { %2653 = vmatmul.bf16.vlgmr.msrb.gmra.mxu0 %v10904_v46  ;;  %v7503_v20 = vor.u32 %v9923_v14, %v7500_v15  ;;  %v9971_v21 = vld [vmem:[#allocation11 + $0x654] sm:$0xf]  ;;  %v7283_v32 = vor.u32 %v9872_v25, %v7282_v22  ;;  %v7602_v9 = vld [vmem:[#allocation11 + $0x598] sm:$0xf] }
 0x1e1   :  { %2677 = vmatpush.bf16.msrb.mxu2 %v6991_v26  ;;  %2701 = vmatpush.bf16.msra.mxu0 %v7631_v30  ;;  %v7692_v17 = vld [vmem:[#allocation11 + $0x670] sm:$0xf0]  ;;  %v9840_v12 = vld [vmem:[#allocation11 + $0x234] sm:$0xf0] }
 0x1e2   :  { %v9915_v26 = vld [vmem:[#allocation11 + $0x494] sm:$0xf]  ;;  %v7695_v30 = vor.u32 %v9971_v21, %v7692_v17  ;;  %v9892_v21 = vld [vmem:[#allocation11 + $0x3dc] sm:$0xf]  ;;  %v6930_v22 = vld [vmem:[#allocation11 + $0x58] sm:$0xf] }
 0x1e3   :  { %2693 = vmatpush.bf16.msrb.mxu3 %v7183_v37  ;;  %2717 = vmatpush.bf16.msra.mxu1 %v7823_v39  ;;  %v7468_v27 = vld [vmem:[#allocation11 + $0x4b0] sm:$0xf0]  ;;  %v9864_v37 = vld [vmem:[#allocation11 + $0x2f4] sm:$0xf0]  ;;  %v7380_v17 = vld [vmem:[#allocation11 + $0x3f8] sm:$0xf0] }
 0x1e4   :  { %v9963_v31 = vld [vmem:[#allocation11 + $0x614] sm:$0xf]  ;;  %v7471_v33 = vor.u32 %v9915_v26, %v7468_v27  ;;  %v7890_v39 = vld [vmem:[#allocation11 + $0x7d8] sm:$0xf]  ;;  %v7251_v47 = vor.u32 %v9864_v37, %v7250_v36  ;;  %v7155_v27 = vor.u32 %v9840_v12, %v7154_v13  ;;  %v7383_v29 = vor.u32 %v9892_v21, %v7380_v17  ;;  %v7348_v36 = vld [vmem:[#allocation11 + $0x3b8] sm:$0xf0] }
 0x1e5   :  { %2678 = vmatpush.bf16.msrb.mxu2 %v6959_v40  ;;  %2702 = vmatpush.bf16.msra.mxu0 %v7599_v44  ;;  %v7660_v35 = vld [vmem:[#allocation11 + $0x630] sm:$0xf0]  ;;  %v10024_v40 = vld [vmem:[#allocation11 + $0x7f4] sm:$0xf0]  ;;  %v10020_v21 = vld [vmem:[#allocation11 + $0x7dc] sm:$0xf] }
 0x1e6   :  { %v9907_v41 = vld [vmem:[#allocation11 + $0x454] sm:$0xf]  ;;  %v9808_v44 = vld [vmem:[#allocation11 + $0x134] sm:$0xf0]  ;;  %v7663_v45 = vor.u32 %v9963_v31, %v7660_v35  ;;  %v7891_v48 = vor.u32 %v10024_v40, %v7890_v39  ;;  %v9884_v35 = vld [vmem:[#allocation11 + $0x39c] sm:$0xf] }
 0x1e7   :  { %2694 = vmatpush.bf16.msrb.mxu3 %v7151_v53  ;;  %2718 = vmatpush.bf16.msra.mxu1 %v7791_v54  ;;  %v7436_v42 = vld [vmem:[#allocation11 + $0x470] sm:$0xf0]  ;;  %v7027_v53 = vor.u32 %v9808_v44, %v7026_v43  ;;  %v7858_v54 = vld [vmem:[#allocation11 + $0x798] sm:$0xf]  ;;  %v7124_v43 = vld [vmem:[#allocation11 + $0x1f8] sm:$0xf0] }
 0x1e8   :  { %v7439_v52 = vor.u32 %v9907_v41, %v7436_v42  ;;  %v9899_v57 = vld [vmem:[#allocation11 + $0x414] sm:$0xf]  ;;  %v7570_v25 = vld [vmem:[#allocation11 + $0x558] sm:$0xf]  ;;  %v9828_v42 = vld [vmem:[#allocation11 + $0x1dc] sm:$0xf] }
 0x1e9   :  { %2679 = vmatpush.bf16.msrb.mxu2 %v6927_v59  ;;  %2703 = vmatpush.bf16.msra.mxu0 %v7567_v60  ;;  %v7404_v58 = vld [vmem:[#allocation11 + $0x430] sm:$0xf0]  ;;  %v6994_v59 = vld [vmem:[#allocation11 + $0xd8] sm:$0xf]  ;;  %v7892_v17 = vld [vmem:[#allocation11 + $0x7f8] sm:$0xf0] }
 0x1ea   :  { %2695 = vmatmul.bf16.vlgmr.msrb.gmra.mxu3 %v10893_v34  ;;  %v9800_v60 = vld [vmem:[#allocation11 + $0xf4] sm:$0xf0]  ;;  %v7407_v0 = vor.u32 %v9899_v57, %v7404_v58  ;;  %v7127_v57 = vor.u32 %v9828_v42, %v7124_v43  ;;  %v7316_v58 = vld [vmem:[#allocation11 + $0x378] sm:$0xf0] }
 0x1eb   :  { %2743 = vmatpush.bf16.msra.mxu3 %v7379_v56  ;;  %2719 = vmatpush.bf16.msra.mxu1 %v7759_v4  ;;  %v10016_v56 = vld [vmem:[#allocation11 + $0x7b4] sm:$0xf0]  ;;  %v6995_v1 = vor.u32 %v9800_v60, %v6994_v59  ;;  %v9796_v43 = vld [vmem:[#allocation11 + $0xdc] sm:$0xf] }
 0x1ec   :  { %v7859_v63 = vor.u32 %v10016_v56, %v7858_v54  ;;  %v7826_v4 = vld [vmem:[#allocation11 + $0x758] sm:$0xf] }
 0x1ed   :  { %2680 = vmatpush.bf16.msrb.mxu2 %v6895_v6  ;;  %2704 = vmatpush.bf16.msra.mxu0 %v7535_v7  ;;  %v10008_v6 = vld [vmem:[#allocation11 + $0x774] sm:$0xf0] }
 0x1ee   :  { %v6962_v7 = vld [vmem:[#allocation11 + $0x98] sm:$0xf]  ;;  %v7827_v15 = vor.u32 %v10008_v6, %v7826_v4 }
 0x1ef   :  { %2744 = vmatpush.bf16.msra.mxu3 %v7347_v5  ;;  %2720 = vmatpush.bf16.msra.mxu1 %v7727_v18  ;;  %v7635_v5 = vor.u32 %v9960_v62, %v7634_v61  ;;  %v6963_v16 = vor.u32 %v9792_v8, %v6962_v7  ;;  %v7794_v18 = vld [vmem:[#allocation11 + $0x718] sm:$0xf]  ;;  %v9820_v61 = vld [vmem:[#allocation11 + $0x19c] sm:$0xf] }
 0x1f0   :  { %2681 = vmatmul.bf16.vlgmr.msrb.gmra.mxu2 %v10897_v51  ;;  %v9944_v26 = vld [vmem:[#allocation11 + $0x574] sm:$0xf0]  ;;  %v7092_v62 = vld [vmem:[#allocation11 + $0x1b8] sm:$0xf0] }
 0x1f1   :  { %2729 = vmatpush.bf16.msra.mxu2 %v7123_v11  ;;  %2705 = vmatpush.bf16.msra.mxu0 %v7503_v20  ;;  %v7187_v11 = vor.u32 %v9848_v3, %v7186_v2  ;;  %v7603_v20 = vor.u32 %v9952_v10, %v7602_v9  ;;  %v9992_v31 = vld [vmem:[#allocation11 + $0x6f4] sm:$0xf0]  ;;  %v9868_v3 = vld [vmem:[#allocation11 + $0x31c] sm:$0xf]  ;;  %v7095_v4 = vor.u32 %v9820_v61, %v7092_v62 }
 0x1f2   :  { %v6898_v37 = vld [vmem:[#allocation11 + $0x18] sm:$0xf]  ;;  %v9812_v8 = vld [vmem:[#allocation11 + $0x15c] sm:$0xf] }
 0x1f3   :  { %2745 = vmatpush.bf16.msra.mxu3 %v7315_v19  ;;  %2721 = vmatpush.bf16.msra.mxu1 %v7695_v30  ;;  %v10925_v14 = vpop.f32.mrf.mxu2  ;;  %v10000_v19 = vld [vmem:[#allocation11 + $0x734] sm:$0xf0]  ;;  %v7060_v9 = vld [vmem:[#allocation11 + $0x178] sm:$0xf0] }
 0x1f4   :  { %v7795_v28 = vor.u32 %v10000_v19, %v7794_v18  ;;  %v7762_v30 = vld [vmem:[#allocation11 + $0x6d8] sm:$0xf]  ;;  %v9860_v18 = vld [vmem:[#allocation11 + $0x2dc] sm:$0xf] }
 0x1f5   :  { %2730 = vmatpush.bf16.msra.mxu2 %v7091_v23  ;;  %2706 = vmatpush.bf16.msra.mxu0 %v7471_v33  ;;  %v9784_v23 = vld [vmem:[#allocation11 + $0x74] sm:$0xf0]  ;;  %v7571_v33 = vor.u32 %v9944_v26, %v7570_v25  ;;  %v7763_v44 = vor.u32 %v9992_v31, %v7762_v30  ;;  %v7252_v19 = vld [vmem:[#allocation11 + $0x2f8] sm:$0xf0] }
 0x1f6   :  { %v9776_v39 = vld [vmem:[#allocation11 + $0x34] sm:$0xf0]  ;;  %v9804_v26 = vld [vmem:[#allocation11 + $0x11c] sm:$0xf]  ;;  %v7255_v31 = vor.u32 %v9860_v18, %v7252_v19 }
 0x1f7   :  { %2746 = vmatpush.bf16.msra.mxu3 %v7283_v32  ;;  %2722 = vmatpush.bf16.msra.mxu1 %v7663_v45  ;;  %v6931_v32 = vor.u32 %v9784_v23, %v6930_v22  ;;  %v7538_v40 = vld [vmem:[#allocation11 + $0x518] sm:$0xf]  ;;  %v7351_v45 = vor.u32 %v9884_v35, %v7348_v36  ;;  %v7220_v35 = vld [vmem:[#allocation11 + $0x2b8] sm:$0xf0] }
 0x1f8   :  { %v9936_v41 = vld [vmem:[#allocation11 + $0x534] sm:$0xf0]  ;;  %v7828_v62 = vld [vmem:[#allocation11 + $0x778] sm:$0xf0] }
 0x1f9   :  { %2731 = vmatpush.bf16.msra.mxu2 %v7059_v38  ;;  %2707 = vmatpush.bf16.msra.mxu0 %v7439_v52  ;;  %v10928_v38 = vpop.f32.mrf.mxu3  ;;  %v7539_v49 = vor.u32 %v9936_v41, %v7538_v40  ;;  %v7730_v50 = vld [vmem:[#allocation11 + $0x698] sm:$0xf]  ;;  %v7860_v40 = vld [vmem:[#allocation11 + $0x7b8] sm:$0xf0] }
 0x1fa   :  { %2723 = vmatmul.bf16.vlgmr.msra.gmra.mxu1 %v10900_v24  ;;  %v9984_v52 = vld [vmem:[#allocation11 + $0x6b4] sm:$0xf0]  ;;  %v9780_v18 = vld [vmem:[#allocation11 + $0x5c] sm:$0xf] }
 0x1fb   :  { %2747 = vmatpush.bf16.msra.mxu3 %v7251_v47  ;;  %2771 = vmatpush.bf16.msrb.mxu1 %v7891_v48  ;;  %v10930_v47 = vpop.f32.mrf.mxu1  ;;  %v6899_v48 = vor.u32 %v9776_v39, %v6898_v37  ;;  %v10932_v54 = vpop.f32.mrf.mxu2  ;;  %v7506_v59 = vld [vmem:[#allocation11 + $0x4d8] sm:$0xf]  ;;  %v10012_v39 = vld [vmem:[#allocation11 + $0x79c] sm:$0xf] }
 0x1fc   :  { %v9928_v60 = vld [vmem:[#allocation11 + $0x4f4] sm:$0xf0]  ;;  %v6932_v19 = vld [vmem:[#allocation11 + $0x78] sm:$0xf0] }
 0x1fd   :  { %2732 = vmatpush.bf16.msra.mxu2 %v7027_v53  ;;  %2708 = vmatpush.bf16.msra.mxu0 %v7407_v0  ;;  %v9876_v53 = vld [vmem:[#allocation11 + $0x35c] sm:$0xf]  ;;  %v10934_v56 = vpop.f32.mrf.mxu0  ;;  %v7507_v0 = vor.u32 %v9928_v60, %v7506_v59  ;;  %v9976_v2 = vld [vmem:[#allocation11 + $0x674] sm:$0xf0] }
 0x1fe   :  { %v7474_v6 = vld [vmem:[#allocation11 + $0x498] sm:$0xf]  ;;  %v7188_v59 = vld [vmem:[#allocation11 + $0x278] sm:$0xf0] }
 0x1ff   :  { %2748 = vmatpush.bf16.msra.mxu3 %v7219_v55  ;;  %2772 = vmatpush.bf16.msrb.mxu1 %v7859_v63  ;;  %v7731_v55 = vor.u32 %v9984_v52, %v7730_v50  ;;  %v7319_v63 = vor.u32 %v9876_v53, %v7316_v58  ;;  %v9920_v7 = vld [vmem:[#allocation11 + $0x4b4] sm:$0xf0]  ;;  %v7863_v50 = vor.u32 %v10012_v39, %v7860_v40  ;;  %v9844_v58 = vld [vmem:[#allocation11 + $0x25c] sm:$0xf] }
 0x200   :  { %2709 = vmatmul.bf16.vlgmr.msra.gmra.mxu0 %v10904_v46  ;;  %v7666_v13 = vld [vmem:[#allocation11 + $0x618] sm:$0xf]  ;;  %v10004_v60 = vld [vmem:[#allocation11 + $0x75c] sm:$0xf] }
 0x201   :  { %2733 = vmatpush.bf16.msra.mxu2 %v6995_v1  ;;  %2757 = vmatpush.bf16.msrb.mxu0 %v7635_v5  ;;  %v7698_v1 = vld [vmem:[#allocation11 + $0x658] sm:$0xf]  ;;  %v7284_v5 = vld [vmem:[#allocation11 + $0x338] sm:$0xf0]  ;;  %v10937_v10 = vpop.f32.mrf.mxu3 }
 0x202   :  { %v9968_v12 = vld [vmem:[#allocation11 + $0x634] sm:$0xf0]  ;;  %v9932_v39 = vld [vmem:[#allocation11 + $0x51c] sm:$0xf] }
 0x203   :  { %2749 = vmatpush.bf16.msra.mxu3 %v7187_v11  ;;  %2773 = vmatpush.bf16.msrb.mxu1 %v7827_v15  ;;  %v7699_v11 = vor.u32 %v9976_v2, %v7698_v1  ;;  %v7287_v15 = vor.u32 %v9868_v3, %v7284_v5  ;;  %v7442_v22 = vld [vmem:[#allocation11 + $0x458] sm:$0xf]  ;;  %v10940_v23 = vpop.f32.mrf.mxu1  ;;  %v7667_v30 = vor.u32 %v9968_v12, %v7666_v13  ;;  %v7604_v1 = vld [vmem:[#allocation11 + $0x5b8] sm:$0xf0]  ;;  %v10133_v12 = vld [vmem:[#allocation14 + $0x360] sm:$0xf0] }
 0x204   :  { %v9912_v25 = vld [vmem:[#allocation11 + $0x474] sm:$0xf0]  ;;  %v7191_v3 = vor.u32 %v9844_v58, %v7188_v59  ;;  %v7796_v13 = vld [vmem:[#allocation11 + $0x738] sm:$0xf0]  ;;  %v8262_v59 = vld [vmem:[#allocation14 + $0x2d8] sm:$0xf] }
 0x205   :  { %2734 = vmatpush.bf16.msra.mxu2 %v6963_v16  ;;  %2758 = vmatpush.bf16.msrb.mxu0 %v7603_v20  ;;  %v7475_v16 = vor.u32 %v9920_v7, %v7474_v6  ;;  %v7063_v20 = vor.u32 %v9812_v8, %v7060_v9  ;;  %v7443_v36 = vor.u32 %v9912_v25, %v7442_v22  ;;  %v7410_v41 = vld [vmem:[#allocation11 + $0x418] sm:$0xf]  ;;  %v7156_v9 = vld [vmem:[#allocation11 + $0x238] sm:$0xf0] }
 0x206   :  { %v9904_v42 = vld [vmem:[#allocation11 + $0x434] sm:$0xf0]  ;;  %v7831_v7 = vor.u32 %v10004_v60, %v7828_v62  ;;  %v7540_v40 = vld [vmem:[#allocation11 + $0x538] sm:$0xf0] }
 0x207   :  { %2750 = vmatpush.bf16.msra.mxu3 %v7155_v27  ;;  %2774 = vmatpush.bf16.msrb.mxu1 %v7795_v28  ;;  %v7028_v27 = vld [vmem:[#allocation11 + $0x138] sm:$0xf0]  ;;  %v10942_v28 = vpop.f32.mrf.mxu2  ;;  %v7411_v53 = vor.u32 %v9904_v42, %v7410_v41  ;;  %v10958_v41 = vld [vmem:[#allocation13] sm:$0xff]  ;;  %v8094_v42 = vld [vmem:[#allocation14 + $0x188] sm:$0xf] }
 0x208   :  { %v7031_v37 = vor.u32 %v9804_v26, %v7028_v27  ;;  %v9988_v26 = vld [vmem:[#allocation11 + $0x6dc] sm:$0xf] }
 0x209   :  { %2735 = vmatpush.bf16.msra.mxu2 %v6931_v32  ;;  %2759 = vmatpush.bf16.msrb.mxu0 %v7571_v33  ;;  %v7895_v32 = vor.u32 %v10020_v21, %v7892_v17  ;;  %v9852_v33 = vld [vmem:[#allocation11 + $0x29c] sm:$0xf]  ;;  %v10946_v52 = vpop.f32.mrf.mxu3 }
 0x20a   :  { %2751 = vmatmul.bf16.vlgmr.msra.gmra.mxu3 %v10893_v34  ;;  %v7572_v21 = vld [vmem:[#allocation11 + $0x578] sm:$0xf0] }
 0x20b   :  { %2799 = vmatpush.bf16.msrb.mxu3 %v7383_v29  ;;  %2775 = vmatpush.bf16.msrb.mxu1 %v7763_v44  ;;  %v10944_v29 = vpop.f32.mrf.mxu0  ;;  %v6996_v44 = vld [vmem:[#allocation11 + $0xf8] sm:$0xf0]  ;;  %v10949_v2 = vpop.f32.mrf.mxu1 }
 0x20c   :  { %v7764_v27 = vld [vmem:[#allocation11 + $0x6f8] sm:$0xf0] }
 0x20d   :  { %2736 = vmatpush.bf16.msra.mxu2 %v6899_v48  ;;  %2760 = vmatpush.bf16.msrb.mxu0 %v7539_v49  ;;  %v7636_v48 = vld [vmem:[#allocation11 + $0x5f8] sm:$0xf0]  ;;  %v7223_v49 = vor.u32 %v9852_v33, %v7220_v35  ;;  %v10126_v33 = vld [vmem:[#allocation14 + $0x328] sm:$0xf0] }
 0x20e   :  { %v9772_v35 = vld [vmem:[#allocation11 + $0x1c] sm:$0xf] }
 0x20f   :  { %2800 = vmatpush.bf16.msrb.mxu3 %v7351_v45  ;;  %2776 = vmatpush.bf16.msrb.mxu1 %v7731_v55  ;;  %v9956_v45 = vld [vmem:[#allocation11 + $0x5dc] sm:$0xf]  ;;  %v10951_v5 = vpop.f32.mrf.mxu2 }
 0x210   :  { %2737 = vmatmul.bf16.vlgmr.msra.gmra.mxu2 %v10897_v51  ;;  %v7639_v61 = vor.u32 %v9956_v45, %v7636_v48  ;;  %v9788_v55 = vld [vmem:[#allocation11 + $0x9c] sm:$0xf]  ;;  %v7767_v45 = vor.u32 %v9988_v26, %v7764_v27 }
 0x211   :  { %2785 = vmatpush.bf16.msrb.mxu2 %v7127_v57  ;;  %2761 = vmatpush.bf16.msrb.mxu0 %v7507_v0  ;;  %v6999_v57 = vor.u32 %v9796_v43, %v6996_v44  ;;  %v9948_v0 = vld [vmem:[#allocation11 + $0x59c] sm:$0xf]  ;;  %v10077_v43 = vld [vmem:[#allocation14 + $0x1a0] sm:$0xf0]  ;;  %v1098_v44 = vperm.slane %v10958_v41, 1 }
 0x212   :  { %v7732_v58 = vld [vmem:[#allocation11 + $0x6b8] sm:$0xf0]  ;;  %v8095_v62 = vor.u32 %v10077_v43, %v8094_v42  ;;  %v10056_v43 = vld [vmem:[#allocation14 + $0xf8] sm:$0xf0] }
 0x213   :  { %2801 = vmatpush.bf16.msrb.mxu3 %v7319_v63  ;;  %2777 = vmatpush.bf16.msrb.mxu1 %v7699_v11  ;;  %v6964_v63 = vld [vmem:[#allocation11 + $0xb8] sm:$0xf0]  ;;  %v10953_v6 = vpop.f32.mrf.mxu0 }
 0x214   :  { %v6967_v8 = vor.u32 %v9788_v55, %v6964_v63  ;;  %v9996_v11 = vld [vmem:[#allocation11 + $0x71c] sm:$0xf] }
 0x215   :  { %2786 = vmatpush.bf16.msrb.mxu2 %v7095_v4  ;;  %2762 = vmatpush.bf16.msrb.mxu0 %v7475_v16  ;;  %v9836_v4 = vld [vmem:[#allocation11 + $0x21c] sm:$0xf]  ;;  %v8318_v16 = vld [vmem:[#allocation14 + $0x348] sm:$0xf]  ;;  %v7799_v22 = vor.u32 %v9996_v11, %v7796_v13 }
 0x216   :  { %v7159_v17 = vor.u32 %v9836_v4, %v7156_v9  ;;  %v8319_v25 = vor.u32 %v10133_v12, %v8318_v16  ;;  %v10119_v55 = vld [vmem:[#allocation14 + $0x2f0] sm:$0xf0]  ;;  %v1097_v4 = vperm.slane %v10958_v41, 0  ;;  %v10112_v12 = vld [vmem:[#allocation14 + $0x2b8] sm:$0xf0] }
 0x217   :  { %2802 = vmatpush.bf16.msrb.mxu3 %v7287_v15  ;;  %2778 = vmatpush.bf16.msrb.mxu1 %v7667_v30  ;;  %v7607_v15 = vor.u32 %v9948_v0, %v7604_v1  ;;  %v6935_v30 = vor.u32 %v9780_v18, %v6932_v19  ;;  %v10963_v60 = vpop.f32.mrf.mxu2  ;;  %v9924_v63 = vld [vmem:[#allocation11 + $0x4dc] sm:$0xf]  ;;  %v8066_v1 = vld [vmem:[#allocation14 + $0x150] sm:$0xf] }
 0x218   :  { %v7508_v0 = vld [vmem:[#allocation11 + $0x4f8] sm:$0xf0] }
 0x219   :  { %2787 = vmatpush.bf16.msrb.mxu2 %v7063_v20  ;;  %2763 = vmatpush.bf16.msrb.mxu0 %v7443_v36  ;;  %v9940_v20 = vld [vmem:[#allocation11 + $0x55c] sm:$0xf]  ;;  %v10956_v36 = vpop.f32.mrf.mxu3  ;;  %v7511_v9 = vor.u32 %v9924_v63, %v7508_v0 }
 0x21a   :  { %2779 = vmatmul.bf16.vlgmr.msrb.gmra.mxu1 %v10900_v24  ;;  %v9972_v11 = vld [vmem:[#allocation11 + $0x65c] sm:$0xf] }
 0x21b   :  { %2803 = vmatpush.bf16.msrb.mxu3 %v7255_v31  ;;  %2827 = vmatpush.bf16.msra.mxu1 %v7895_v32  ;;  %v7575_v31 = vor.u32 %v9940_v20, %v7572_v21  ;;  %v8290_v32 = vld [vmem:[#allocation14 + $0x310] sm:$0xf]  ;;  %v7700_v13 = vld [vmem:[#allocation11 + $0x678] sm:$0xf0]  ;;  %v8038_v20 = vld [vmem:[#allocation14 + $0x118] sm:$0xf] }
 0x21c   :  { %v8291_v48 = vor.u32 %v10126_v33, %v8290_v32  ;;  %v9916_v18 = vld [vmem:[#allocation11 + $0x49c] sm:$0xf]  ;;  %v10105_v32 = vld [vmem:[#allocation14 + $0x280] sm:$0xf0]  ;;  %v2403_v33 = vadd.f32 %v10925_v14, %v1097_v4 }
 0x21d   :  { %2788 = vmatpush.bf16.msrb.mxu2 %v7031_v37  ;;  %2764 = vmatpush.bf16.msrb.mxu0 %v7411_v53  ;;  %v6900_v37 = vld [vmem:[#allocation11 + $0x38] sm:$0xf0]  ;;  %v7543_v53 = vor.u32 %v9932_v39, %v7540_v40  ;;  %v8010_v40 = vld [vmem:[#allocation14 + $0xe0] sm:$0xf] }
 0x21e   :  { %v7476_v19 = vld [vmem:[#allocation11 + $0x4b8] sm:$0xf0] }
 0x21f   :  { %2804 = vmatpush.bf16.msrb.mxu3 %v7223_v49  ;;  %2828 = vmatpush.bf16.msra.mxu1 %v7863_v50  ;;  %v10961_v49 = vpop.f32.mrf.mxu1  ;;  %v6903_v50 = vor.u32 %v9772_v35, %v6900_v37  ;;  %v10063_v21 = vld [vmem:[#allocation14 + $0x130] sm:$0xf0] }
 0x220   :  { %2765 = vmatmul.bf16.vlgmr.msrb.gmra.mxu0 %v10904_v46  ;;  %v9964_v26 = vld [vmem:[#allocation11 + $0x61c] sm:$0xf] }
 0x221   :  { %2789 = vmatpush.bf16.msrb.mxu2 %v6999_v57  ;;  %2813 = vmatpush.bf16.msra.mxu0 %v7639_v61  ;;  %v9980_v57 = vld [vmem:[#allocation11 + $0x69c] sm:$0xf]  ;;  %v10965_v61 = vpop.f32.mrf.mxu0 }
 0x222   :  { %v9908_v37 = vld [vmem:[#allocation11 + $0x45c] sm:$0xf] }
 0x223   :  { %2805 = vmatpush.bf16.msrb.mxu3 %v7191_v3  ;;  %2829 = vmatpush.bf16.msra.mxu1 %v7831_v7  ;;  %v10070_v3 = vld [vmem:[#allocation14 + $0x168] sm:$0xf0]  ;;  %v7735_v7 = vor.u32 %v9980_v57, %v7732_v58  ;;  %v7444_v39 = vld [vmem:[#allocation11 + $0x478] sm:$0xf0] }
 0x224   :  { %v8067_v16 = vor.u32 %v10070_v3, %v8066_v1  ;;  %v7447_v58 = vor.u32 %v9908_v37, %v7444_v39  ;;  %v9900_v63 = vld [vmem:[#allocation11 + $0x41c] sm:$0xf]  ;;  %v7982_v1 = vld [vmem:[#allocation14 + $0xa8] sm:$0xf] }
 0x225   :  { %2790 = vmatpush.bf16.msrb.mxu2 %v6967_v8  ;;  %2814 = vmatpush.bf16.msra.mxu0 %v7607_v15  ;;  %v8263_v8 = vor.u32 %v10119_v55, %v8262_v59  ;;  %v8234_v15 = vld [vmem:[#allocation14 + $0x2a0] sm:$0xf]  ;;  %v10098_v59 = vld [vmem:[#allocation14 + $0x248] sm:$0xf0] }
 0x226   :  { %v8235_v27 = vor.u32 %v10112_v12, %v8234_v15 }
 0x227   :  { %2806 = vmatpush.bf16.msrb.mxu3 %v7159_v17  ;;  %2830 = vmatpush.bf16.msra.mxu1 %v7799_v22  ;;  %v2461_v17 = vadd.f32 %v10951_v5, %v1098_v44  ;;  %v10971_v22 = vpop.f32.mrf.mxu3  ;;  %v8039_v5 = vor.u32 %v10063_v21, %v8038_v20  ;;  %v10977_v42 = vpop.f32.mrf.mxu1  ;;  %v8514_v21 = vld [vmem:[#allocation14 + $0x4d0] sm:$0xf] }
 0x229   :  { %2791 = vmatpush.bf16.msrb.mxu2 %v6935_v30  ;;  %2815 = vmatpush.bf16.msra.mxu0 %v7575_v31  ;;  %v7668_v30 = vld [vmem:[#allocation11 + $0x638] sm:$0xf0]  ;;  %v8206_v31 = vld [vmem:[#allocation14 + $0x268] sm:$0xf]  ;;  %v10983_v14 = vpop.f32.mrf.mxu0 }
 0x22a   :  { %2807 = vmatmul.bf16.vlgmr.msrb.gmra.mxu3 %v10893_v34  ;;  %v2459_v34 = vadd.f32 %v10942_v28, %v1098_v44  ;;  %v7479_v28 = vor.u32 %v9916_v18, %v7476_v19  ;;  %v8766_v44 = vld [vmem:[#allocation14 + $0x6c8] sm:$0xf]  ;;  %v8207_v57 = vor.u32 %v10105_v32, %v8206_v31  ;;  %v10091_v18 = vld [vmem:[#allocation14 + $0x210] sm:$0xf0]  ;;  %v7954_v19 = vld [vmem:[#allocation14 + $0x70] sm:$0xf] }
 0x22b   :  { %5727 = vmatpush.bf16.msra.mxu3 %v8319_v25  ;;  %2831 = vmatpush.bf16.msra.mxu1 %v7767_v45  ;;  %v7703_v25 = vor.u32 %v9972_v11, %v7700_v13  ;;  %v10245_v45 = vld [vmem:[#allocation14 + $0x6e0] sm:$0xf0]  ;;  %v10238_v13 = vld [vmem:[#allocation14 + $0x6a8] sm:$0xf0]  ;;  %v1100_v31 = vperm.slane %v10958_v41, 3 }
 0x22c   :  { %v2473_v35 = vadd.f32 %v10946_v52, %v2459_v34  ;;  %v7671_v52 = vor.u32 %v9964_v26, %v7668_v30  ;;  %v8767_v0 = vor.u32 %v10245_v45, %v8766_v44  ;;  %v8486_v44 = vld [vmem:[#allocation14 + $0x498] sm:$0xf]  ;;  %v10175_v45 = vld [vmem:[#allocation14 + $0x4b0] sm:$0xf0] }
 0x22d   :  { %2792 = vmatpush.bf16.msrb.mxu2 %v6903_v50  ;;  %2816 = vmatpush.bf16.msra.mxu0 %v7543_v53  ;;  %v2475_v50 = vadd.f32 %v10956_v36, %v2461_v17  ;;  %v10981_v53 = vpop.f32.mrf.mxu2  ;;  %v7412_v36 = vld [vmem:[#allocation11 + $0x438] sm:$0xf0]  ;;  %v10182_v17 = vld [vmem:[#allocation14 + $0x4e8] sm:$0xf0] }
 0x22e   :  { %v7415_v34 = vor.u32 %v9900_v63, %v7412_v36  ;;  %v8515_v39 = vor.u32 %v10182_v17, %v8514_v21  ;;  %v8487_v63 = vor.u32 %v10175_v45, %v8486_v44  ;;  %v7898_v36 = vld [vmem:[#allocation14] sm:$0xf] }
 0x22f   :  { %5728 = vmatpush.bf16.msra.mxu3 %v8291_v48  ;;  %2832 = vmatpush.bf16.msra.mxu1 %v7735_v7  ;;  %v2487_v48 = vadd.f32 %v10953_v6, %v2473_v35  ;;  %v2489_v55 = vadd.f32 %v10965_v61, %v2475_v50  ;;  %v8011_v6 = vor.u32 %v10056_v43, %v8010_v40  ;;  %v8542_v7 = vld [vmem:[#allocation14 + $0x508] sm:$0xf]  ;;  %v11003_v30 = vpop.f32.mrf.mxu1  ;;  %v7926_v40 = vld [vmem:[#allocation14 + $0x38] sm:$0xf]  ;;  %v10224_v50 = vld [vmem:[#allocation14 + $0x638] sm:$0xf0] }
 0x230   :  { %2793 = vmatmul.bf16.vlgmr.msrb.gmra.mxu2 %v10897_v51  ;;  %v2405_v51 = vadd.f32 %v10932_v54, %v1097_v4  ;;  %v8178_v54 = vld [vmem:[#allocation14 + $0x230] sm:$0xf]  ;;  %v10049_v4 = vld [vmem:[#allocation14 + $0xc0] sm:$0xf0] }
 0x231   :  { %5713 = vmatpush.bf16.msra.mxu2 %v8095_v62  ;;  %2817 = vmatpush.bf16.msra.mxu0 %v7511_v9  ;;  %v2417_v62 = vadd.f32 %v10928_v38, %v2403_v33  ;;  %v10990_v11 = vadd.f32 %v10949_v2, %v2487_v48  ;;  %v8738_v38 = vld [vmem:[#allocation14 + $0x690] sm:$0xf]  ;;  %v8179_v15 = vor.u32 %v10098_v59, %v8178_v54  ;;  %v8150_v2 = vld [vmem:[#allocation14 + $0x1f8] sm:$0xf]  ;;  %v10084_v33 = vld [vmem:[#allocation14 + $0x1d8] sm:$0xf0]  ;;  %v11010_v37 = vpop.f32.mrf.mxu0 }
 0x232   :  { %v2419_v3 = vadd.f32 %v10937_v10, %v2405_v51  ;;  %v10996_v10 = vpop.f32.mrf.mxu3  ;;  %v8739_v20 = vor.u32 %v10238_v13, %v8738_v38  ;;  %v8151_v32 = vor.u32 %v10091_v18, %v8150_v2  ;;  %v10035_v51 = vld [vmem:[#allocation14 + $0x50] sm:$0xf0]  ;;  %v8682_v48 = vld [vmem:[#allocation14 + $0x620] sm:$0xf]  ;;  %v10301_v13 = vld [vmem:[#allocation14 + $0x8a0] sm:$0xf0] }
 0x233   :  { %5729 = vmatpush.bf16.msra.mxu3 %v8263_v8  ;;  %2833 = vmatpush.bf16.msra.mxu1 %v7703_v25  ;;  %v10189_v8 = vld [vmem:[#allocation14 + $0x520] sm:$0xf0]  ;;  %v2431_v9 = vadd.f32 %v10934_v56, %v2417_v62  ;;  %v7983_v56 = vor.u32 %v10049_v4, %v7982_v1  ;;  %v2842_v25 = vmul.f32 0.2, %v10990_v11  ;;  %v8683_v1 = vor.u32 %v10224_v50, %v8682_v48  ;;  %v10168_v4 = vld [vmem:[#allocation14 + $0x478] sm:$0xf0] }
 0x234   :  { %v2433_v61 = vadd.f32 %v10944_v29, %v2419_v3  ;;  %v8543_v12 = vor.u32 %v10189_v8, %v8542_v7  ;;  %v10042_v29 = vld [vmem:[#allocation14 + $0x88] sm:$0xf0]  ;;  %v8458_v3 = vld [vmem:[#allocation14 + $0x460] sm:$0xf]  ;;  %v8990_v7 = vld [vmem:[#allocation14 + $0x888] sm:$0xf] }
 0x235   :  { %5714 = vmatpush.bf16.msra.mxu2 %v8067_v16  ;;  %2818 = vmatpush.bf16.msra.mxu0 %v7479_v28  ;;  %v10994_v16 = vadd.f32 %v10961_v49, %v2489_v55  ;;  %v2570_v26 = vpop.f32.mrf.mxu2  ;;  %v8710_v49 = vld [vmem:[#allocation14 + $0x658] sm:$0xf]  ;;  %v11007_v35 = vadd.f32 %v10930_v47, %v2431_v9  ;;  %v9214_v47 = vld [vmem:[#allocation14 + $0xa48] sm:$0xf]  ;;  %v2858_v9 = vmax.f32 %v10990_v11, %v2842_v25  ;;  %v10350_v2 = vld [vmem:[#allocation14 + $0xa28] sm:$0xf0] }
 0x236   :  { %v11001_v28 = vadd.f32 %v10940_v23, %v2433_v61  ;;  %v7955_v23 = vor.u32 %v10042_v29, %v7954_v19  ;;  %v8654_v61 = vld [vmem:[#allocation14 + $0x5e8] sm:$0xf]  ;;  %v8459_v29 = vor.u32 %v10168_v4, %v8458_v3  ;;  %v8991_v21 = vor.u32 %v10301_v13, %v8990_v7  ;;  %v8402_v48 = vld [vmem:[#allocation14 + $0x3f0] sm:$0xf]  ;;  %v10154_v50 = vld [vmem:[#allocation14 + $0x408] sm:$0xf0] }
 0x237   :  { %5730 = vmatpush.bf16.msra.mxu3 %v8235_v27  ;;  %2834 = vmatpush.bf16.msra.mxu1 %v7671_v52  ;;  %v10231_v27 = vld [vmem:[#allocation14 + $0x670] sm:$0xf0]  ;;  %v10357_v52 = vld [vmem:[#allocation14 + $0xa60] sm:$0xf0]  ;;  %v2841_v59 = vmul.f32 0.2, %v11007_v35 }
 0x238   :  { %v8711_v43 = vor.u32 %v10231_v27, %v8710_v49  ;;  %v9215_v8 = vor.u32 %v10357_v52, %v9214_v47  ;;  %v8430_v25 = vld [vmem:[#allocation14 + $0x428] sm:$0xf]  ;;  %v8962_v49 = vld [vmem:[#allocation14 + $0x850] sm:$0xf]  ;;  %v8934_v47 = vld [vmem:[#allocation14 + $0x818] sm:$0xf] }
 0x239   :  { %5715 = vmatpush.bf16.msra.mxu2 %v8039_v5  ;;  %2819 = vmatpush.bf16.msra.mxu0 %v7447_v58  ;;  %v2850_v5 = vmul.f32 0.2, %v10994_v16  ;;  %v1099_v58 = vperm.slane %v10958_v41, 2  ;;  %v10287_v52 = vld [vmem:[#allocation14 + $0x830] sm:$0xf0] }
 0x23a   :  { %2835 = vmatmul.bf16.vlgmr.msra.gmra.mxu1 %v10900_v24  ;;  %v8122_v24 = vld [vmem:[#allocation14 + $0x1c0] sm:$0xf]  ;;  %v2584_v55 = vpop.f32.mrf.mxu3  ;;  %v8374_v3 = vld [vmem:[#allocation14 + $0x3b8] sm:$0xf]  ;;  %v10147_v4 = vld [vmem:[#allocation14 + $0x3d0] sm:$0xf0] }
 0x23b   :  { %5731 = vmatpush.bf16.msra.mxu3 %v8207_v57  ;;  %5755 = vmatpush.bf16.msrb.mxu1 %v8767_v0  ;;  %v2849_v57 = vmul.f32 0.2, %v11001_v28  ;;  %v8123_v54 = vor.u32 %v10084_v33, %v8122_v24  ;;  %v2866_v62 = vmax.f32 %v10994_v16, %v2850_v5  ;;  %v2571_v0 = vadd.f32 %v2570_v26, %v1100_v31  ;;  %v10161_v26 = vld [vmem:[#allocation14 + $0x440] sm:$0xf0]  ;;  %v10210_v24 = vld [vmem:[#allocation14 + $0x5c8] sm:$0xf0] }
 0x23c   :  { %v2517_v38 = vadd.f32 %v10981_v53, %v1099_v58  ;;  %v2515_v16 = vadd.f32 %v10963_v60, %v1099_v58  ;;  %v2857_v60 = vmax.f32 %v11007_v35, %v2841_v59  ;;  %v8431_v35 = vor.u32 %v10161_v26, %v8430_v25  ;;  %v10203_v58 = vld [vmem:[#allocation14 + $0x590] sm:$0xf0] }
 0x23d   :  { %5716 = vmatpush.bf16.msra.mxu2 %v8011_v6  ;;  %2820 = vmatpush.bf16.msra.mxu0 %v7415_v34  ;;  %v7927_v6 = vor.u32 %v10035_v51, %v7926_v40  ;;  %v2865_v34 = vmax.f32 %v11001_v28, %v2849_v57  ;;  %v11023_v18 = vpack.c.bf16 %v2866_v62, %v2858_v9  ;;  %v2572_v19 = vpop.f32.mrf.mxu2  ;;  %v10294_v28 = vld [vmem:[#allocation14 + $0x868] sm:$0xf0]  ;;  %v10343_v40 = vld [vmem:[#allocation14 + $0x9f0] sm:$0xf0]  ;;  %v8598_v57 = vld [vmem:[#allocation14 + $0x578] sm:$0xf] }
 0x23e   :  { %v2585_v53 = vadd.f32 %v2584_v55, %v2571_v0  ;;  %v2531_v27 = vadd.f32 %v10996_v10, %v2517_v38  ;;  %v2573_v5 = vadd.f32 %v2572_v19, %v1100_v31  ;;  %v2529_v10 = vadd.f32 %v10971_v22, %v2515_v16  ;;  %v9130_v22 = vld [vmem:[#allocation14 + $0x9a0] sm:$0xf]  ;;  %v10336_v55 = vld [vmem:[#allocation14 + $0x9b8] sm:$0xf0]  ;;  %v10329_v16 = vld [vmem:[#allocation14 + $0x980] sm:$0xf0] }
 0x23f   :  { %5732 = vmatpush.bf16.msra.mxu3 %v8179_v15  ;;  %5756 = vmatpush.bf16.msrb.mxu1 %v8739_v20  ;;  %v10217_v15 = vld [vmem:[#allocation14 + $0x600] sm:$0xf0]  ;;  %v2598_v20 = vpop.f32.mrf.mxu0  ;;  %v11030_v51 = vpack.c.bf16 %v2865_v34, %v2857_v60  ;;  %v8963_v44 = vor.u32 %v10294_v28, %v8962_v49  ;;  %v8935_v0 = vor.u32 %v10287_v52, %v8934_v47  ;;  %v8570_v9 = vld [vmem:[#allocation14 + $0x540] sm:$0xf]  ;;  %v10196_v38 = vld [vmem:[#allocation14 + $0x558] sm:$0xf0] }
 0x240   :  { %2821 = vmatmul.bf16.vlgmr.msra.gmra.mxu0 %v10904_v46  ;;  %v10028_v46 = vld [vmem:[#allocation14 + $0x18] sm:$0xf0]  ;;  %v8655_v17 = vor.u32 %v10217_v15, %v8654_v61  ;;  %v9131_v13 = vor.u32 %v10336_v55, %v9130_v22  ;;  %v9102_v34 = vld [vmem:[#allocation14 + $0x968] sm:$0xf]  ;;  %v9074_v49 = vld [vmem:[#allocation14 + $0x930] sm:$0xf] }
 0x241   :  { %5717 = vmatpush.bf16.msra.mxu2 %v7983_v56  ;;  %5741 = vmatpush.bf16.msrb.mxu0 %v8543_v12  ;;  %v2612_v56 = vpop.f32.mrf.mxu1  ;;  %v9186_v12 = vld [vmem:[#allocation14 + $0xa10] sm:$0xf]  ;;  %v7899_v11 = vor.u32 %v10028_v46, %v7898_v36  ;;  %v8403_v36 = vor.u32 %v10154_v50, %v8402_v48  ;;  %v10322_v60 = vld [vmem:[#allocation14 + $0x948] sm:$0xf0]  ;;  %v8822_v52 = vld [vmem:[#allocation14 + $0x738] sm:$0xf] }
 0x242   :  { %v9187_v33 = vor.u32 %v10350_v2, %v9186_v12  ;;  %v2586_v31 = vpop.f32.mrf.mxu3  ;;  %v8375_v12 = vor.u32 %v10147_v4, %v8374_v3  ;;  %v9410_v47 = vld [vmem:[#allocation14 + $0xbd0] sm:$0xf]  ;;  %v10130_v22 = vld [vmem:[#allocation14 + $0x34c] sm:$0xf]  ;;  %v8320_v55 = vld [vmem:[#allocation14 + $0x364] sm:$0xf0] }
 0x243   :  { %5733 = vmatpush.bf16.msra.mxu3 %v8151_v32  ;;  %5757 = vmatpush.bf16.msrb.mxu1 %v8711_v43  ;;  %v8626_v32 = vld [vmem:[#allocation14 + $0x5b0] sm:$0xf]  ;;  %v2545_v43 = vadd.f32 %v11010_v37, %v2531_v27  ;;  %v2543_v37 = vadd.f32 %v10983_v14, %v2529_v10  ;;  %v2587_v62 = vadd.f32 %v2586_v31, %v2573_v5  ;;  %v8906_v14 = vld [vmem:[#allocation14 + $0x7e0] sm:$0xf]  ;;  %v10413_v5 = vld [vmem:[#allocation14 + $0xc20] sm:$0xf0] }
 0x244   :  { %v8627_v45 = vor.u32 %v10210_v24, %v8626_v32  ;;  %v9046_v10 = vld [vmem:[#allocation14 + $0x8f8] sm:$0xf]  ;;  %v10406_v31 = vld [vmem:[#allocation14 + $0xbe8] sm:$0xf0] }
 0x245   :  { %5718 = vmatpush.bf16.msra.mxu2 %v7955_v23  ;;  %5742 = vmatpush.bf16.msrb.mxu0 %v8515_v39  ;;  %v2599_v23 = vadd.f32 %v2598_v20, %v2585_v53  ;;  %v9158_v39 = vld [vmem:[#allocation14 + $0x9d8] sm:$0xf]  ;;  %v8571_v20 = vor.u32 %v10196_v38, %v8570_v9  ;;  %v8878_v53 = vld [vmem:[#allocation14 + $0x7a8] sm:$0xf]  ;;  %v8323_v9 = vor.u32 %v10130_v22, %v8320_v55  ;;  %v10123_v38 = vld [vmem:[#allocation14 + $0x314] sm:$0xf] }
 0x246   :  { %v10371_v22 = vld [vmem:[#allocation14 + $0xad0] sm:$0xf0] }
 0x247   :  { %5734 = vmatpush.bf16.msra.mxu3 %v8123_v54  ;;  %5758 = vmatpush.bf16.msrb.mxu1 %v8683_v1  ;;  %v9159_v54 = vor.u32 %v10343_v40, %v9158_v39  ;;  %v2613_v59 = vadd.f32 %v2612_v56, %v2599_v23  ;;  %v8599_v1 = vor.u32 %v10203_v58, %v8598_v57  ;;  %v8850_v23 = vld [vmem:[#allocation14 + $0x770] sm:$0xf]  ;;  %v10266_v39 = vld [vmem:[#allocation14 + $0x788] sm:$0xf0]  ;;  %v10259_v57 = vld [vmem:[#allocation14 + $0x750] sm:$0xf0] }
 0x248   :  { %v9075_v40 = vor.u32 %v10322_v60, %v9074_v49  ;;  %v8851_v50 = vor.u32 %v10266_v39, %v8850_v23  ;;  %v8236_v23 = vld [vmem:[#allocation14 + $0x2bc] sm:$0xf0] }
 0x249   :  { %5719 = vmatpush.bf16.msra.mxu2 %v7927_v6  ;;  %5743 = vmatpush.bf16.msrb.mxu0 %v8487_v63  ;;  %v11037_v6 = vadd.f32 %v11003_v30, %v2545_v43  ;;  %v2600_v63 = vpop.f32.mrf.mxu0  ;;  %v2614_v7 = vpop.f32.mrf.mxu1  ;;  %v2557_v30 = vadd.f32 %v10977_v42, %v2543_v37  ;;  %v2844_v61 = vmul.f32 0.2, %v2613_v59  ;;  %v1101_v37 = vperm.slane %v10958_v41, 4 }
 0x24a   :  { %5735 = vmatmul.bf16.vlgmr.msra.gmra.mxu3 %v11023_v18  ;;  %v2601_v46 = vadd.f32 %v2600_v63, %v2587_v62  ;;  %v10308_v62 = vld [vmem:[#allocation14 + $0x8d8] sm:$0xf0]  ;;  %v9382_v63 = vld [vmem:[#allocation14 + $0xb98] sm:$0xf] }
 0x24b   :  { %5783 = vmatpush.bf16.msrb.mxu3 %v9215_v8  ;;  %5759 = vmatpush.bf16.msrb.mxu1 %v8655_v17  ;;  %v10280_v8 = vld [vmem:[#allocation14 + $0x7f8] sm:$0xf0]  ;;  %v2851_v56 = vmul.f32 0.2, %v11037_v6  ;;  %v9103_v17 = vor.u32 %v10329_v16, %v9102_v34  ;;  %v2843_v42 = vmul.f32 0.2, %v2557_v30  ;;  %v2860_v25 = vmax.f32 %v2613_v59, %v2844_v61 }
 0x24c   :  { %v2615_v15 = vadd.f32 %v2614_v7, %v2601_v46  ;;  %v8907_v19 = vor.u32 %v10280_v8, %v8906_v14  ;;  %v9018_v59 = vld [vmem:[#allocation14 + $0x8c0] sm:$0xf]  ;;  %v10074_v7 = vld [vmem:[#allocation14 + $0x18c] sm:$0xf]  ;;  %v8096_v8 = vld [vmem:[#allocation14 + $0x1a4] sm:$0xf0] }
 0x24d   :  { %5720 = vmatpush.bf16.msra.mxu2 %v7899_v11  ;;  %5744 = vmatpush.bf16.msrb.mxu0 %v8459_v29  ;;  %v8346_v11 = vld [vmem:[#allocation14 + $0x380] sm:$0xf]  ;;  %v10140_v29 = vld [vmem:[#allocation14 + $0x398] sm:$0xf0]  ;;  %v2867_v28 = vmax.f32 %v11037_v6, %v2851_v56  ;;  %v8823_v6 = vor.u32 %v10259_v57, %v8822_v52  ;;  %v2640_v46 = vpop.f32.mrf.mxu3  ;;  %v9019_v3 = vor.u32 %v10308_v62, %v9018_v59  ;;  %v9270_v62 = vld [vmem:[#allocation14 + $0xab8] sm:$0xf] }
 0x24e   :  { %v2852_v2 = vmul.f32 0.2, %v2615_v15  ;;  %v8347_v27 = vor.u32 %v10140_v29, %v8346_v11  ;;  %v10392_v34 = vld [vmem:[#allocation14 + $0xb78] sm:$0xf0]  ;;  %v8068_v11 = vld [vmem:[#allocation14 + $0x16c] sm:$0xf0] }
 0x24f   :  { %5784 = vmatpush.bf16.msrb.mxu3 %v9187_v33  ;;  %5760 = vmatpush.bf16.msrb.mxu1 %v8627_v45  ;;  %v9438_v33 = vld [vmem:[#allocation14 + $0xc08] sm:$0xf] }
 0x250   :  { %5721 = vmatmul.bf16.vlgmr.msra.gmra.mxu2 %v11030_v51  ;;  %v2868_v26 = vmax.f32 %v2615_v15, %v2852_v2  ;;  %v9439_v43 = vor.u32 %v10413_v5, %v9438_v33  ;;  %v9354_v15 = vld [vmem:[#allocation14 + $0xb60] sm:$0xf]  ;;  %v10109_v5 = vld [vmem:[#allocation14 + $0x2a4] sm:$0xf] }
 0x251   :  { %5769 = vmatpush.bf16.msrb.mxu2 %v8991_v21  ;;  %5745 = vmatpush.bf16.msrb.mxu0 %v8431_v35  ;;  %v10273_v21 = vld [vmem:[#allocation14 + $0x7c0] sm:$0xf0]  ;;  %v2859_v35 = vmax.f32 %v2557_v30, %v2843_v42  ;;  %v9355_v2 = vor.u32 %v10392_v34, %v9354_v15  ;;  %v8239_v52 = vor.u32 %v10109_v5, %v8236_v23  ;;  %v10088_v34 = vld [vmem:[#allocation14 + $0x1fc] sm:$0xf]  ;;  %v1102_v5 = vperm.slane %v10958_v41, 5 }
 0x252   :  { %v11042_v32 = vpack.c.bf16 %v2868_v26, %v2860_v25  ;;  %v8879_v24 = vor.u32 %v10273_v21, %v8878_v53  ;;  %v10116_v53 = vld [vmem:[#allocation14 + $0x2dc] sm:$0xf]  ;;  %v8264_v21 = vld [vmem:[#allocation14 + $0x2f4] sm:$0xf0]  ;;  %v9326_v25 = vld [vmem:[#allocation14 + $0xb28] sm:$0xf] }
 0x253   :  { %5785 = vmatpush.bf16.msrb.mxu3 %v9159_v54  ;;  %5761 = vmatpush.bf16.msrb.mxu1 %v8599_v1  ;;  %v2626_v45 = vpop.f32.mrf.mxu2  ;;  %v11045_v48 = vpack.c.bf16 %v2867_v28, %v2859_v35  ;;  %v9411_v54 = vor.u32 %v10406_v31, %v9410_v47  ;;  %v10252_v1 = vld [vmem:[#allocation14 + $0x718] sm:$0xf0]  ;;  %v10385_v26 = vld [vmem:[#allocation14 + $0xb40] sm:$0xf0]  ;;  %v8040_v28 = vld [vmem:[#allocation14 + $0x134] sm:$0xf0] }
 0x254   :  { %v2627_v14 = vadd.f32 %v2626_v45, %v1101_v37  ;;  %v9327_v60 = vor.u32 %v10385_v26, %v9326_v25  ;;  %v10378_v35 = vld [vmem:[#allocation14 + $0xb08] sm:$0xf0]  ;;  %v10053_v47 = vld [vmem:[#allocation14 + $0xe4] sm:$0xf]  ;;  %v8012_v31 = vld [vmem:[#allocation14 + $0xfc] sm:$0xf0] }
 0x255   :  { %5770 = vmatpush.bf16.msrb.mxu2 %v8963_v44  ;;  %5746 = vmatpush.bf16.msrb.mxu0 %v8403_v36  ;;  %v10315_v44 = vld [vmem:[#allocation14 + $0x910] sm:$0xf0]  ;;  %v2642_v33 = vpop.f32.mrf.mxu3  ;;  %v8015_v55 = vor.u32 %v10053_v47, %v8012_v31  ;;  %v10032_v25 = vld [vmem:[#allocation14 + $0x3c] sm:$0xf]  ;;  %v7928_v26 = vld [vmem:[#allocation14 + $0x54] sm:$0xf0] }
 0x256   :  { %v9047_v58 = vor.u32 %v10315_v44, %v9046_v10  ;;  %v10399_v36 = vld [vmem:[#allocation14 + $0xbb0] sm:$0xf0]  ;;  %v7931_v23 = vor.u32 %v10032_v25, %v7928_v26  ;;  %v10298_v31 = vld [vmem:[#allocation14 + $0x88c] sm:$0xf]  ;;  %v8908_v25 = vld [vmem:[#allocation14 + $0x7fc] sm:$0xf0] }
 0x257   :  { %5786 = vmatpush.bf16.msrb.mxu3 %v9131_v13  ;;  %5762 = vmatpush.bf16.msrb.mxu1 %v8571_v20  ;;  %v9383_v4 = vor.u32 %v10399_v36, %v9382_v63  ;;  %v8292_v13 = vld [vmem:[#allocation14 + $0x32c] sm:$0xf0]  ;;  %v2668_v30 = vpop.f32.mrf.mxu1  ;;  %v10067_v20 = vld [vmem:[#allocation14 + $0x154] sm:$0xf]  ;;  %v10046_v36 = vld [vmem:[#allocation14 + $0xac] sm:$0xf] }
 0x258   :  { %v8295_v29 = vor.u32 %v10123_v38, %v8292_v13  ;;  %v8071_v49 = vor.u32 %v10067_v20, %v8068_v11  ;;  %v10039_v38 = vld [vmem:[#allocation14 + $0x74] sm:$0xf]  ;;  %v7956_v13 = vld [vmem:[#allocation14 + $0x8c] sm:$0xf0]  ;;  %v8544_v20 = vld [vmem:[#allocation14 + $0x524] sm:$0xf0] }
 0x259   :  { %5771 = vmatpush.bf16.msrb.mxu2 %v8935_v0  ;;  %5747 = vmatpush.bf16.msrb.mxu0 %v8375_v12  ;;  %v8794_v0 = vld [vmem:[#allocation14 + $0x700] sm:$0xf]  ;;  %v8099_v12 = vor.u32 %v10074_v7, %v8096_v8  ;;  %v10364_v8 = vld [vmem:[#allocation14 + $0xa98] sm:$0xf0] }
 0x25a   :  { %5763 = vmatmul.bf16.vlgmr.msrb.gmra.mxu1 %v11042_v32  ;;  %v8795_v61 = vor.u32 %v10252_v1, %v8794_v0  ;;  %v10095_v1 = vld [vmem:[#allocation14 + $0x234] sm:$0xf]  ;;  %v9242_v7 = vld [vmem:[#allocation14 + $0xa80] sm:$0xf] }
 0x25b   :  { %5787 = vmatpush.bf16.msrb.mxu3 %v9103_v17  ;;  %v2628_v16 = vpop.f32.mrf.mxu2 }
 0x25c   :  { %v2629_v17 = vadd.f32 %v2628_v16, %v1101_v37  ;;  %v9662_v16 = vld [vmem:[#allocation14 + $0xdc8] sm:$0xf] }
 0x25d   :  { %5772 = vmatpush.bf16.msrb.mxu2 %v8907_v19  ;;  %5748 = vmatpush.bf16.msrb.mxu0 %v8347_v27  ;;  %v2654_v56 = vpop.f32.mrf.mxu0  ;;  %v2641_v19 = vadd.f32 %v2640_v46, %v2627_v14  ;;  %v10060_v27 = vld [vmem:[#allocation14 + $0x11c] sm:$0xf]  ;;  %v7984_v46 = vld [vmem:[#allocation14 + $0xc4] sm:$0xf0] }
 0x25e   :  { %v8043_v44 = vor.u32 %v10060_v27, %v8040_v28  ;;  %v8516_v27 = vld [vmem:[#allocation14 + $0x4ec] sm:$0xf0]  ;;  %v10081_v28 = vld [vmem:[#allocation14 + $0x1c4] sm:$0xf] }
 0x25f   :  { %5788 = vmatpush.bf16.msrb.mxu3 %v9075_v40  ;;  %v2655_v42 = vadd.f32 %v2654_v56, %v2641_v19  ;;  %v2643_v40 = vadd.f32 %v2642_v33, %v2629_v17  ;;  %v2670_v57 = vpop.f32.mrf.mxu1  ;;  %v10469_v56 = vld [vmem:[#allocation14 + $0xde0] sm:$0xf0]  ;;  %v10186_v19 = vld [vmem:[#allocation14 + $0x50c] sm:$0xf] }
 0x260   :  { %5749 = vmatmul.bf16.vlgmr.msrb.gmra.mxu0 %v11045_v48  ;;  %v8547_v11 = vor.u32 %v10186_v19, %v8544_v20  ;;  %v10462_v17 = vld [vmem:[#allocation14 + $0xda8] sm:$0xf0]  ;;  %v10151_v20 = vld [vmem:[#allocation14 + $0x3f4] sm:$0xf] }
 0x261   :  { %5773 = vmatpush.bf16.msrb.mxu2 %v8879_v24  ;;  %5797 = vmatpush.bf16.msra.mxu0 %v9439_v43  ;;  %v8267_v24 = vor.u32 %v10116_v53, %v8264_v21  ;;  %v2669_v39 = vadd.f32 %v2668_v30, %v2655_v42  ;;  %v9298_v43 = vld [vmem:[#allocation14 + $0xaf0] sm:$0xf]  ;;  %v9243_v30 = vor.u32 %v10364_v8, %v9242_v7  ;;  %v10179_v42 = vld [vmem:[#allocation14 + $0x4d4] sm:$0xf]  ;;  %v10441_v7 = vld [vmem:[#allocation14 + $0xd00] sm:$0xf0] }
 0x262   :  { %v9299_v45 = vor.u32 %v10378_v35, %v9298_v43  ;;  %v7959_v53 = vor.u32 %v10039_v38, %v7956_v13  ;;  %v9634_v21 = vld [vmem:[#allocation14 + $0xd90] sm:$0xf]  ;;  %v8519_v33 = vor.u32 %v10179_v42, %v8516_v27  ;;  %v10172_v43 = vld [vmem:[#allocation14 + $0x49c] sm:$0xf]  ;;  %v10025_v35 = vld [vmem:[#allocation14 + $0x4] sm:$0xf] }
 0x263   :  { %5789 = vmatpush.bf16.msrb.mxu3 %v9047_v58  ;;  %v10102_v58 = vld [vmem:[#allocation14 + $0x26c] sm:$0xf]  ;;  %v2845_v37 = vmul.f32 0.2, %v2669_v39  ;;  %v10284_v13 = vld [vmem:[#allocation14 + $0x81c] sm:$0xf] }
 0x264   :  { %v10158_v8 = vld [vmem:[#allocation14 + $0x42c] sm:$0xf]  ;;  %v10277_v42 = vld [vmem:[#allocation14 + $0x7e4] sm:$0xf] }
 0x265   :  { %5774 = vmatpush.bf16.msrb.mxu2 %v8851_v50  ;;  %5798 = vmatpush.bf16.msra.mxu0 %v9411_v54  ;;  %v2656_v10 = vpop.f32.mrf.mxu0  ;;  %v8208_v54 = vld [vmem:[#allocation14 + $0x284] sm:$0xf0]  ;;  %v10434_v19 = vld [vmem:[#allocation14 + $0xcc8] sm:$0xf0] }
 0x266   :  { %v2657_v50 = vadd.f32 %v2656_v10, %v2643_v40  ;;  %v8211_v0 = vor.u32 %v10102_v58, %v8208_v54  ;;  %v10455_v40 = vld [vmem:[#allocation14 + $0xd70] sm:$0xf0]  ;;  %v7900_v10 = vld [vmem:[#allocation14 + $0x1c] sm:$0xf0] }
 0x267   :  { %5790 = vmatpush.bf16.msrb.mxu3 %v9019_v3  ;;  %v8180_v3 = vld [vmem:[#allocation14 + $0x24c] sm:$0xf0]  ;;  %v7903_v41 = vor.u32 %v10025_v35, %v7900_v10  ;;  %v9578_v54 = vld [vmem:[#allocation14 + $0xd20] sm:$0xf]  ;;  %v8376_v35 = vld [vmem:[#allocation14 + $0x3d4] sm:$0xf0] }
 0x268   :  { %v2671_v59 = vadd.f32 %v2670_v57, %v2657_v50  ;;  %v8183_v15 = vor.u32 %v10095_v1, %v8180_v3  ;;  %v8488_v50 = vld [vmem:[#allocation14 + $0x4b4] sm:$0xf0] }
 0x269   :  { %5775 = vmatpush.bf16.msrb.mxu2 %v8823_v6  ;;  %5799 = vmatpush.bf16.msra.mxu0 %v9383_v4  ;;  %v9271_v6 = vor.u32 %v10371_v22, %v9270_v62  ;;  %v2861_v4 = vmax.f32 %v2669_v39, %v2845_v37  ;;  %v9606_v39 = vld [vmem:[#allocation14 + $0xd58] sm:$0xf]  ;;  %v8491_v57 = vor.u32 %v10172_v43, %v8488_v50  ;;  %v10448_v37 = vld [vmem:[#allocation14 + $0xd38] sm:$0xf0]  ;;  %v9216_v50 = vld [vmem:[#allocation14 + $0xa64] sm:$0xf0] }
 0x26a   :  { %v2853_v63 = vmul.f32 0.2, %v2671_v59 }
 0x26b   :  { %5839 = vmatpush.bf16.msra.mxu3 %v8323_v9  ;;  %v7987_v9 = vor.u32 %v10046_v36, %v7984_v46  ;;  %v8460_v36 = vld [vmem:[#allocation14 + $0x47c] sm:$0xf0] }
 0x26c   :  { %v2869_v14 = vmax.f32 %v2671_v59, %v2853_v63  ;;  %v10165_v59 = vld [vmem:[#allocation14 + $0x464] sm:$0xf]  ;;  %v9579_v63 = vor.u32 %v10448_v37, %v9578_v54  ;;  %v8348_v37 = vld [vmem:[#allocation14 + $0x39c] sm:$0xf0] }
 0x26d   :  { %5776 = vmatpush.bf16.msrb.mxu2 %v8795_v61  ;;  %5800 = vmatpush.bf16.msra.mxu0 %v9355_v2  ;;  %v9663_v2 = vor.u32 %v10469_v56, %v9662_v16  ;;  %v2696_v47 = vpop.f32.mrf.mxu3  ;;  %v8463_v1 = vor.u32 %v10165_v59, %v8460_v36  ;;  %v9188_v36 = vld [vmem:[#allocation14 + $0xa2c] sm:$0xf0] }
 0x26e   :  { %v11049_v61 = vpack.c.bf16 %v2869_v14, %v2861_v4  ;;  %v9550_v14 = vld [vmem:[#allocation14 + $0xce8] sm:$0xf] }
 0x26f   :  { %5840 = vmatpush.bf16.msra.mxu3 %v8295_v29  ;;  %5811 = vmatpush.bf16.msra.mxu1 %v9663_v2  ;;  %v9522_v2 = vld [vmem:[#allocation14 + $0xcb0] sm:$0xf] }
 0x270   :  { %5777 = vmatmul.bf16.vlgmr.msrb.gmra.mxu2 %v11049_v61 }
 0x271   :  { %5825 = vmatpush.bf16.msra.mxu2 %v8099_v12  ;;  %5801 = vmatpush.bf16.msra.mxu0 %v9327_v60  ;;  %v8152_v12 = vld [vmem:[#allocation14 + $0x214] sm:$0xf0]  ;;  %v9635_v60 = vor.u32 %v10462_v17, %v9634_v21  ;;  %v8404_v21 = vld [vmem:[#allocation14 + $0x40c] sm:$0xf0] }
 0x272   :  { %v8407_v26 = vor.u32 %v10151_v20, %v8404_v21  ;;  %v10249_v20 = vld [vmem:[#allocation14 + $0x704] sm:$0xf]  ;;  %v8102_v21 = vld [vmem:[#allocation14 + $0x190] sm:$0xf] }
 0x273   :  { %5841 = vmatpush.bf16.msra.mxu3 %v8267_v24  ;;  %v2682_v29 = vpop.f32.mrf.mxu2  ;;  %v8124_v24 = vld [vmem:[#allocation14 + $0x1dc] sm:$0xf0]  ;;  %5812 = vmatpush.bf16.msra.mxu1 %v9635_v60  ;;  %v10270_v60 = vld [vmem:[#allocation14 + $0x7ac] sm:$0xf] }
 0x274   :  { %v2683_v58 = vadd.f32 %v2682_v29, %v1102_v5 }
 0x275   :  { %5826 = vmatpush.bf16.msra.mxu2 %v8071_v49  ;;  %5802 = vmatpush.bf16.msra.mxu0 %v9299_v45  ;;  %v8155_v49 = vor.u32 %v10088_v34, %v8152_v12  ;;  %v9607_v45 = vor.u32 %v10455_v40, %v9606_v39  ;;  %v8432_v34 = vld [vmem:[#allocation14 + $0x444] sm:$0xf0]  ;;  %v2698_v56 = vpop.f32.mrf.mxu3  ;;  %v8911_v39 = vor.u32 %v10277_v42, %v8908_v25 }
 0x276   :  { %v2697_v3 = vadd.f32 %v2696_v47, %v2683_v58  ;;  %v8435_v16 = vor.u32 %v10158_v8, %v8432_v34  ;;  %v8880_v40 = vld [vmem:[#allocation14 + $0x7c4] sm:$0xf0]  ;;  %v10256_v8 = vld [vmem:[#allocation14 + $0x73c] sm:$0xf] }
 0x277   :  { %5842 = vmatpush.bf16.msra.mxu3 %v8239_v52  ;;  %v8992_v52 = vld [vmem:[#allocation14 + $0x8a4] sm:$0xf0]  ;;  %5813 = vmatpush.bf16.msra.mxu1 %v9607_v45  ;;  %v2724_v62 = vpop.f32.mrf.mxu1  ;;  %v10354_v45 = vld [vmem:[#allocation14 + $0xa4c] sm:$0xf]  ;;  %v8883_v47 = vor.u32 %v10270_v60, %v8880_v40  ;;  %v11057_v34 = vld [vmem:[#allocation13] sm:$0xff] }
 0x278   :  { %v8995_v22 = vor.u32 %v10298_v31, %v8992_v52  ;;  %v9466_v31 = vld [vmem:[#allocation14 + $0xc40] sm:$0xf]  ;;  %v10420_v52 = vld [vmem:[#allocation14 + $0xc58] sm:$0xf0]  ;;  %v9219_v59 = vor.u32 %v10354_v45, %v9216_v50  ;;  %v10221_v60 = vld [vmem:[#allocation14 + $0x624] sm:$0xf] }
 0x279   :  { %5827 = vmatpush.bf16.msra.mxu2 %v8043_v44  ;;  %5803 = vmatpush.bf16.msra.mxu0 %v9271_v6  ;;  %v8127_v44 = vor.u32 %v10081_v28, %v8124_v24  ;;  %v8964_v6 = vld [vmem:[#allocation14 + $0x86c] sm:$0xf0]  ;;  %v9494_v28 = vld [vmem:[#allocation14 + $0xc78] sm:$0xf]  ;;  %v10427_v24 = vld [vmem:[#allocation14 + $0xc90] sm:$0xf0]  ;;  %v9467_v54 = vor.u32 %v10420_v52, %v9466_v31 }
 0x27a   :  { %v9495_v43 = vor.u32 %v10427_v24, %v9494_v28  ;;  %v10071_v40 = vld [vmem:[#allocation14 + $0x170] sm:$0xf0]  ;;  %v10214_v45 = vld [vmem:[#allocation14 + $0x5ec] sm:$0xf]  ;;  %v8656_v50 = vld [vmem:[#allocation14 + $0x604] sm:$0xf0] }
 0x27b   :  { %5843 = vmatpush.bf16.msra.mxu3 %v8211_v0  ;;  %v2684_v46 = vpop.f32.mrf.mxu2  ;;  %5814 = vmatpush.bf16.msra.mxu1 %v9579_v63  ;;  %v10319_v52 = vld [vmem:[#allocation14 + $0x934] sm:$0xf] }
 0x27d   :  { %5828 = vmatpush.bf16.msra.mxu2 %v8015_v55  ;;  %5804 = vmatpush.bf16.msra.mxu0 %v9243_v30  ;;  %v10291_v55 = vld [vmem:[#allocation14 + $0x854] sm:$0xf]  ;;  %v2710_v0 = vpop.f32.mrf.mxu0  ;;  %v8936_v30 = vld [vmem:[#allocation14 + $0x834] sm:$0xf0] }
 0x27e   :  { %v8967_v4 = vor.u32 %v10291_v55, %v8964_v6  ;;  %v2711_v38 = vadd.f32 %v2710_v0, %v2697_v3  ;;  %v8939_v12 = vor.u32 %v10284_v13, %v8936_v30  ;;  %v10347_v55 = vld [vmem:[#allocation14 + $0xa14] sm:$0xf]  ;;  %v8768_v0 = vld [vmem:[#allocation14 + $0x6e4] sm:$0xf0]  ;;  %v10340_v13 = vld [vmem:[#allocation14 + $0x9dc] sm:$0xf] }
 0x27f   :  { %5844 = vmatpush.bf16.msra.mxu3 %v8183_v15  ;;  %v9551_v15 = vor.u32 %v10441_v7, %v9550_v14  ;;  %v2726_v27 = vpop.f32.mrf.mxu1  ;;  %v9191_v7 = vor.u32 %v10347_v55, %v9188_v36  ;;  %v9160_v30 = vld [vmem:[#allocation14 + $0x9f4] sm:$0xf0] }
 0x281   :  { %5829 = vmatpush.bf16.msra.mxu2 %v7987_v9  ;;  %5853 = vmatpush.bf16.msrb.mxu0 %v8547_v11  ;;  %v2685_v9 = vadd.f32 %v2684_v46, %v1102_v5  ;;  %v2725_v11 = vadd.f32 %v2724_v62, %v2711_v38  ;;  %v10263_v62 = vld [vmem:[#allocation14 + $0x774] sm:$0xf]  ;;  %v10242_v46 = vld [vmem:[#allocation14 + $0x6cc] sm:$0xf]  ;;  %v8740_v38 = vld [vmem:[#allocation14 + $0x6ac] sm:$0xf0] }
 0x282   :  { %5815 = vmatpush.bf16.msra.mxu1 %v9551_v15 }
 0x283   :  { %5845 = vmatpush.bf16.msra.mxu3 %v8155_v49  ;;  %v2699_v29 = vadd.f32 %v2698_v56, %v2685_v9  ;;  %v2846_v5 = vmul.f32 0.2, %v2725_v11  ;;  %v8824_v9 = vld [vmem:[#allocation14 + $0x754] sm:$0xf0] }
 0x284   :  { %v8827_v56 = vor.u32 %v10256_v8, %v8824_v9 }
 0x285   :  { %5830 = vmatpush.bf16.msra.mxu2 %v7959_v53  ;;  %5854 = vmatpush.bf16.msrb.mxu0 %v8519_v33  ;;  %v9523_v53 = vor.u32 %v10434_v19, %v9522_v2  ;;  %v2712_v17 = vpop.f32.mrf.mxu0  ;;  %v10144_v33 = vld [vmem:[#allocation14 + $0x3bc] sm:$0xf]  ;;  %v2862_v58 = vmax.f32 %v2725_v11, %v2846_v5  ;;  %v8712_v2 = vld [vmem:[#allocation14 + $0x674] sm:$0xf0]  ;;  %v9163_v19 = vor.u32 %v10340_v13, %v9160_v30  ;;  %v8796_v11 = vld [vmem:[#allocation14 + $0x71c] sm:$0xf0] }
 0x286   :  { %v2713_v49 = vadd.f32 %v2712_v17, %v2699_v29  ;;  %v8379_v10 = vor.u32 %v10144_v33, %v8376_v35  ;;  %v10333_v29 = vld [vmem:[#allocation14 + $0x9a4] sm:$0xf]  ;;  %v10078_v17 = vld [vmem:[#allocation14 + $0x1a8] sm:$0xf0]  ;;  %v8600_v13 = vld [vmem:[#allocation14 + $0x594] sm:$0xf0] }
 0x287   :  { %5846 = vmatpush.bf16.msra.mxu3 %v8127_v44  ;;  %5816 = vmatpush.bf16.msra.mxu1 %v9523_v53  ;;  %v9132_v53 = vld [vmem:[#allocation14 + $0x9bc] sm:$0xf0]  ;;  %v8103_v24 = vor.u32 %v10078_v17, %v8102_v21  ;;  %v10326_v33 = vld [vmem:[#allocation14 + $0x96c] sm:$0xf]  ;;  %v9440_v21 = vld [vmem:[#allocation14 + $0xc24] sm:$0xf0] }
 0x288   :  { %v9135_v28 = vor.u32 %v10333_v29, %v9132_v53  ;;  %v10410_v29 = vld [vmem:[#allocation14 + $0xc0c] sm:$0xf]  ;;  %v8326_v17 = vld [vmem:[#allocation14 + $0x350] sm:$0xf] }
 0x289   :  { %5831 = vmatpush.bf16.msra.mxu2 %v7931_v23  ;;  %5855 = vmatpush.bf16.msrb.mxu0 %v8491_v57  ;;  %v2727_v23 = vadd.f32 %v2726_v27, %v2713_v49  ;;  %v10137_v57 = vld [vmem:[#allocation14 + $0x384] sm:$0xf]  ;;  %v8799_v49 = vor.u32 %v10249_v20, %v8796_v11  ;;  %v8684_v27 = vld [vmem:[#allocation14 + $0x63c] sm:$0xf0]  ;;  %v10050_v11 = vld [vmem:[#allocation14 + $0xc8] sm:$0xf0] }
 0x28a   :  { %v8351_v6 = vor.u32 %v10137_v57, %v8348_v37  ;;  %v10064_v37 = vld [vmem:[#allocation14 + $0x138] sm:$0xf0] }
 0x28b   :  { %v2854_v44 = vmul.f32 0.2, %v2727_v23  ;;  %5817 = vmatpush.bf16.msra.mxu1 %v9495_v43  ;;  %v8687_v43 = vor.u32 %v10221_v60, %v8684_v27 }
 0x28d   :  { %5832 = vmatpush.bf16.msra.mxu2 %v7903_v41  ;;  %5856 = vmatpush.bf16.msrb.mxu0 %v8463_v1  ;;  %v2870_v41 = vmax.f32 %v2727_v23, %v2854_v44  ;;  %v8771_v1 = vor.u32 %v10242_v46, %v8768_v0  ;;  %v2752_v25 = vpop.f32.mrf.mxu3  ;;  %v9104_v23 = vld [vmem:[#allocation14 + $0x984] sm:$0xf0]  ;;  %v10312_v46 = vld [vmem:[#allocation14 + $0x8fc] sm:$0xf] }
 0x28f   :  { %v11054_v63 = vpack.c.bf16 %v2870_v41, %v2862_v58  ;;  %5818 = vmatpush.bf16.msra.mxu1 %v9467_v54  ;;  %v9076_v41 = vld [vmem:[#allocation14 + $0x94c] sm:$0xf0]  ;;  %v8046_v54 = vld [vmem:[#allocation14 + $0x120] sm:$0xf] }
 0x290   :  { %5833 = vmatmul.bf16.vlgmr.msra.gmra.mxu2 %v11030_v51  ;;  %v8047_v36 = vor.u32 %v10064_v37, %v8046_v54  ;;  %v10120_v54 = vld [vmem:[#allocation14 + $0x2f8] sm:$0xf0] }
 0x291   :  { %5881 = vmatpush.bf16.msrb.mxu2 %v8995_v22  ;;  %5857 = vmatpush.bf16.msrb.mxu0 %v8435_v16  ;;  %v8852_v22 = vld [vmem:[#allocation14 + $0x78c] sm:$0xf0]  ;;  %v1103_v16 = vperm.slane %v11057_v34, 6  ;;  %v10396_v37 = vld [vmem:[#allocation14 + $0xb9c] sm:$0xf] }
 0x292   :  { %5791 = vmatmul.bf16.vlgmr.msrb.gmra.mxu3 %v11054_v63  ;;  %v8855_v3 = vor.u32 %v10263_v62, %v8852_v22  ;;  %v10207_v62 = vld [vmem:[#allocation14 + $0x5b4] sm:$0xf]  ;;  %v8628_v22 = vld [vmem:[#allocation14 + $0x5cc] sm:$0xf0] }
 0x293   :  { %v2738_v14 = vpop.f32.mrf.mxu2  ;;  %5895 = vmatpush.bf16.msrb.mxu3 %v9219_v59  ;;  %5867 = vmatpush.bf16.msrb.mxu1 %v8771_v1  ;;  %v8659_v59 = vor.u32 %v10214_v45, %v8656_v50  ;;  %v9412_v45 = vld [vmem:[#allocation14 + $0xbec] sm:$0xf0] }
 0x295   :  { %5882 = vmatpush.bf16.msrb.mxu2 %v8967_v4  ;;  %5858 = vmatpush.bf16.msrb.mxu0 %v8407_v26  ;;  %v10235_v4 = vld [vmem:[#allocation14 + $0x694] sm:$0xf]  ;;  %v2739_v26 = vadd.f32 %v2738_v14, %v1103_v16  ;;  %v2754_v55 = vpop.f32.mrf.mxu3  ;;  %v10057_v14 = vld [vmem:[#allocation14 + $0x100] sm:$0xf0] }
 0x296   :  { %v8743_v15 = vor.u32 %v10235_v4, %v8740_v38  ;;  %v8018_v4 = vld [vmem:[#allocation14 + $0xe8] sm:$0xf]  ;;  %v10200_v38 = vld [vmem:[#allocation14 + $0x57c] sm:$0xf] }
 0x297   :  { %5896 = vmatpush.bf16.msrb.mxu3 %v9191_v7  ;;  %v2780_v5 = vpop.f32.mrf.mxu1  ;;  %v2753_v44 = vadd.f32 %v2752_v25, %v2739_v26  ;;  %v8631_v7 = vor.u32 %v10207_v62, %v8628_v22  ;;  %v8603_v53 = vor.u32 %v10200_v38, %v8600_v13  ;;  %v10193_v26 = vld [vmem:[#allocation14 + $0x544] sm:$0xf]  ;;  %v1104_v62 = vperm.slane %v11057_v34, 7 }
 0x298   :  { %5868 = vmatpush.bf16.msrb.mxu1 %v8743_v15 }
 0x299   :  { %5883 = vmatpush.bf16.msrb.mxu2 %v8939_v12  ;;  %5859 = vmatpush.bf16.msrb.mxu0 %v8379_v10  ;;  %v10228_v12 = vld [vmem:[#allocation14 + $0x65c] sm:$0xf] }
 0x29a   :  { %v8715_v42 = vor.u32 %v10228_v12, %v8712_v2  ;;  %v9020_v12 = vld [vmem:[#allocation14 + $0x8dc] sm:$0xf0]  ;;  %v7990_v2 = vld [vmem:[#allocation14 + $0xb0] sm:$0xf] }
 0x29b   :  { %5897 = vmatpush.bf16.msrb.mxu3 %v9163_v19  ;;  %v2740_v35 = vpop.f32.mrf.mxu2  ;;  %v7991_v27 = vor.u32 %v10050_v11, %v7990_v2  ;;  %v8970_v11 = vld [vmem:[#allocation14 + $0x858] sm:$0xf] }
 0x29c   :  { %5869 = vmatpush.bf16.msrb.mxu1 %v8715_v42  ;;  %v2741_v57 = vadd.f32 %v2740_v35, %v1103_v16  ;;  %v8019_v16 = vor.u32 %v10057_v14, %v8018_v4  ;;  %v10134_v42 = vld [vmem:[#allocation14 + $0x368] sm:$0xf0] }
 0x29d   :  { %5884 = vmatpush.bf16.msrb.mxu2 %v8911_v39  ;;  %5860 = vmatpush.bf16.msrb.mxu0 %v8351_v6  ;;  %v8074_v39 = vld [vmem:[#allocation14 + $0x158] sm:$0xf]  ;;  %v2766_v10 = vpop.f32.mrf.mxu0  ;;  %v9079_v6 = vor.u32 %v10319_v52, %v9076_v41  ;;  %v7934_v52 = vld [vmem:[#allocation14 + $0x40] sm:$0xf]  ;;  %v10302_v4 = vld [vmem:[#allocation14 + $0x8a8] sm:$0xf0] }
 0x29e   :  { %v8075_v31 = vor.u32 %v10071_v40, %v8074_v39  ;;  %v2767_v58 = vadd.f32 %v2766_v10, %v2753_v44  ;;  %v2755_v1 = vadd.f32 %v2754_v55, %v2741_v57  ;;  %v9443_v39 = vor.u32 %v10410_v29, %v9440_v21  ;;  %v8298_v40 = vld [vmem:[#allocation14 + $0x318] sm:$0xf]  ;;  %v10403_v44 = vld [vmem:[#allocation14 + $0xbd4] sm:$0xf]  ;;  %v10036_v57 = vld [vmem:[#allocation14 + $0x58] sm:$0xf0] }
 0x29f   :  { %5898 = vmatpush.bf16.msrb.mxu3 %v9135_v28  ;;  %v2782_v30 = vpop.f32.mrf.mxu1  ;;  %v8270_v41 = vld [vmem:[#allocation14 + $0x2e0] sm:$0xf]  ;;  %v7935_v22 = vor.u32 %v10036_v57, %v7934_v52  ;;  %v10295_v29 = vld [vmem:[#allocation14 + $0x870] sm:$0xf0]  ;;  %v8914_v52 = vld [vmem:[#allocation14 + $0x7e8] sm:$0xf] }
 0x2a0   :  { %5870 = vmatpush.bf16.msrb.mxu1 %v8687_v43  ;;  %v2781_v0 = vadd.f32 %v2780_v5, %v2767_v58  ;;  %v7962_v5 = vld [vmem:[#allocation14 + $0x78] sm:$0xf]  ;;  %v10127_v43 = vld [vmem:[#allocation14 + $0x330] sm:$0xf0]  ;;  %v9415_v58 = vor.u32 %v10403_v44, %v9412_v45  ;;  %v8271_v55 = vor.u32 %v10120_v54, %v8270_v41  ;;  %v10368_v44 = vld [vmem:[#allocation14 + $0xabc] sm:$0xf] }
 0x2a1   :  { %5885 = vmatpush.bf16.msrb.mxu2 %v8883_v47  ;;  %v9107_v47 = vor.u32 %v10326_v33, %v9104_v23  ;;  %v8327_v33 = vor.u32 %v10134_v42, %v8326_v17  ;;  %v10043_v23 = vld [vmem:[#allocation14 + $0x90] sm:$0xf0]  ;;  %v8158_v45 = vld [vmem:[#allocation14 + $0x200] sm:$0xf]  ;;  %v10281_v57 = vld [vmem:[#allocation14 + $0x800] sm:$0xf0] }
 0x2a2   :  { %5847 = vmatmul.bf16.vlgmr.msra.gmra.mxu3 %v11023_v18  ;;  %v2847_v19 = vmul.f32 0.2, %v2781_v0  ;;  %v7963_v50 = vor.u32 %v10043_v23, %v7962_v5  ;;  %v10375_v17 = vld [vmem:[#allocation14 + $0xaf4] sm:$0xf] }
 0x2a3   :  { %5899 = vmatpush.bf16.msrb.mxu3 %v9107_v47 }
 0x2a4   :  { %5871 = vmatpush.bf16.msrb.mxu1 %v8659_v59  ;;  %v2863_v28 = vmax.f32 %v2781_v0, %v2847_v19  ;;  %v9384_v59 = vld [vmem:[#allocation14 + $0xbb4] sm:$0xf0] }
 0x2a5   :  { %5886 = vmatpush.bf16.msrb.mxu2 %v8855_v3  ;;  %v9048_v3 = vld [vmem:[#allocation14 + $0x914] sm:$0xf0]  ;;  %v2768_v8 = vpop.f32.mrf.mxu0  ;;  %v9387_v0 = vor.u32 %v10396_v37, %v9384_v59  ;;  %v10361_v37 = vld [vmem:[#allocation14 + $0xa84] sm:$0xf]  ;;  %v9244_v59 = vld [vmem:[#allocation14 + $0xa9c] sm:$0xf0] }
 0x2a6   :  { %v2769_v9 = vadd.f32 %v2768_v8, %v2755_v1  ;;  %v9051_v15 = vor.u32 %v10312_v46, %v9048_v3  ;;  %v8242_v46 = vld [vmem:[#allocation14 + $0x2a8] sm:$0xf]  ;;  %v10113_v1 = vld [vmem:[#allocation14 + $0x2c0] sm:$0xf0]  ;;  %v8998_v3 = vld [vmem:[#allocation14 + $0x890] sm:$0xf] }
 0x2a7   :  { %5900 = vmatpush.bf16.msrb.mxu3 %v9079_v6  ;;  %v7906_v6 = vld [vmem:[#allocation14 + $0x8] sm:$0xf]  ;;  %v9356_v8 = vld [vmem:[#allocation14 + $0xb7c] sm:$0xf0]  ;;  %v8243_v34 = vor.u32 %v10113_v1, %v8242_v46  ;;  %v8999_v13 = vor.u32 %v10302_v4, %v8998_v3  ;;  %v10085_v46 = vld [vmem:[#allocation14 + $0x1e0] sm:$0xf0] }
 0x2a8   :  { %v2783_v20 = vadd.f32 %v2782_v30, %v2769_v9  ;;  %5872 = vmatpush.bf16.msrb.mxu1 %v8631_v7  ;;  %v10389_v7 = vld [vmem:[#allocation14 + $0xb64] sm:$0xf]  ;;  %v10274_v1 = vld [vmem:[#allocation14 + $0x7c8] sm:$0xf0] }
 0x2a9   :  { %5887 = vmatpush.bf16.msrb.mxu2 %v8827_v56  ;;  %v10305_v56 = vld [vmem:[#allocation14 + $0x8c4] sm:$0xf]  ;;  %v10466_v3 = vld [vmem:[#allocation14 + $0xdcc] sm:$0xf] }
 0x2aa   :  { %v2855_v25 = vmul.f32 0.2, %v2783_v20  ;;  %v9023_v60 = vor.u32 %v10305_v56, %v9020_v12  ;;  %v8214_v56 = vld [vmem:[#allocation14 + $0x270] sm:$0xf]  ;;  %v10106_v12 = vld [vmem:[#allocation14 + $0x288] sm:$0xf0] }
 0x2ab   :  { %5901 = vmatpush.bf16.msrb.mxu3 %v9051_v15  ;;  %v9359_v15 = vor.u32 %v10389_v7, %v9356_v8  ;;  %v8215_v21 = vor.u32 %v10106_v12, %v8214_v56  ;;  %v10190_v7 = vld [vmem:[#allocation14 + $0x528] sm:$0xf0]  ;;  %v9247_v8 = vor.u32 %v10361_v37, %v9244_v59  ;;  %v8858_v12 = vld [vmem:[#allocation14 + $0x778] sm:$0xf]  ;;  %v9580_v37 = vld [vmem:[#allocation14 + $0xd3c] sm:$0xf0] }
 0x2ac   :  { %5873 = vmatpush.bf16.msrb.mxu1 %v8603_v53  ;;  %v9138_v59 = vld [vmem:[#allocation14 + $0x9a8] sm:$0xf] }
 0x2ad   :  { %5888 = vmatpush.bf16.msrb.mxu2 %v8799_v49  ;;  %v8572_v49 = vld [vmem:[#allocation14 + $0x55c] sm:$0xf0]  ;;  %v2808_v14 = vpop.f32.mrf.mxu3 }
 0x2ae   :  { %v8575_v35 = vor.u32 %v10193_v26, %v8572_v49  ;;  %v8971_v49 = vor.u32 %v10295_v29, %v8970_v11  ;;  %v10459_v29 = vld [vmem:[#allocation14 + $0xd94] sm:$0xf] }
 0x2af   :  { %5902 = vmatpush.bf16.msrb.mxu3 %v9023_v60  ;;  %v9300_v60 = vld [vmem:[#allocation14 + $0xb0c] sm:$0xf0] }
 0x2b0   :  { %5889 = vmatmul.bf16.vlgmr.msrb.gmra.mxu2 %v11049_v61  ;;  %5874 = vmatpush.bf16.msrb.mxu1 %v8575_v35  ;;  %v9303_v23 = vor.u32 %v10375_v17, %v9300_v60  ;;  %v9636_v17 = vld [vmem:[#allocation14 + $0xdac] sm:$0xf0]  ;;  %v8830_v60 = vld [vmem:[#allocation14 + $0x740] sm:$0xf] }
 0x2b1   :  { %5937 = vmatpush.bf16.msra.mxu2 %v8103_v24  ;;  %v2871_v24 = vmax.f32 %v2783_v20, %v2855_v25  ;;  %v9328_v20 = vld [vmem:[#allocation14 + $0xb44] sm:$0xf0] }
 0x2b2   :  { %5903 = vmatmul.bf16.vlgmr.msrb.gmra.mxu3 %v11054_v63 }
 0x2b3   :  { %v11062_v10 = vpack.c.bf16 %v2871_v24, %v2863_v28  ;;  %v2794_v47 = vpop.f32.mrf.mxu2  ;;  %5951 = vmatpush.bf16.msra.mxu3 %v8327_v33  ;;  %v10099_v28 = vld [vmem:[#allocation14 + $0x250] sm:$0xf0]  ;;  %v8942_v24 = vld [vmem:[#allocation14 + $0x820] sm:$0xf]  ;;  %v10288_v33 = vld [vmem:[#allocation14 + $0x838] sm:$0xf0] }
 0x2b4   :  { %v2795_v9 = vadd.f32 %v2794_v47, %v1104_v62  ;;  %v8943_v35 = vor.u32 %v10288_v33, %v8942_v24  ;;  %v10452_v33 = vld [vmem:[#allocation14 + $0xd5c] sm:$0xf] }
 0x2b5   :  { %5938 = vmatpush.bf16.msra.mxu2 %v8075_v31  ;;  %5805 = vmatmul.bf16.vlgmr.msra.gmra.mxu0 %v11062_v10  ;;  %v8299_v31 = vor.u32 %v10127_v43, %v8298_v40  ;;  %v2810_v5 = vpop.f32.mrf.mxu3 }
 0x2b6   :  { %5909 = vmatpush.bf16.msra.mxu0 %v9443_v39  ;;  %v2809_v53 = vadd.f32 %v2808_v14, %v2795_v9  ;;  %v8550_v14 = vld [vmem:[#allocation14 + $0x510] sm:$0xf] }
 0x2b7   :  { %5952 = vmatpush.bf16.msra.mxu3 %v8299_v31  ;;  %v2836_v30 = vpop.f32.mrf.mxu1  ;;  %v9272_v31 = vld [vmem:[#allocation14 + $0xad4] sm:$0xf0]  ;;  %v8551_v56 = vor.u32 %v10190_v7, %v8550_v14  ;;  %v9110_v14 = vld [vmem:[#allocation14 + $0x970] sm:$0xf]  ;;  %v10330_v7 = vld [vmem:[#allocation14 + $0x988] sm:$0xf0] }
 0x2b9   :  { %5939 = vmatpush.bf16.msra.mxu2 %v8047_v36  ;;  %v10029_v36 = vld [vmem:[#allocation14 + $0x20] sm:$0xf0] }
 0x2ba   :  { %5910 = vmatpush.bf16.msra.mxu0 %v9415_v58  ;;  %v7907_v38 = vor.u32 %v10029_v36, %v7906_v6  ;;  %v8915_v6 = vor.u32 %v10281_v57, %v8914_v52  ;;  %v8130_v36 = vld [vmem:[#allocation14 + $0x1c8] sm:$0xf] }
 0x2bb   :  { %5953 = vmatpush.bf16.msra.mxu3 %v8271_v55  ;;  %v2796_v2 = vpop.f32.mrf.mxu2  ;;  %v9275_v55 = vor.u32 %v10368_v44, %v9272_v31  ;;  %v8131_v9 = vor.u32 %v10085_v46, %v8130_v36  ;;  %v8802_v44 = vld [vmem:[#allocation14 + $0x708] sm:$0xf] }
 0x2bc   :  { %v2797_v42 = vadd.f32 %v2796_v2, %v1104_v62  ;;  %v10267_v2 = vld [vmem:[#allocation14 + $0x790] sm:$0xf0]  ;;  %v8466_v31 = vld [vmem:[#allocation14 + $0x468] sm:$0xf] }
 0x2bd   :  { %5940 = vmatpush.bf16.msra.mxu2 %v8019_v16  ;;  %v10382_v16 = vld [vmem:[#allocation14 + $0xb2c] sm:$0xf]  ;;  %v2822_v19 = vpop.f32.mrf.mxu0 }
 0x2be   :  { %5911 = vmatpush.bf16.msra.mxu0 %v9387_v0  ;;  %v2823_v25 = vadd.f32 %v2822_v19, %v2809_v53  ;;  %v9331_v26 = vor.u32 %v10382_v16, %v9328_v20  ;;  %v2811_v43 = vadd.f32 %v2810_v5, %v2797_v42  ;;  %v8886_v0 = vld [vmem:[#allocation14 + $0x7b0] sm:$0xf]  ;;  %v8522_v53 = vld [vmem:[#allocation14 + $0x4d8] sm:$0xf]  ;;  %v8494_v5 = vld [vmem:[#allocation14 + $0x4a0] sm:$0xf] }
 0x2bf   :  { %5954 = vmatpush.bf16.msra.mxu3 %v8243_v34  ;;  %v2838_v41 = vpop.f32.mrf.mxu1  ;;  %v9222_v34 = vld [vmem:[#allocation14 + $0xa50] sm:$0xf]  ;;  %v8887_v16 = vor.u32 %v10274_v1, %v8886_v0  ;;  %v9194_v42 = vld [vmem:[#allocation14 + $0xa18] sm:$0xf]  ;;  %v10438_v0 = vld [vmem:[#allocation14 + $0xcec] sm:$0xf] }
 0x2c0   :  { %v2837_v40 = vadd.f32 %v2836_v30, %v2823_v25  ;;  %v10351_v25 = vld [vmem:[#allocation14 + $0xa30] sm:$0xf0]  ;;  %v8438_v1 = vld [vmem:[#allocation14 + $0x430] sm:$0xf] }
 0x2c1   :  { %5941 = vmatpush.bf16.msra.mxu2 %v7991_v27  ;;  %v8186_v27 = vld [vmem:[#allocation14 + $0x238] sm:$0xf]  ;;  %v9195_v24 = vor.u32 %v10351_v25, %v9194_v42  ;;  %v10424_v42 = vld [vmem:[#allocation14 + $0xc7c] sm:$0xf]  ;;  %v8382_v25 = vld [vmem:[#allocation14 + $0x3c0] sm:$0xf] }
 0x2c2   :  { %5912 = vmatpush.bf16.msra.mxu0 %v9359_v15  ;;  %v8187_v39 = vor.u32 %v10099_v28, %v8186_v27  ;;  %v2848_v62 = vmul.f32 0.2, %v2837_v40  ;;  %v10260_v27 = vld [vmem:[#allocation14 + $0x758] sm:$0xf0]  ;;  %v9639_v28 = vor.u32 %v10459_v29, %v9636_v17  ;;  %v8048_v29 = vld [vmem:[#allocation14 + $0x13c] sm:$0xf0] }
 0x2c3   :  { %5955 = vmatpush.bf16.msra.mxu3 %v8215_v21  ;;  %v10183_v21 = vld [vmem:[#allocation14 + $0x4f0] sm:$0xf0] }
 0x2c4   :  { %v2864_v30 = vmax.f32 %v2837_v40, %v2848_v62  ;;  %v9166_v40 = vld [vmem:[#allocation14 + $0x9e0] sm:$0xf]  ;;  %v10337_v62 = vld [vmem:[#allocation14 + $0x9c0] sm:$0xf0] }
 0x2c5   :  { %5942 = vmatpush.bf16.msra.mxu2 %v7963_v50  ;;  %5861 = vmatmul.bf16.vlgmr.msrb.gmra.mxu0 %v11045_v48  ;;  %v10092_v50 = vld [vmem:[#allocation14 + $0x218] sm:$0xf0]  ;;  %v2824_v47 = vpop.f32.mrf.mxu0  ;;  %v9139_v46 = vor.u32 %v10337_v62, %v9138_v59  ;;  %v10131_v59 = vld [vmem:[#allocation14 + $0x354] sm:$0xf]  ;;  %v8328_v62 = vld [vmem:[#allocation14 + $0x36c] sm:$0xf0] }
 0x2c6   :  { %5913 = vmatpush.bf16.msra.mxu0 %v9331_v26  ;;  %v2825_v58 = vadd.f32 %v2824_v47, %v2811_v43  ;;  %v8159_v54 = vor.u32 %v10092_v50, %v8158_v45  ;;  %v8859_v26 = vor.u32 %v10267_v2, %v8858_v12  ;;  %v10344_v43 = vld [vmem:[#allocation14 + $0x9f8] sm:$0xf0]  ;;  %v10253_v50 = vld [vmem:[#allocation14 + $0x720] sm:$0xf0]  ;;  %v9524_v12 = vld [vmem:[#allocation14 + $0xccc] sm:$0xf0] }
 0x2c7   :  { %5956 = vmatpush.bf16.msra.mxu3 %v8187_v39  ;;  %v9608_v39 = vld [vmem:[#allocation14 + $0xd74] sm:$0xf0]  ;;  %v10445_v47 = vld [vmem:[#allocation14 + $0xd24] sm:$0xf]  ;;  %v9167_v57 = vor.u32 %v10344_v43, %v9166_v40 }
 0x2c8   :  { %v9611_v52 = vor.u32 %v10452_v33, %v9608_v39  ;;  %v9583_v36 = vor.u32 %v10445_v47, %v9580_v37  ;;  %v9082_v2 = vld [vmem:[#allocation14 + $0x938] sm:$0xf]  ;;  %v8020_v33 = vld [vmem:[#allocation14 + $0x104] sm:$0xf0]  ;;  %v9468_v39 = vld [vmem:[#allocation14 + $0xc5c] sm:$0xf0] }
 0x2c9   :  { %5943 = vmatpush.bf16.msra.mxu2 %v7935_v22  ;;  %v2839_v22 = vadd.f32 %v2838_v41, %v2825_v58  ;;  %v10169_v58 = vld [vmem:[#allocation14 + $0x480] sm:$0xf0]  ;;  %v10075_v41 = vld [vmem:[#allocation14 + $0x194] sm:$0xf]  ;;  %v10414_v37 = vld [vmem:[#allocation14 + $0xc28] sm:$0xf0] }
 0x2ca   :  { %5914 = vmatpush.bf16.msra.mxu0 %v9303_v23  ;;  %v10176_v23 = vld [vmem:[#allocation14 + $0x4b8] sm:$0xf0]  ;;  %v10309_v47 = vld [vmem:[#allocation14 + $0x8e0] sm:$0xf0] }
 0x2cb   :  { %v2856_v4 = vmul.f32 0.2, %v2839_v22  ;;  %5957 = vmatpush.bf16.msra.mxu3 %v8159_v54  ;;  %v8495_v45 = vor.u32 %v10176_v23, %v8494_v5  ;;  %v8104_v54 = vld [vmem:[#allocation14 + $0x1ac] sm:$0xf0]  ;;  %v10417_v23 = vld [vmem:[#allocation14 + $0xc44] sm:$0xf] }
 0x2cd   :  { %5944 = vmatpush.bf16.msra.mxu2 %v7907_v38  ;;  %v9664_v38 = vld [vmem:[#allocation14 + $0xde4] sm:$0xf0]  ;;  %v2872_v15 = vmax.f32 %v2839_v22, %v2856_v4  ;;  %v8803_v22 = vor.u32 %v10253_v50, %v8802_v44  ;;  %v10141_v44 = vld [vmem:[#allocation14 + $0x3a0] sm:$0xf0] }
 0x2ce   :  { %5915 = vmatpush.bf16.msra.mxu0 %v9275_v55  ;;  %v9667_v20 = vor.u32 %v10466_v3, %v9664_v38  ;;  %v8467_v55 = vor.u32 %v10169_v58, %v8466_v31  ;;  %v10162_v3 = vld [vmem:[#allocation14 + $0x448] sm:$0xf0]  ;;  %v9552_v4 = vld [vmem:[#allocation14 + $0xd04] sm:$0xf0]  ;;  %v10047_v31 = vld [vmem:[#allocation14 + $0xb4] sm:$0xf] }
 0x2cf   :  { %v11069_v19 = vpack.c.bf16 %v2872_v15, %v2864_v30  ;;  %5958 = vmatpush.bf16.msra.mxu3 %v8131_v9  ;;  %v8076_v9 = vld [vmem:[#allocation14 + $0x174] sm:$0xf0]  ;;  %v8439_v38 = vor.u32 %v10162_v3, %v8438_v1  ;;  %v10431_v30 = vld [vmem:[#allocation14 + $0xcb4] sm:$0xf]  ;;  %v10246_v58 = vld [vmem:[#allocation14 + $0x6e8] sm:$0xf0]  ;;  %v8331_v3 = vor.u32 %v10131_v59, %v8328_v62 }
 0x2d0   :  { %5945 = vmatmul.bf16.vlgmr.msra.gmra.mxu2 %v11030_v51  ;;  %v8410_v15 = vld [vmem:[#allocation14 + $0x3f8] sm:$0xf] }
 0x2d1   :  { %5993 = vmatpush.bf16.msrb.mxu2 %v8999_v13  ;;  %v10358_v13 = vld [vmem:[#allocation14 + $0xa68] sm:$0xf0]  ;;  %5819 = vmatmul.bf16.vlgmr.msra.gmra.mxu1 %v11069_v19 }
 0x2d2   :  { %v9223_v11 = vor.u32 %v10358_v13, %v9222_v34  ;;  %5916 = vmatpush.bf16.msra.mxu0 %v9247_v8  ;;  %5923 = vmatpush.bf16.msra.mxu1 %v9667_v20  ;;  %v10068_v8 = vld [vmem:[#allocation14 + $0x15c] sm:$0xf]  ;;  %v9555_v34 = vor.u32 %v10438_v0, %v9552_v4  ;;  %v9111_v13 = vor.u32 %v10330_v7, %v9110_v14  ;;  %v10323_v20 = vld [vmem:[#allocation14 + $0x950] sm:$0xf0]  ;;  %v7964_v0 = vld [vmem:[#allocation14 + $0x94] sm:$0xf0] }
 0x2d3   :  { %5959 = vmatmul.bf16.vlgmr.msra.gmra.mxu3 %v11023_v18  ;;  %v9083_v17 = vor.u32 %v10323_v20, %v9082_v2  ;;  %v8746_v4 = vld [vmem:[#allocation14 + $0x698] sm:$0xf]  ;;  %v10239_v14 = vld [vmem:[#allocation14 + $0x6b0] sm:$0xf0]  ;;  %v10232_v2 = vld [vmem:[#allocation14 + $0x678] sm:$0xf0] }
 0x2d4   :  { %6007 = vmatpush.bf16.msrb.mxu3 %v9223_v11  ;;  %v10061_v11 = vld [vmem:[#allocation14 + $0x124] sm:$0xf]  ;;  %v9418_v7 = vld [vmem:[#allocation14 + $0xbd8] sm:$0xf]  ;;  %v9390_v20 = vld [vmem:[#allocation14 + $0xba0] sm:$0xf] }
 0x2d5   :  { %5994 = vmatpush.bf16.msrb.mxu2 %v8971_v49  ;;  %v8523_v49 = vor.u32 %v10183_v21, %v8522_v53  ;;  %5917 = vmatmul.bf16.vlgmr.msra.gmra.mxu0 %v11062_v10  ;;  %v9527_v21 = vor.u32 %v10431_v30, %v9524_v12  ;;  %v10033_v30 = vld [vmem:[#allocation14 + $0x44] sm:$0xf]  ;;  %v8718_v12 = vld [vmem:[#allocation14 + $0x660] sm:$0xf] }
 0x2d6   :  { %5965 = vmatpush.bf16.msrb.mxu0 %v8551_v56  ;;  %5924 = vmatpush.bf16.msra.mxu1 %v9639_v28  ;;  %v8079_v56 = vor.u32 %v10068_v8, %v8076_v9  ;;  %v10316_v28 = vld [vmem:[#allocation14 + $0x918] sm:$0xf0]  ;;  %v10407_v8 = vld [vmem:[#allocation14 + $0xbf0] sm:$0xf0] }
 0x2d7   :  { %v10124_v9 = vld [vmem:[#allocation14 + $0x31c] sm:$0xf] }
 0x2d8   :  { %6008 = vmatpush.bf16.msrb.mxu3 %v9195_v24  ;;  %v10054_v24 = vld [vmem:[#allocation14 + $0xec] sm:$0xf] }
 0x2d9   :  { %5995 = vmatpush.bf16.msrb.mxu2 %v8943_v35  ;;  %v8831_v35 = vor.u32 %v10260_v27, %v8830_v60  ;;  %v9496_v60 = vld [vmem:[#allocation14 + $0xc94] sm:$0xf0]  ;;  %v9054_v27 = vld [vmem:[#allocation14 + $0x900] sm:$0xf]  ;;  %v8023_v50 = vor.u32 %v10054_v24, %v8020_v33  ;;  %v10393_v24 = vld [vmem:[#allocation14 + $0xb80] sm:$0xf0] }
 0x2da   :  { %5966 = vmatpush.bf16.msrb.mxu0 %v8523_v49  ;;  %5925 = vmatpush.bf16.msra.mxu1 %v9611_v52  ;;  %v8051_v49 = vor.u32 %v10061_v11, %v8048_v29  ;;  %v9499_v40 = vor.u32 %v10424_v42, %v9496_v60  ;;  %v9055_v43 = vor.u32 %v10316_v28, %v9054_v27  ;;  %v7992_v52 = vld [vmem:[#allocation14 + $0xcc] sm:$0xf0]  ;;  %v10400_v11 = vld [vmem:[#allocation14 + $0xbb8] sm:$0xf0]  ;;  %v10117_v29 = vld [vmem:[#allocation14 + $0x2e4] sm:$0xf] }
 0x2db   :  { %v10026_v42 = vld [vmem:[#allocation14 + $0xc] sm:$0xf]  ;;  %v8690_v60 = vld [vmem:[#allocation14 + $0x628] sm:$0xf]  ;;  %v10225_v27 = vld [vmem:[#allocation14 + $0x640] sm:$0xf0] }
 0x2dc   :  { %6009 = vmatpush.bf16.msrb.mxu3 %v9167_v57  ;;  %v8774_v57 = vld [vmem:[#allocation14 + $0x6d0] sm:$0xf]  ;;  %v9362_v28 = vld [vmem:[#allocation14 + $0xb68] sm:$0xf]  ;;  %v10110_v33 = vld [vmem:[#allocation14 + $0x2ac] sm:$0xf] }
 0x2dd   :  { %5996 = vmatpush.bf16.msrb.mxu2 %v8915_v6  ;;  %v8107_v6 = vor.u32 %v10075_v41, %v8104_v54  ;;  %v9446_v41 = vld [vmem:[#allocation14 + $0xc10] sm:$0xf] }
 0x2de   :  { %5967 = vmatpush.bf16.msrb.mxu0 %v8495_v45  ;;  %5926 = vmatpush.bf16.msra.mxu1 %v9583_v36  ;;  %v9026_v45 = vld [vmem:[#allocation14 + $0x8c8] sm:$0xf]  ;;  %v8775_v36 = vor.u32 %v10246_v58, %v8774_v57  ;;  %v9447_v1 = vor.u32 %v10414_v37, %v9446_v41  ;;  %v10103_v57 = vld [vmem:[#allocation14 + $0x274] sm:$0xf]  ;;  %v8216_v58 = vld [vmem:[#allocation14 + $0x28c] sm:$0xf0] }
 0x2df   :  { %v10292_v41 = vld [vmem:[#allocation14 + $0x85c] sm:$0xf]  ;;  %v8219_v62 = vor.u32 %v10103_v57, %v8216_v58  ;;  %v10463_v57 = vld [vmem:[#allocation14 + $0xdb0] sm:$0xf0] }
 0x2e0   :  { %6010 = vmatpush.bf16.msrb.mxu3 %v9139_v46  ;;  %v10040_v46 = vld [vmem:[#allocation14 + $0x7c] sm:$0xf] }
 0x2e1   :  { %5997 = vmatpush.bf16.msrb.mxu2 %v8887_v16  ;;  %v10155_v16 = vld [vmem:[#allocation14 + $0x410] sm:$0xf0]  ;;  %5875 = vmatmul.bf16.vlgmr.msrb.gmra.mxu1 %v11042_v32  ;;  %v10180_v58 = vld [vmem:[#allocation14 + $0x4dc] sm:$0xf] }
 0x2e2   :  { %5968 = vmatpush.bf16.msrb.mxu0 %v8467_v55  ;;  %v8411_v53 = vor.u32 %v10155_v16, %v8410_v15  ;;  %5927 = vmatpush.bf16.msra.mxu1 %v9555_v34  ;;  %v9027_v55 = vor.u32 %v10309_v47, %v9026_v45  ;;  %v7967_v34 = vor.u32 %v10040_v46, %v7964_v0  ;;  %v7936_v15 = vld [vmem:[#allocation14 + $0x5c] sm:$0xf0]  ;;  %v8662_v45 = vld [vmem:[#allocation14 + $0x5f0] sm:$0xf]  ;;  %v10379_v46 = vld [vmem:[#allocation14 + $0xb10] sm:$0xf0] }
 0x2e3   :  { %v9419_v16 = vor.u32 %v10407_v8, %v9418_v7  ;;  %v9334_v47 = vld [vmem:[#allocation14 + $0xb30] sm:$0xf]  ;;  %v10096_v0 = vld [vmem:[#allocation14 + $0x23c] sm:$0xf] }
 0x2e4   :  { %6011 = vmatpush.bf16.msrb.mxu3 %v9111_v13  ;;  %v8747_v13 = vor.u32 %v10239_v14, %v8746_v4  ;;  %v8944_v4 = vld [vmem:[#allocation14 + $0x83c] sm:$0xf0] }
 0x2e5   :  { %5998 = vmatpush.bf16.msrb.mxu2 %v8859_v26  ;;  %v10148_v26 = vld [vmem:[#allocation14 + $0x3d8] sm:$0xf0] }
 0x2e6   :  { %5969 = vmatpush.bf16.msrb.mxu0 %v8439_v38  ;;  %v8383_v5 = vor.u32 %v10148_v26, %v8382_v25  ;;  %5928 = vmatpush.bf16.msra.mxu1 %v9527_v21  ;;  %v8300_v38 = vld [vmem:[#allocation14 + $0x334] sm:$0xf0]  ;;  %v7939_v21 = vor.u32 %v10033_v30, %v7936_v15  ;;  %v7908_v25 = vld [vmem:[#allocation14 + $0x24] sm:$0xf0]  ;;  %v9391_v26 = vor.u32 %v10400_v11, %v9390_v20  ;;  %v10372_v30 = vld [vmem:[#allocation14 + $0xad8] sm:$0xf0] }
 0x2e7   :  { %v10089_v15 = vld [vmem:[#allocation14 + $0x204] sm:$0xf]  ;;  %v8578_v20 = vld [vmem:[#allocation14 + $0x548] sm:$0xf] }
 0x2e8   :  { %6012 = vmatpush.bf16.msrb.mxu3 %v9083_v17  ;;  %v8719_v17 = vor.u32 %v10232_v2, %v8718_v12  ;;  %v8916_v12 = vld [vmem:[#allocation14 + $0x804] sm:$0xf0]  ;;  %v10197_v11 = vld [vmem:[#allocation14 + $0x560] sm:$0xf0] }
 0x2e9   :  { %5999 = vmatpush.bf16.msrb.mxu2 %v8831_v35  ;;  %v8354_v35 = vld [vmem:[#allocation14 + $0x388] sm:$0xf] }
 0x2ea   :  { %5970 = vmatpush.bf16.msrb.mxu0 %v8411_v53  ;;  %v8355_v54 = vor.u32 %v10141_v44, %v8354_v35  ;;  %5929 = vmatpush.bf16.msra.mxu1 %v9499_v40  ;;  %v8272_v53 = vld [vmem:[#allocation14 + $0x2fc] sm:$0xf0]  ;;  %v7911_v40 = vor.u32 %v10026_v42, %v7908_v25  ;;  %v9363_v35 = vor.u32 %v10393_v24, %v9362_v28  ;;  %v10082_v42 = vld [vmem:[#allocation14 + $0x1cc] sm:$0xf]  ;;  %v10187_v24 = vld [vmem:[#allocation14 + $0x514] sm:$0xf] }
 0x2eb   :  { %v10470_v28 = vld [vmem:[#allocation14 + $0xde8] sm:$0xf0] }
 0x2ec   :  { %6013 = vmatpush.bf16.msrb.mxu3 %v9055_v43  ;;  %v8691_v43 = vor.u32 %v10225_v27, %v8690_v60  ;;  %v8888_v60 = vld [vmem:[#allocation14 + $0x7cc] sm:$0xf0] }
 0x2ed   :  { %6000 = vmatpush.bf16.msrb.mxu2 %v8803_v22  ;;  %v9471_v22 = vor.u32 %v10417_v23, %v9468_v39  ;;  %v10299_v23 = vld [vmem:[#allocation14 + $0x894] sm:$0xf]  ;;  %v9000_v39 = vld [vmem:[#allocation14 + $0x8ac] sm:$0xf0] }
 0x2ee   :  { %5971 = vmatpush.bf16.msrb.mxu0 %v8383_v5  ;;  %v8244_v5 = vld [vmem:[#allocation14 + $0x2c4] sm:$0xf0]  ;;  %v9670_v27 = vld [vmem:[#allocation14 + $0xdd0] sm:$0xf] }
 0x2ef   :  { %5930 = vmatpush.bf16.msra.mxu1 %v9471_v22  ;;  %v8247_v44 = vor.u32 %v10110_v33, %v8244_v5  ;;  %v8634_v22 = vld [vmem:[#allocation14 + $0x5b8] sm:$0xf]  ;;  %v8579_v33 = vor.u32 %v10197_v11, %v8578_v20  ;;  %v8552_v5 = vld [vmem:[#allocation14 + $0x52c] sm:$0xf0]  ;;  %v10079_v11 = vld [vmem:[#allocation14 + $0x1b0] sm:$0xf0] }
 0x2f0   :  { %6001 = vmatmul.bf16.vlgmr.msrb.gmra.mxu2 %v11049_v61  ;;  %6014 = vmatpush.bf16.msrb.mxu3 %v9027_v55  ;;  %v10211_v55 = vld [vmem:[#allocation14 + $0x5d0] sm:$0xf0]  ;;  %v8110_v20 = vld [vmem:[#allocation14 + $0x198] sm:$0xf] }
 0x2f1   :  { %6049 = vmatpush.bf16.msra.mxu2 %v8107_v6  ;;  %v7995_v6 = vor.u32 %v10047_v31, %v7992_v52  ;;  %v9003_v31 = vor.u32 %v10299_v23, %v9000_v39  ;;  %v10386_v52 = vld [vmem:[#allocation14 + $0xb48] sm:$0xf0]  ;;  %v8635_v14 = vor.u32 %v10211_v55, %v8634_v22  ;;  %v10355_v23 = vld [vmem:[#allocation14 + $0xa54] sm:$0xf]  ;;  %v9224_v39 = vld [vmem:[#allocation14 + $0xa6c] sm:$0xf0] }
 0x2f2   :  { %5972 = vmatpush.bf16.msrb.mxu0 %v8355_v54  ;;  %5931 = vmatmul.bf16.vlgmr.msra.gmra.mxu1 %v11069_v19  ;;  %v8972_v54 = vld [vmem:[#allocation14 + $0x874] sm:$0xf0]  ;;  %v9335_v59 = vor.u32 %v10386_v52, %v9334_v47  ;;  %v8555_v47 = vor.u32 %v10187_v24, %v8552_v5  ;;  %v10257_v22 = vld [vmem:[#allocation14 + $0x744] sm:$0xf]  ;;  %v8832_v55 = vld [vmem:[#allocation14 + $0x75c] sm:$0xf0] }
 0x2f3   :  { %5979 = vmatpush.bf16.msrb.mxu1 %v8775_v36  ;;  %6015 = vmatmul.bf16.vlgmr.msrb.gmra.mxu3 %v11054_v63  ;;  %v8975_v36 = vor.u32 %v10292_v41, %v8972_v54  ;;  %v9642_v52 = vld [vmem:[#allocation14 + $0xd98] sm:$0xf]  ;;  %v10348_v54 = vld [vmem:[#allocation14 + $0xa1c] sm:$0xf]  ;;  %v8082_v24 = vld [vmem:[#allocation14 + $0x160] sm:$0xf] }
 0x2f4   :  { %6063 = vmatpush.bf16.msra.mxu3 %v8331_v3  ;;  %v10285_v3 = vld [vmem:[#allocation14 + $0x824] sm:$0xf]  ;;  %v8524_v41 = vld [vmem:[#allocation14 + $0x4f4] sm:$0xf0] }
 0x2f5   :  { %6050 = vmatpush.bf16.msra.mxu2 %v8079_v56  ;;  %v8303_v56 = vor.u32 %v10124_v9, %v8300_v38  ;;  %5973 = vmatmul.bf16.vlgmr.msrb.gmra.mxu0 %v11045_v48  ;;  %v8606_v9 = vld [vmem:[#allocation14 + $0x580] sm:$0xf]  ;;  %v10204_v38 = vld [vmem:[#allocation14 + $0x598] sm:$0xf0] }
 0x2f6   :  { %6021 = vmatpush.bf16.msra.mxu0 %v9447_v1  ;;  %v8188_v1 = vld [vmem:[#allocation14 + $0x254] sm:$0xf0]  ;;  %v8607_v2 = vor.u32 %v10204_v38, %v8606_v9  ;;  %v10250_v9 = vld [vmem:[#allocation14 + $0x70c] sm:$0xf]  ;;  %v8804_v38 = vld [vmem:[#allocation14 + $0x724] sm:$0xf0] }
 0x2f7   :  { %5980 = vmatpush.bf16.msrb.mxu1 %v8747_v13  ;;  %v8191_v8 = vor.u32 %v10096_v0, %v8188_v1  ;;  %v8947_v13 = vor.u32 %v10285_v3, %v8944_v4  ;;  %v10456_v0 = vld [vmem:[#allocation14 + $0xd78] sm:$0xf0]  ;;  %v10173_v1 = vld [vmem:[#allocation14 + $0x4a4] sm:$0xf]  ;;  %v8496_v3 = vld [vmem:[#allocation14 + $0x4bc] sm:$0xf0] }
 0x2f8   :  { %6064 = vmatpush.bf16.msra.mxu3 %v8303_v56  ;;  %v10278_v56 = vld [vmem:[#allocation14 + $0x7ec] sm:$0xf]  ;;  %v10341_v4 = vld [vmem:[#allocation14 + $0x9e4] sm:$0xf] }
 0x2f9   :  { %6051 = vmatpush.bf16.msra.mxu2 %v8051_v49  ;;  %v8275_v49 = vor.u32 %v10117_v29, %v8272_v53  ;;  %v8919_v25 = vor.u32 %v10278_v56, %v8916_v12  ;;  %v8468_v56 = vld [vmem:[#allocation14 + $0x484] sm:$0xf0]  ;;  %v10334_v12 = vld [vmem:[#allocation14 + $0x9ac] sm:$0xf] }
 0x2fa   :  { %6022 = vmatpush.bf16.msra.mxu0 %v9419_v16  ;;  %v8160_v16 = vld [vmem:[#allocation14 + $0x21c] sm:$0xf0] }
 0x2fb   :  { %5981 = vmatpush.bf16.msrb.mxu1 %v8719_v17  ;;  %v8163_v53 = vor.u32 %v10089_v15, %v8160_v16  ;;  %v10365_v17 = vld [vmem:[#allocation14 + $0xaa0] sm:$0xf0]  ;;  %v10166_v16 = vld [vmem:[#allocation14 + $0x46c] sm:$0xf] }
 0x2fc   :  { %6065 = vmatpush.bf16.msra.mxu3 %v8275_v49  ;;  %v10271_v49 = vld [vmem:[#allocation14 + $0x7b4] sm:$0xf]  ;;  %v10449_v15 = vld [vmem:[#allocation14 + $0xd40] sm:$0xf0] }
 0x2fd   :  { %6052 = vmatpush.bf16.msra.mxu2 %v8023_v50  ;;  %v10218_v50 = vld [vmem:[#allocation14 + $0x608] sm:$0xf0] }
 0x2fe   :  { %6023 = vmatpush.bf16.msra.mxu0 %v9391_v26  ;;  %v8663_v37 = vor.u32 %v10218_v50, %v8662_v45  ;;  %v8132_v26 = vld [vmem:[#allocation14 + $0x1e4] sm:$0xf0]  ;;  %v10264_v45 = vld [vmem:[#allocation14 + $0x77c] sm:$0xf]  ;;  %v8860_v50 = vld [vmem:[#allocation14 + $0x794] sm:$0xf0] }
 0x2ff   :  { %5982 = vmatpush.bf16.msrb.mxu1 %v8691_v43  ;;  %v8135_v43 = vor.u32 %v10082_v42, %v8132_v26  ;;  %v9558_v42 = vld [vmem:[#allocation14 + $0xcf0] sm:$0xf]  ;;  %v10159_v26 = vld [vmem:[#allocation14 + $0x434] sm:$0xf] }
 0x300   :  { %6066 = vmatpush.bf16.msra.mxu3 %v8247_v44  ;;  %v9671_v44 = vor.u32 %v10470_v28, %v9670_v27  ;;  %v10327_v27 = vld [vmem:[#allocation14 + $0x974] sm:$0xf]  ;;  %v9112_v28 = vld [vmem:[#allocation14 + $0x98c] sm:$0xf0] }
 0x301   :  { %6053 = vmatpush.bf16.msra.mxu2 %v7995_v6  ;;  %v9306_v6 = vld [vmem:[#allocation14 + $0xaf8] sm:$0xf] }
 0x302   :  { %6024 = vmatpush.bf16.msra.mxu0 %v9363_v35  ;;  %v9307_v7 = vor.u32 %v10379_v46, %v9306_v6  ;;  %v8891_v35 = vor.u32 %v10271_v49, %v8888_v60  ;;  %v8527_v6 = vor.u32 %v10180_v58, %v8524_v41  ;;  %v9614_v46 = vld [vmem:[#allocation14 + $0xd60] sm:$0xf]  ;;  %v8111_v49 = vor.u32 %v10079_v11, %v8110_v20  ;;  %v8440_v60 = vld [vmem:[#allocation14 + $0x44c] sm:$0xf0]  ;;  %v8334_v20 = vld [vmem:[#allocation14 + $0x358] sm:$0xf] }
 0x303   :  { %5983 = vmatpush.bf16.msrb.mxu1 %v8663_v37  ;;  %v9196_v37 = vld [vmem:[#allocation14 + $0xa34] sm:$0xf0]  ;;  %v10135_v11 = vld [vmem:[#allocation14 + $0x370] sm:$0xf0] }
 0x304   :  { %6067 = vmatpush.bf16.msra.mxu3 %v8219_v62  ;;  %v9643_v62 = vor.u32 %v10463_v57, %v9642_v52  ;;  %v10065_v52 = vld [vmem:[#allocation14 + $0x140] sm:$0xf0] }
 0x305   :  { %6054 = vmatpush.bf16.msra.mxu2 %v7967_v34  ;;  %v9278_v34 = vld [vmem:[#allocation14 + $0xac0] sm:$0xf] }
 0x306   :  { %6025 = vmatpush.bf16.msra.mxu0 %v9335_v59  ;;  %v9279_v29 = vor.u32 %v10372_v30, %v9278_v34  ;;  %v8863_v59 = vor.u32 %v10264_v45, %v8860_v50  ;;  %v8499_v34 = vor.u32 %v10173_v1, %v8496_v3  ;;  %v9586_v30 = vld [vmem:[#allocation14 + $0xd28] sm:$0xf]  ;;  %v8412_v45 = vld [vmem:[#allocation14 + $0x414] sm:$0xf0]  ;;  %v10320_v50 = vld [vmem:[#allocation14 + $0x93c] sm:$0xf] }
 0x307   :  { %5984 = vmatpush.bf16.msrb.mxu1 %v8635_v14  ;;  %v9168_v14 = vld [vmem:[#allocation14 + $0x9fc] sm:$0xf0]  ;;  %v9474_v1 = vld [vmem:[#allocation14 + $0xc48] sm:$0xf]  ;;  %v10421_v3 = vld [vmem:[#allocation14 + $0xc60] sm:$0xf0] }
 0x308   :  { %6068 = vmatpush.bf16.msra.mxu3 %v8191_v8  ;;  %v9615_v8 = vor.u32 %v10456_v0, %v9614_v46  ;;  %v10058_v46 = vld [vmem:[#allocation14 + $0x108] sm:$0xf0] }
 0x309   :  { %6055 = vmatpush.bf16.msra.mxu2 %v7939_v21  ;;  %v9250_v21 = vld [vmem:[#allocation14 + $0xa88] sm:$0xf] }
 0x30a   :  { %6026 = vmatpush.bf16.msra.mxu0 %v9307_v7  ;;  %v8835_v7 = vor.u32 %v10257_v22, %v8832_v55  ;;  %v8384_v22 = vld [vmem:[#allocation14 + $0x3dc] sm:$0xf0]  ;;  %v10313_v55 = vld [vmem:[#allocation14 + $0x904] sm:$0xf] }
 0x30b   :  { %5985 = vmatpush.bf16.msrb.mxu1 %v8607_v2  ;;  %v9140_v2 = vld [vmem:[#allocation14 + $0x9c4] sm:$0xf0] }
 0x30c   :  { %6069 = vmatpush.bf16.msra.mxu3 %v8163_v53  ;;  %v9587_v53 = vor.u32 %v10449_v15, %v9586_v30  ;;  %v10051_v30 = vld [vmem:[#allocation14 + $0xd0] sm:$0xf0] }
 0x30d   :  { %6056 = vmatpush.bf16.msra.mxu2 %v7911_v40  ;;  %v9251_v40 = vor.u32 %v10365_v17, %v9250_v21  ;;  %v8471_v21 = vor.u32 %v10166_v16, %v8468_v56  ;;  %v9143_v17 = vor.u32 %v10334_v12, %v9140_v2  ;;  %v10243_v15 = vld [vmem:[#allocation14 + $0x6d4] sm:$0xf]  ;;  %v8776_v16 = vld [vmem:[#allocation14 + $0x6ec] sm:$0xf0]  ;;  %v9475_v12 = vor.u32 %v10421_v3, %v9474_v1  ;;  %v9364_v1 = vld [vmem:[#allocation14 + $0xb84] sm:$0xf0] }
 0x30e   :  { %6027 = vmatpush.bf16.msra.mxu0 %v9279_v29  ;;  %v8807_v29 = vor.u32 %v10250_v9, %v8804_v38  ;;  %v10306_v9 = vld [vmem:[#allocation14 + $0x8cc] sm:$0xf]  ;;  %v10411_v56 = vld [vmem:[#allocation14 + $0xc14] sm:$0xf]  ;;  %v9448_v2 = vld [vmem:[#allocation14 + $0xc2c] sm:$0xf0] }
 0x30f   :  { %5986 = vmatpush.bf16.msrb.mxu1 %v8579_v33  ;;  %v10072_v33 = vld [vmem:[#allocation14 + $0x178] sm:$0xf0]  ;;  %v8250_v3 = vld [vmem:[#allocation14 + $0x2b0] sm:$0xf] }
 0x310   :  { %6057 = vmatmul.bf16.vlgmr.msra.gmra.mxu2 %v11030_v51  ;;  %6070 = vmatpush.bf16.msra.mxu3 %v8135_v43  ;;  %v10435_v43 = vld [vmem:[#allocation14 + $0xcd0] sm:$0xf0] }
 0x311   :  { %6105 = vmatpush.bf16.msrb.mxu2 %v9003_v31  ;;  %v9227_v31 = vor.u32 %v10355_v23, %v9224_v39  ;;  %v8443_v23 = vor.u32 %v10159_v26, %v8440_v60  ;;  %v9115_v39 = vor.u32 %v10327_v27, %v9112_v28  ;;  %v9451_v26 = vor.u32 %v10411_v56, %v9448_v2  ;;  %v10236_v60 = vld [vmem:[#allocation14 + $0x69c] sm:$0xf]  ;;  %v8748_v27 = vld [vmem:[#allocation14 + $0x6b4] sm:$0xf0]  ;;  %v9336_v2 = vld [vmem:[#allocation14 + $0xb4c] sm:$0xf0] }
 0x312   :  { %6028 = vmatpush.bf16.msra.mxu0 %v9251_v40  ;;  %5987 = vmatmul.bf16.vlgmr.msrb.gmra.mxu1 %v11042_v32  ;;  %v9530_v40 = vld [vmem:[#allocation14 + $0xcb8] sm:$0xf]  ;;  %v10404_v28 = vld [vmem:[#allocation14 + $0xbdc] sm:$0xf] }
 0x313   :  { %6035 = vmatpush.bf16.msra.mxu1 %v9671_v44  ;;  %6071 = vmatmul.bf16.vlgmr.msra.gmra.mxu3 %v11023_v18  ;;  %v8083_v44 = vor.u32 %v10072_v33, %v8082_v24  ;;  %v9531_v57 = vor.u32 %v10435_v43, %v9530_v40  ;;  %v9420_v24 = vld [vmem:[#allocation14 + $0xbf4] sm:$0xf0]  ;;  %v8306_v33 = vld [vmem:[#allocation14 + $0x320] sm:$0xf]  ;;  %v8751_v40 = vor.u32 %v10236_v60, %v8748_v27  ;;  %v7942_v43 = vld [vmem:[#allocation14 + $0x48] sm:$0xf] }
 0x314   :  { %6119 = vmatpush.bf16.msrb.mxu3 %v9227_v31  ;;  %v8054_v31 = vld [vmem:[#allocation14 + $0x128] sm:$0xf]  ;;  %v8636_v60 = vld [vmem:[#allocation14 + $0x5d4] sm:$0xf0]  ;;  %v10376_v27 = vld [vmem:[#allocation14 + $0xafc] sm:$0xf] }
 0x315   :  { %6106 = vmatpush.bf16.msrb.mxu2 %v8975_v36  ;;  %v9199_v36 = vor.u32 %v10348_v54, %v9196_v37  ;;  %6029 = vmatmul.bf16.vlgmr.msra.gmra.mxu0 %v11062_v10  ;;  %v9502_v54 = vld [vmem:[#allocation14 + $0xc80] sm:$0xf]  ;;  %v10428_v37 = vld [vmem:[#allocation14 + $0xc98] sm:$0xf0] }
 0x316   :  { %6077 = vmatpush.bf16.msrb.mxu0 %v8555_v47  ;;  %v9084_v47 = vld [vmem:[#allocation14 + $0x954] sm:$0xf0]  ;;  %v9503_v0 = vor.u32 %v10428_v37, %v9502_v54 }
 0x317   :  { %6036 = vmatpush.bf16.msra.mxu1 %v9643_v62  ;;  %v9087_v41 = vor.u32 %v10320_v50, %v9084_v47  ;;  %v8055_v62 = vor.u32 %v10065_v52, %v8054_v31  ;;  %v10229_v50 = vld [vmem:[#allocation14 + $0x664] sm:$0xf]  ;;  %v8720_v47 = vld [vmem:[#allocation14 + $0x67c] sm:$0xf0]  ;;  %v11086_v52 = vpop.f32.mrf.mxu3 }
 0x318   :  { %6120 = vmatpush.bf16.msrb.mxu3 %v9199_v36  ;;  %v8026_v36 = vld [vmem:[#allocation14 + $0xf0] sm:$0xf]  ;;  %v10397_v31 = vld [vmem:[#allocation14 + $0xba4] sm:$0xf]  ;;  %v8723_v37 = vor.u32 %v10229_v50, %v8720_v47 }
 0x319   :  { %6107 = vmatpush.bf16.msrb.mxu2 %v8947_v13  ;;  %v9171_v13 = vor.u32 %v10341_v4, %v9168_v14  ;;  %v8027_v38 = vor.u32 %v10058_v46, %v8026_v36  ;;  %v8692_v36 = vld [vmem:[#allocation14 + $0x644] sm:$0xf0]  ;;  %v10390_v46 = vld [vmem:[#allocation14 + $0xb6c] sm:$0xf]  ;;  %v10201_v47 = vld [vmem:[#allocation14 + $0x584] sm:$0xf] }
 0x31a   :  { %6078 = vmatpush.bf16.msrb.mxu0 %v8527_v6  ;;  %v9056_v6 = vld [vmem:[#allocation14 + $0x91c] sm:$0xf0] }
 0x31b   :  { %6037 = vmatpush.bf16.msra.mxu1 %v9615_v8  ;;  %v9059_v14 = vor.u32 %v10313_v55, %v9056_v6  ;;  %v8356_v8 = vld [vmem:[#allocation14 + $0x3a4] sm:$0xf0]  ;;  %v10222_v6 = vld [vmem:[#allocation14 + $0x62c] sm:$0xf] }
 0x31c   :  { %6121 = vmatpush.bf16.msrb.mxu3 %v9171_v13  ;;  %v7998_v13 = vld [vmem:[#allocation14 + $0xb8] sm:$0xf] }
 0x31d   :  { %6108 = vmatpush.bf16.msrb.mxu2 %v8919_v25  ;;  %v10442_v25 = vld [vmem:[#allocation14 + $0xd08] sm:$0xf0] }
 0x31e   :  { %6079 = vmatpush.bf16.msrb.mxu0 %v8499_v34  ;;  %v9559_v5 = vor.u32 %v10442_v25, %v9558_v42  ;;  %v9028_v34 = vld [vmem:[#allocation14 + $0x8e4] sm:$0xf0]  ;;  %v7970_v42 = vld [vmem:[#allocation14 + $0x80] sm:$0xf]  ;;  %v10044_v25 = vld [vmem:[#allocation14 + $0x98] sm:$0xf0] }
 0x31f   :  { %6038 = vmatpush.bf16.msra.mxu1 %v9587_v53  ;;  %v9031_v53 = vor.u32 %v10306_v9, %v9028_v34  ;;  %v9367_v34 = vor.u32 %v10390_v46, %v9364_v1  ;;  %v10194_v46 = vld [vmem:[#allocation14 + $0x54c] sm:$0xf]  ;;  %v8580_v1 = vld [vmem:[#allocation14 + $0x564] sm:$0xf0] }
 0x320   :  { %6122 = vmatpush.bf16.msrb.mxu3 %v9143_v17  ;;  %v8779_v17 = vor.u32 %v10243_v15, %v8776_v16  ;;  %v8664_v15 = vld [vmem:[#allocation14 + $0x60c] sm:$0xf0]  ;;  %v10383_v16 = vld [vmem:[#allocation14 + $0xb34] sm:$0xf] }
 0x321   :  { %6109 = vmatpush.bf16.msrb.mxu2 %v8891_v35  ;;  %v10152_v35 = vld [vmem:[#allocation14 + $0x3fc] sm:$0xf] }
 0x322   :  { %6080 = vmatpush.bf16.msrb.mxu0 %v8471_v21  ;;  %v8415_v58 = vor.u32 %v10152_v35, %v8412_v45  ;;  %v7999_v21 = vor.u32 %v10051_v30, %v7998_v13  ;;  %v10037_v35 = vld [vmem:[#allocation14 + $0x60] sm:$0xf0]  ;;  %v10215_v30 = vld [vmem:[#allocation14 + $0x5f4] sm:$0xf] }
 0x323   :  { %6039 = vmatpush.bf16.msra.mxu1 %v9559_v5  ;;  %v10128_v5 = vld [vmem:[#allocation14 + $0x338] sm:$0xf0]  ;;  %v7943_v54 = vor.u32 %v10037_v35, %v7942_v43 }
 0x324   :  { %6123 = vmatpush.bf16.msrb.mxu3 %v9115_v39  ;;  %v7971_v39 = vor.u32 %v10044_v25, %v7970_v42  ;;  %v8307_v45 = vor.u32 %v10128_v5, %v8306_v33  ;;  %v8667_v42 = vor.u32 %v10215_v30, %v8664_v15  ;;  %v9339_v25 = vor.u32 %v10383_v16, %v9336_v2  ;;  %v8194_v33 = vld [vmem:[#allocation14 + $0x240] sm:$0xf]  ;;  %v10100_v5 = vld [vmem:[#allocation14 + $0x258] sm:$0xf0]  ;;  %v10275_v30 = vld [vmem:[#allocation14 + $0x7d0] sm:$0xf0] }
 0x325   :  { %6110 = vmatpush.bf16.msrb.mxu2 %v8863_v59  ;;  %v10145_v59 = vld [vmem:[#allocation14 + $0x3c4] sm:$0xf]  ;;  %v8195_v50 = vor.u32 %v10100_v5, %v8194_v33  ;;  %v10467_v15 = vld [vmem:[#allocation14 + $0xdd4] sm:$0xf]  ;;  %v9672_v16 = vld [vmem:[#allocation14 + $0xdec] sm:$0xf0] }
 0x326   :  { %6081 = vmatpush.bf16.msrb.mxu0 %v8443_v23  ;;  %v8387_v4 = vor.u32 %v10145_v59, %v8384_v22  ;;  %v11084_v23 = vpop.f32.mrf.mxu2  ;;  %v7914_v59 = vld [vmem:[#allocation14 + $0x10] sm:$0xf]  ;;  %v10460_v5 = vld [vmem:[#allocation14 + $0xd9c] sm:$0xf] }
 0x327   :  { %6040 = vmatpush.bf16.msra.mxu1 %v9531_v57  ;;  %v9392_v57 = vld [vmem:[#allocation14 + $0xbbc] sm:$0xf0] }
 0x328   :  { %6124 = vmatpush.bf16.msrb.mxu3 %v9087_v41  ;;  %v10121_v41 = vld [vmem:[#allocation14 + $0x300] sm:$0xf0]  ;;  %v9395_v22 = vor.u32 %v10397_v31, %v9392_v57  ;;  %v8608_v31 = vld [vmem:[#allocation14 + $0x59c] sm:$0xf0] }
 0x329   :  { %6111 = vmatpush.bf16.msrb.mxu2 %v8835_v7  ;;  %v10138_v7 = vld [vmem:[#allocation14 + $0x38c] sm:$0xf]  ;;  %v10369_v57 = vld [vmem:[#allocation14 + $0xac4] sm:$0xf] }
 0x32a   :  { %6082 = vmatpush.bf16.msrb.mxu0 %v8415_v58  ;;  %v8278_v58 = vld [vmem:[#allocation14 + $0x2e8] sm:$0xf] }
 0x32b   :  { %6041 = vmatpush.bf16.msra.mxu1 %v9503_v0  ;;  %v8279_v55 = vor.u32 %v10121_v41, %v8278_v58  ;;  %v11091_v0 = vpop.f32.mrf.mxu0 }
 0x32c   :  { %6125 = vmatpush.bf16.msrb.mxu3 %v9059_v14  ;;  %v9006_v14 = vld [vmem:[#allocation14 + $0x898] sm:$0xf] }
 0x32d   :  { %6112 = vmatpush.bf16.msrb.mxu2 %v8807_v29  ;;  %v8359_v29 = vor.u32 %v10138_v7, %v8356_v8  ;;  %v10303_v7 = vld [vmem:[#allocation14 + $0x8b0] sm:$0xf0]  ;;  %v11093_v8 = vld [vmem:[#allocation16] sm:$0xff] }
 0x32e   :  { %6083 = vmatpush.bf16.msrb.mxu0 %v8387_v4  ;;  %v10114_v4 = vld [vmem:[#allocation14 + $0x2c8] sm:$0xf0]  ;;  %v11095_v56 = vpop.f32.mrf.mxu2 }
 0x32f   :  { %6042 = vmatpush.bf16.msra.mxu1 %v9475_v12  ;;  %v8251_v13 = vor.u32 %v10114_v4, %v8250_v3  ;;  %v9007_v12 = vor.u32 %v10303_v7, %v9006_v14  ;;  %v10362_v14 = vld [vmem:[#allocation14 + $0xa8c] sm:$0xf]  ;;  %v8138_v7 = vld [vmem:[#allocation14 + $0x1d0] sm:$0xf] }
 0x330   :  { %6113 = vmatmul.bf16.vlgmr.msrb.gmra.mxu2 %v11049_v61  ;;  %6126 = vmatpush.bf16.msrb.mxu3 %v9031_v53  ;;  %v10296_v53 = vld [vmem:[#allocation14 + $0x878] sm:$0xf0] }
 0x331   :  { %6161 = vmatpush.bf16.msra.mxu2 %v8111_v49  ;;  %v8335_v49 = vor.u32 %v10135_v11, %v8334_v20  ;;  %v8222_v20 = vld [vmem:[#allocation14 + $0x278] sm:$0xf]  ;;  %v10107_v11 = vld [vmem:[#allocation14 + $0x290] sm:$0xf0] }
 0x332   :  { %6084 = vmatpush.bf16.msrb.mxu0 %v8359_v29  ;;  %6043 = vmatmul.bf16.vlgmr.msra.gmra.mxu1 %v11069_v19  ;;  %v8978_v29 = vld [vmem:[#allocation14 + $0x860] sm:$0xf] }
 0x333   :  { %6091 = vmatpush.bf16.msrb.mxu1 %v8779_v17  ;;  %6127 = vmatmul.bf16.vlgmr.msrb.gmra.mxu3 %v11054_v63  ;;  %v11098_v17 = vpop.f32.mrf.mxu3  ;;  %v11101_v43 = vpop.f32.mrf.mxu0 }
 0x334   :  { %6175 = vmatpush.bf16.msra.mxu3 %v8335_v49  ;;  %v10208_v49 = vld [vmem:[#allocation14 + $0x5bc] sm:$0xf] }
 0x335   :  { %6162 = vmatpush.bf16.msra.mxu2 %v8083_v44  ;;  %v9423_v44 = vor.u32 %v10404_v28, %v9420_v24  ;;  %6085 = vmatmul.bf16.vlgmr.msrb.gmra.mxu0 %v11045_v48  ;;  %v8979_v28 = vor.u32 %v10296_v53, %v8978_v29  ;;  %v9308_v24 = vld [vmem:[#allocation14 + $0xb14] sm:$0xf0]  ;;  %v8639_v35 = vor.u32 %v10208_v49, %v8636_v60  ;;  %v10191_v29 = vld [vmem:[#allocation14 + $0x530] sm:$0xf0] }
 0x336   :  { %6133 = vmatpush.bf16.msra.mxu0 %v9451_v26  ;;  %v8223_v26 = vor.u32 %v10107_v11, %v8222_v20  ;;  %v5778_v41 = vpop.f32.mrf.mxu2  ;;  %v8583_v11 = vor.u32 %v10194_v46, %v8580_v1  ;;  %v9230_v53 = vld [vmem:[#allocation14 + $0xa58] sm:$0xf]  ;;  %v9675_v60 = vor.u32 %v10467_v15, %v9672_v16  ;;  %v9174_v1 = vld [vmem:[#allocation14 + $0x9e8] sm:$0xf]  ;;  %v8474_v15 = vld [vmem:[#allocation14 + $0x470] sm:$0xf] }
 0x337   :  { %6092 = vmatpush.bf16.msrb.mxu1 %v8751_v40  ;;  %v10289_v40 = vld [vmem:[#allocation14 + $0x840] sm:$0xf0] }
 0x338   :  { %6176 = vmatpush.bf16.msra.mxu3 %v8307_v45  ;;  %v9311_v45 = vor.u32 %v10376_v27, %v9308_v24  ;;  %v8866_v27 = vld [vmem:[#allocation14 + $0x780] sm:$0xf] }
 0x339   :  { %6163 = vmatpush.bf16.msra.mxu2 %v8055_v62  ;;  %v10030_v62 = vld [vmem:[#allocation14 + $0x28] sm:$0xf0] }
 0x33a   :  { %6134 = vmatpush.bf16.msra.mxu0 %v9423_v44  ;;  %v7915_v9 = vor.u32 %v10030_v62, %v7914_v59  ;;  %v5764_v44 = vpop.f32.mrf.mxu1  ;;  %v8166_v59 = vld [vmem:[#allocation14 + $0x208] sm:$0xf]  ;;  %v10093_v62 = vld [vmem:[#allocation14 + $0x220] sm:$0xf0] }
 0x33b   :  { %6093 = vmatpush.bf16.msrb.mxu1 %v8723_v37  ;;  %v9280_v37 = vld [vmem:[#allocation14 + $0xadc] sm:$0xf0]  ;;  %v8167_v4 = vor.u32 %v10093_v62, %v8166_v59  ;;  %v5806_v20 = vpop.f32.mrf.mxu0  ;;  %v10261_v59 = vld [vmem:[#allocation14 + $0x760] sm:$0xf0] }
 0x33c   :  { %6177 = vmatpush.bf16.msra.mxu3 %v8279_v55  ;;  %v10282_v55 = vld [vmem:[#allocation14 + $0x808] sm:$0xf0]  ;;  %v9283_v3 = vor.u32 %v10369_v57, %v9280_v37  ;;  %v8838_v37 = vld [vmem:[#allocation14 + $0x748] sm:$0xf] }
 0x33d   :  { %6164 = vmatpush.bf16.msra.mxu2 %v8027_v38  ;;  %v8695_v38 = vor.u32 %v10222_v6, %v8692_v36  ;;  %v11106_v6 = vpop.f32.mrf.mxu3  ;;  %v8611_v36 = vor.u32 %v10201_v47, %v8608_v31 }
 0x33e   :  { %6135 = vmatpush.bf16.msra.mxu0 %v9395_v22  ;;  %v8922_v22 = vld [vmem:[#allocation14 + $0x7f0] sm:$0xf] }
 0x33f   :  { %6094 = vmatpush.bf16.msrb.mxu1 %v8695_v38  ;;  %v8923_v38 = vor.u32 %v10282_v55, %v8922_v22  ;;  %v10453_v22 = vld [vmem:[#allocation14 + $0xd64] sm:$0xf]  ;;  %v9616_v55 = vld [vmem:[#allocation14 + $0xd7c] sm:$0xf0] }
 0x340   :  { %6178 = vmatpush.bf16.msra.mxu3 %v8251_v13  ;;  %v8894_v13 = vld [vmem:[#allocation14 + $0x7b8] sm:$0xf] }
 0x341   :  { %6165 = vmatpush.bf16.msra.mxu2 %v7999_v21  ;;  %v3395_v21 = vperm.slane %v11093_v8, 0  ;;  %v8895_v49 = vor.u32 %v10275_v30, %v8894_v13  ;;  %v10446_v13 = vld [vmem:[#allocation14 + $0xd2c] sm:$0xf]  ;;  %v9588_v30 = vld [vmem:[#allocation14 + $0xd44] sm:$0xf0] }
 0x342   :  { %6136 = vmatpush.bf16.msra.mxu0 %v9367_v34  ;;  %v10086_v34 = vld [vmem:[#allocation14 + $0x1e8] sm:$0xf0] }
 0x343   :  { %6095 = vmatpush.bf16.msrb.mxu1 %v8667_v42  ;;  %v5723_v58 = vadd.f32 %v11084_v23, %v3395_v21  ;;  %v9252_v23 = vld [vmem:[#allocation14 + $0xaa4] sm:$0xf0]  ;;  %v10359_v42 = vld [vmem:[#allocation14 + $0xa70] sm:$0xf0] }
 0x344   :  { %6179 = vmatpush.bf16.msra.mxu3 %v8223_v26  ;;  %v8139_v26 = vor.u32 %v10086_v34, %v8138_v7  ;;  %v9231_v33 = vor.u32 %v10359_v42, %v9230_v53  ;;  %v9619_v7 = vor.u32 %v10453_v22, %v9616_v55  ;;  %v8112_v53 = vld [vmem:[#allocation14 + $0x1b4] sm:$0xf0]  ;;  %v10156_v55 = vld [vmem:[#allocation14 + $0x418] sm:$0xf0] }
 0x345   :  { %6166 = vmatpush.bf16.msra.mxu2 %v7971_v39  ;;  %v8950_v39 = vld [vmem:[#allocation14 + $0x828] sm:$0xf]  ;;  %v5794_v57 = vpop.f32.mrf.mxu3 }
 0x346   :  { %6137 = vmatpush.bf16.msra.mxu0 %v9339_v25  ;;  %v9255_v25 = vor.u32 %v10362_v14, %v9252_v23  ;;  %v5808_v14 = vpop.f32.mrf.mxu0  ;;  %v8839_v23 = vor.u32 %v10261_v59, %v8838_v37  ;;  %v9532_v37 = vld [vmem:[#allocation14 + $0xcd4] sm:$0xf0]  ;;  %v8418_v59 = vld [vmem:[#allocation14 + $0x400] sm:$0xf] }
 0x347   :  { %6096 = vmatpush.bf16.msrb.mxu1 %v8639_v35 }
 0x348   :  { %6180 = vmatpush.bf16.msra.mxu3 %v8195_v50  ;;  %v10184_v50 = vld [vmem:[#allocation14 + $0x4f8] sm:$0xf0] }
 0x349   :  { %6167 = vmatpush.bf16.msra.mxu2 %v7943_v54  ;;  %v8951_v54 = vor.u32 %v10289_v40, %v8950_v39  ;;  %v9644_v39 = vld [vmem:[#allocation14 + $0xdb4] sm:$0xf0]  ;;  %v8530_v40 = vld [vmem:[#allocation14 + $0x4e0] sm:$0xf] }
 0x34a   :  { %6138 = vmatpush.bf16.msra.mxu0 %v9311_v45  ;;  %v5780_v45 = vpop.f32.mrf.mxu2 }
 0x34b   :  { %6097 = vmatpush.bf16.msrb.mxu1 %v8611_v36  ;;  %v8502_v36 = vld [vmem:[#allocation14 + $0x4a8] sm:$0xf] }
 0x34c   :  { %6181 = vmatpush.bf16.msra.mxu3 %v8167_v4 }
 0x34d   :  { %6168 = vmatpush.bf16.msra.mxu2 %v7915_v9  ;;  %v5737_v9 = vadd.f32 %v11086_v52, %v5723_v58  ;;  %v5725_v52 = vadd.f32 %v11095_v56, %v3395_v21  ;;  %v9202_v56 = vld [vmem:[#allocation14 + $0xa20] sm:$0xf]  ;;  %v10352_v21 = vld [vmem:[#allocation14 + $0xa38] sm:$0xf0] }
 0x34e   :  { %6139 = vmatpush.bf16.msra.mxu0 %v9283_v3  ;;  %v9203_v62 = vor.u32 %v10352_v21, %v9202_v56  ;;  %v10345_v3 = vld [vmem:[#allocation14 + $0xa00] sm:$0xf0] }
 0x34f   :  { %v5751_v2 = vadd.f32 %v11091_v0, %v5737_v9  ;;  %v5766_v0 = vpop.f32.mrf.mxu1  ;;  %6098 = vmatpush.bf16.msrb.mxu1 %v8583_v11  ;;  %v5739_v47 = vadd.f32 %v11098_v17, %v5725_v52  ;;  %v8810_v9 = vld [vmem:[#allocation14 + $0x710] sm:$0xf] }
 0x350   :  { %6169 = vmatmul.bf16.vlgmr.msra.gmra.mxu2 %v11030_v51  ;;  %6182 = vmatpush.bf16.msra.mxu3 %v8139_v26  ;;  %v9146_v11 = vld [vmem:[#allocation14 + $0x9b0] sm:$0xf]  ;;  %v9591_v26 = vor.u32 %v10446_v13, %v9588_v30  ;;  %v10317_v13 = vld [vmem:[#allocation14 + $0x920] sm:$0xf0] }
 0x351   :  { %6217 = vmatpush.bf16.msrb.mxu2 %v9007_v12  ;;  %v8558_v12 = vld [vmem:[#allocation14 + $0x518] sm:$0xf]  ;;  %v5765_v35 = vadd.f32 %v5764_v44, %v5751_v2  ;;  %v8531_v44 = vor.u32 %v10184_v50, %v8530_v40  ;;  %v5753_v46 = vadd.f32 %v11101_v43, %v5739_v47  ;;  %v10170_v2 = vld [vmem:[#allocation14 + $0x488] sm:$0xf0]  ;;  %v8084_v50 = vld [vmem:[#allocation14 + $0x17c] sm:$0xf0] }
 0x352   :  { %v8559_v24 = vor.u32 %v10191_v29, %v8558_v12  ;;  %6140 = vmatpush.bf16.msra.mxu0 %v9255_v25  ;;  %6099 = vmatmul.bf16.vlgmr.msrb.gmra.mxu1 %v11042_v32  ;;  %v10076_v29 = vld [vmem:[#allocation14 + $0x19c] sm:$0xf]  ;;  %v5834_v52 = vpop.f32.mrf.mxu2  ;;  %v9118_v40 = vld [vmem:[#allocation14 + $0x978] sm:$0xf] }
 0x353   :  { %v5779_v31 = vadd.f32 %v5778_v41, %v5765_v35  ;;  %6147 = vmatpush.bf16.msra.mxu1 %v9675_v60  ;;  %v10177_v41 = vld [vmem:[#allocation14 + $0x4c0] sm:$0xf0]  ;;  %6183 = vmatmul.bf16.vlgmr.msra.gmra.mxu3 %v11023_v18  ;;  %v5767_v16 = vadd.f32 %v5766_v0, %v5753_v46  ;;  %v8446_v0 = vld [vmem:[#allocation14 + $0x438] sm:$0xf]  ;;  %v10331_v35 = vld [vmem:[#allocation14 + $0x990] sm:$0xf0] }
 0x354   :  { %6231 = vmatpush.bf16.msrb.mxu3 %v9231_v33  ;;  %v8503_v43 = vor.u32 %v10177_v41, %v8502_v36  ;;  %v5848_v33 = vpop.f32.mrf.mxu3  ;;  %v9090_v36 = vld [vmem:[#allocation14 + $0x940] sm:$0xf]  ;;  %v10324_v46 = vld [vmem:[#allocation14 + $0x958] sm:$0xf0]  ;;  %v10062_v41 = vld [vmem:[#allocation14 + $0x12c] sm:$0xf] }
 0x355   :  { %6218 = vmatpush.bf16.msrb.mxu2 %v8979_v28  ;;  %v10268_v28 = vld [vmem:[#allocation14 + $0x798] sm:$0xf0]  ;;  %v5793_v17 = vadd.f32 %v11106_v6, %v5779_v31  ;;  %6141 = vmatmul.bf16.vlgmr.msra.gmra.mxu0 %v11062_v10  ;;  %v9175_v6 = vor.u32 %v10345_v3, %v9174_v1  ;;  %v5781_v42 = vadd.f32 %v5780_v45, %v5767_v16  ;;  %v10069_v45 = vld [vmem:[#allocation14 + $0x164] sm:$0xf]  ;;  %v8056_v1 = vld [vmem:[#allocation14 + $0x144] sm:$0xf0] }
 0x356   :  { %v8867_v58 = vor.u32 %v10268_v28, %v8866_v27  ;;  %6189 = vmatpush.bf16.msrb.mxu0 %v8559_v24  ;;  %v10439_v27 = vld [vmem:[#allocation14 + $0xcf4] sm:$0xf]  ;;  %v9560_v28 = vld [vmem:[#allocation14 + $0xd0c] sm:$0xf0]  ;;  %v9119_v31 = vor.u32 %v10331_v35, %v9118_v40  ;;  %v9454_v35 = vld [vmem:[#allocation14 + $0xc18] sm:$0xf] }
 0x357   :  { %v5807_v4 = vadd.f32 %v5806_v20, %v5793_v17  ;;  %v5820_v34 = vpop.f32.mrf.mxu1  ;;  %v10338_v20 = vld [vmem:[#allocation14 + $0x9c8] sm:$0xf0]  ;;  %v5795_v24 = vadd.f32 %v5794_v57, %v5781_v42  ;;  %v9563_v21 = vor.u32 %v10439_v27, %v9560_v28  ;;  %v3396_v17 = vperm.slane %v11093_v8, 1  ;;  %v8028_v16 = vld [vmem:[#allocation14 + $0x10c] sm:$0xf0] }
 0x358   :  { %6232 = vmatpush.bf16.msrb.mxu3 %v9203_v62  ;;  %v9147_v60 = vor.u32 %v10338_v20, %v9146_v11  ;;  %v8087_v62 = vor.u32 %v10069_v45, %v8084_v50  ;;  %v10418_v11 = vld [vmem:[#allocation14 + $0xc4c] sm:$0xf]  ;;  %v9476_v20 = vld [vmem:[#allocation14 + $0xc64] sm:$0xf0]  ;;  %v10247_v40 = vld [vmem:[#allocation14 + $0x6f0] sm:$0xf0] }
 0x359   :  { %6219 = vmatpush.bf16.msrb.mxu2 %v8951_v54  ;;  %v9647_v54 = vor.u32 %v10460_v5, %v9644_v39  ;;  %v5821_v12 = vadd.f32 %v5820_v34, %v5807_v4  ;;  %v8115_v5 = vor.u32 %v10076_v29, %v8112_v53  ;;  %v10163_v39 = vld [vmem:[#allocation14 + $0x450] sm:$0xf0]  ;;  %v5809_v56 = vadd.f32 %v5808_v14, %v5795_v24  ;;  %v9062_v34 = vld [vmem:[#allocation14 + $0x908] sm:$0xf]  ;;  %v8362_v29 = vld [vmem:[#allocation14 + $0x390] sm:$0xf] }
 0x35a   :  { %6190 = vmatpush.bf16.msrb.mxu0 %v8531_v44  ;;  %v8447_v47 = vor.u32 %v10163_v39, %v8446_v0  ;;  %v5862_v44 = vpop.f32.mrf.mxu0  ;;  %v8419_v4 = vor.u32 %v10156_v55, %v8418_v59  ;;  %v9091_v14 = vor.u32 %v10324_v46, %v9090_v36  ;;  %v5835_v30 = vadd.f32 %v5834_v52, %v3396_v17  ;;  %v10310_v27 = vld [vmem:[#allocation14 + $0x8e8] sm:$0xf0]  ;;  %v10048_v0 = vld [vmem:[#allocation14 + $0xbc] sm:$0xf]  ;;  %v8000_v24 = vld [vmem:[#allocation14 + $0xd4] sm:$0xf0] }
 0x35b   :  { %6148 = vmatpush.bf16.msra.mxu1 %v9647_v54  ;;  %10495 = vtanh.f32 %v5821_v12  ;;  %v10432_v54 = vld [vmem:[#allocation14 + $0xcbc] sm:$0xf]  ;;  %v10415_v50 = vld [vmem:[#allocation14 + $0xc30] sm:$0xf0]  ;;  %v8754_v36 = vld [vmem:[#allocation14 + $0x6a0] sm:$0xf] }
 0x35c   :  { %6233 = vmatpush.bf16.msrb.mxu3 %v9175_v6  ;;  %v9535_v3 = vor.u32 %v10432_v54, %v9532_v37  ;;  %v10149_v6 = vld [vmem:[#allocation14 + $0x3e0] sm:$0xf0]  ;;  %v5850_v12 = vpop.f32.mrf.mxu3  ;;  %v5849_v53 = vadd.f32 %v5848_v33, %v5835_v30  ;;  %v9479_v33 = vor.u32 %v10418_v11, %v9476_v20  ;;  %v8003_v37 = vor.u32 %v10048_v0, %v8000_v24  ;;  %v10240_v46 = vld [vmem:[#allocation14 + $0x6b8] sm:$0xf0]  ;;  %v10118_v11 = vld [vmem:[#allocation14 + $0x2ec] sm:$0xf] }
 0x35d   :  { %6220 = vmatpush.bf16.msrb.mxu2 %v8923_v38  ;;  %v10254_v38 = vld [vmem:[#allocation14 + $0x728] sm:$0xf0]  ;;  %v8280_v20 = vld [vmem:[#allocation14 + $0x304] sm:$0xf0]  ;;  %v9370_v24 = vld [vmem:[#allocation14 + $0xb70] sm:$0xf] }
 0x35e   :  { %v8811_v25 = vor.u32 %v10254_v38, %v8810_v9  ;;  %6191 = vmatpush.bf16.msrb.mxu0 %v8503_v43  ;;  %v8390_v9 = vld [vmem:[#allocation14 + $0x3c8] sm:$0xf]  ;;  %v5836_v38 = vpop.f32.mrf.mxu2  ;;  %v8059_v43 = vor.u32 %v10062_v41, %v8056_v1  ;;  %v5863_v39 = vadd.f32 %v5862_v44, %v5849_v53  ;;  %v7972_v44 = vld [vmem:[#allocation14 + $0x9c] sm:$0xf0]  ;;  %v10408_v1 = vld [vmem:[#allocation14 + $0xbf8] sm:$0xf0] }
 0x35f   :  { %6149 = vmatpush.bf16.msra.mxu1 %v9619_v7  ;;  %v9504_v7 = vld [vmem:[#allocation14 + $0xc9c] sm:$0xf0]  ;;  %v8391_v42 = vor.u32 %v10149_v6, %v8390_v9  ;;  %v8755_v6 = vor.u32 %v10240_v46, %v8754_v36  ;;  %v10226_v0 = vld [vmem:[#allocation14 + $0x648] sm:$0xf0]  ;;  %v10104_v36 = vld [vmem:[#allocation14 + $0x27c] sm:$0xf] }
 0x360   :  { %6234 = vmatpush.bf16.msrb.mxu3 %v9147_v60  ;;  %v9034_v60 = vld [vmem:[#allocation14 + $0x8d0] sm:$0xf]  ;;  %v9426_v41 = vld [vmem:[#allocation14 + $0xbe0] sm:$0xf]  ;;  %v8224_v46 = vld [vmem:[#allocation14 + $0x294] sm:$0xf0] }
 0x361   :  { %6221 = vmatpush.bf16.msrb.mxu2 %v8895_v49  ;;  %v8475_v49 = vor.u32 %v10170_v2, %v8474_v15  ;;  %v10496_v57 = vpop.eup %10495  ;;  %v10055_v15 = vld [vmem:[#allocation14 + $0xf4] sm:$0xf] }
 0x362   :  { %6511 = vst [vmem:[#allocation17] sm:$0xff] %v10496_v57  ;;  %v8031_v52 = vor.u32 %v10055_v15, %v8028_v16  ;;  %v5864_v45 = vpop.f32.mrf.mxu0  ;;  %v10041_v57 = vld [vmem:[#allocation14 + $0x84] sm:$0xf]  ;;  %v8726_v15 = vld [vmem:[#allocation14 + $0x668] sm:$0xf] }
 0x363   :  { %6150 = vmatpush.bf16.msra.mxu1 %v9591_v26  ;;  %6192 = vmatpush.bf16.msrb.mxu0 %v8475_v49  ;;  %v10142_v49 = vld [vmem:[#allocation14 + $0x3a8] sm:$0xf0]  ;;  %v10233_v16 = vld [vmem:[#allocation14 + $0x680] sm:$0xf0] }
 0x364   :  { %6235 = vmatpush.bf16.msrb.mxu3 %v9119_v31  ;;  %v8363_v31 = vor.u32 %v10142_v49, %v8362_v29  ;;  %v5904_v9 = vpop.f32.mrf.mxu3  ;;  %v10027_v49 = vld [vmem:[#allocation14 + $0x14] sm:$0xf] }
 0x365   :  { %6222 = vmatpush.bf16.msrb.mxu2 %v8867_v58  ;;  %v5822_v58 = vpop.f32.mrf.mxu1 }
 0x366   :  { %v5823_v22 = vadd.f32 %v5822_v58, %v5809_v56  ;;  %v10132_v56 = vld [vmem:[#allocation14 + $0x35c] sm:$0xf]  ;;  %v9035_v58 = vor.u32 %v10310_v27, %v9034_v60  ;;  %v5890_v54 = vpop.f32.mrf.mxu2  ;;  %v7916_v60 = vld [vmem:[#allocation14 + $0x2c] sm:$0xf0] }
 0x367   :  { %6151 = vmatpush.bf16.msra.mxu1 %v9563_v21  ;;  %6193 = vmatpush.bf16.msrb.mxu0 %v8447_v47  ;;  %v8336_v21 = vld [vmem:[#allocation14 + $0x374] sm:$0xf0] }
 0x368   :  { %10497 = vtanh.f32 %v5823_v22  ;;  %6236 = vmatpush.bf16.msrb.mxu3 %v9091_v14  ;;  %v9455_v22 = vor.u32 %v10415_v50, %v9454_v35  ;;  %v8339_v55 = vor.u32 %v10132_v56, %v8336_v21  ;;  %v8252_v35 = vld [vmem:[#allocation14 + $0x2cc] sm:$0xf0]  ;;  %v10300_v50 = vld [vmem:[#allocation14 + $0x89c] sm:$0xf]  ;;  %v9008_v56 = vld [vmem:[#allocation14 + $0x8b4] sm:$0xf0]  ;;  %v7919_v21 = vor.u32 %v10027_v49, %v7916_v60 }
 0x369   :  { %6223 = vmatpush.bf16.msrb.mxu2 %v8839_v23  ;;  %v10425_v23 = vld [vmem:[#allocation14 + $0xc84] sm:$0xf] }
 0x36a   :  { %v9507_v2 = vor.u32 %v10425_v23, %v9504_v7  ;;  %v10373_v49 = vld [vmem:[#allocation14 + $0xae0] sm:$0xf0] }
 0x36b   :  { %6152 = vmatpush.bf16.msra.mxu1 %v9535_v3  ;;  %6194 = vmatpush.bf16.msrb.mxu0 %v8419_v4  ;;  %v10125_v3 = vld [vmem:[#allocation14 + $0x324] sm:$0xf]  ;;  %v8308_v4 = vld [vmem:[#allocation14 + $0x33c] sm:$0xf0] }
 0x36c   :  { %v8311_v30 = vor.u32 %v10125_v3, %v8308_v4 }
 0x36d   :  { %6224 = vmatpush.bf16.msrb.mxu2 %v8811_v25  ;;  %v9063_v25 = vor.u32 %v10317_v13, %v9062_v34  ;;  %v5876_v26 = vpop.f32.mrf.mxu1  ;;  %v9427_v13 = vor.u32 %v10408_v1, %v9426_v41  ;;  %v10293_v41 = vld [vmem:[#allocation14 + $0x864] sm:$0xf]  ;;  %v8980_v1 = vld [vmem:[#allocation14 + $0x87c] sm:$0xf0] }
 0x36e   :  { %v10498_v28 = vpop.eup %10497  ;;  %v5877_v47 = vadd.f32 %v5876_v26, %v5863_v39  ;;  %v8727_v26 = vor.u32 %v10233_v16, %v8726_v15  ;;  %v10394_v39 = vld [vmem:[#allocation14 + $0xb88] sm:$0xf0]  ;;  %v8952_v16 = vld [vmem:[#allocation14 + $0x844] sm:$0xf0] }
 0x36f   :  { %6518 = vst [vmem:[#allocation17 + $0x38] sm:$0xff] %v10498_v28  ;;  %6153 = vmatpush.bf16.msra.mxu1 %v9507_v2  ;;  %6195 = vmatpush.bf16.msrb.mxu0 %v8391_v42  ;;  %v9398_v2 = vld [vmem:[#allocation14 + $0xba8] sm:$0xf]  ;;  %v5918_v42 = vpop.f32.mrf.mxu0  ;;  %v8283_v28 = vor.u32 %v10118_v11, %v8280_v20  ;;  %v10286_v15 = vld [vmem:[#allocation14 + $0x82c] sm:$0xf] }
 0x370   :  { %6225 = vmatmul.bf16.vlgmr.msrb.gmra.mxu2 %v11049_v61  ;;  %6237 = vmatpush.bf16.msrb.mxu3 %v9063_v25  ;;  %v5891_v23 = vadd.f32 %v5890_v54, %v5877_v47  ;;  %v9371_v54 = vor.u32 %v10394_v39, %v9370_v24  ;;  %v8614_v11 = vld [vmem:[#allocation14 + $0x588] sm:$0xf]  ;;  %v8955_v60 = vor.u32 %v10286_v15, %v8952_v16  ;;  %v10198_v39 = vld [vmem:[#allocation14 + $0x568] sm:$0xf0] }
 0x371   :  { %6273 = vmatpush.bf16.msra.mxu2 %v8115_v5  ;;  %v8782_v5 = vld [vmem:[#allocation14 + $0x6d8] sm:$0xf] }
 0x372   :  { %v8783_v59 = vor.u32 %v10247_v40, %v8782_v5  ;;  %v5905_v53 = vadd.f32 %v5904_v9, %v5891_v23  ;;  %v5892_v5 = vpop.f32.mrf.mxu2  ;;  %v10111_v40 = vld [vmem:[#allocation14 + $0x2b4] sm:$0xf]  ;;  %v8227_v23 = vor.u32 %v10104_v36, %v8224_v46  ;;  %v10212_v9 = vld [vmem:[#allocation14 + $0x5d8] sm:$0xf0] }
 0x373   :  { %6154 = vmatpush.bf16.msra.mxu1 %v9479_v33  ;;  %6196 = vmatpush.bf16.msrb.mxu0 %v8363_v31 }
 0x374   :  { %6238 = vmatpush.bf16.msrb.mxu3 %v9035_v58  ;;  %v5919_v33 = vadd.f32 %v5918_v42, %v5905_v53 }
 0x375   :  { %6274 = vmatpush.bf16.msra.mxu2 %v8087_v62  ;;  %v5837_v62 = vadd.f32 %v5836_v38, %v3396_v17  ;;  %v5878_v7 = vpop.f32.mrf.mxu1  ;;  %v10034_v17 = vld [vmem:[#allocation14 + $0x4c] sm:$0xf]  ;;  %v7944_v38 = vld [vmem:[#allocation14 + $0x64] sm:$0xf0] }
 0x376   :  { %6155 = vmatmul.bf16.vlgmr.msra.gmra.mxu1 %v11069_v19  ;;  %6197 = vmatmul.bf16.vlgmr.msrb.gmra.mxu0 %v11045_v48  ;;  %v7947_v25 = vor.u32 %v10034_v17, %v7944_v38  ;;  %v8983_v17 = vor.u32 %v10293_v41, %v8980_v1  ;;  %v10380_v38 = vld [vmem:[#allocation14 + $0xb18] sm:$0xf0]  ;;  %v10265_v1 = vld [vmem:[#allocation14 + $0x784] sm:$0xf] }
 0x377   :  { %v5851_v14 = vadd.f32 %v5850_v12, %v5837_v62  ;;  %6203 = vmatpush.bf16.msrb.mxu1 %v8783_v59  ;;  %6245 = vmatpush.bf16.msra.mxu0 %v9455_v22  ;;  %v10401_v12 = vld [vmem:[#allocation14 + $0xbc0] sm:$0xf0]  ;;  %v8670_v59 = vld [vmem:[#allocation14 + $0x5f8] sm:$0xf]  ;;  %v5906_v62 = vpop.f32.mrf.mxu3  ;;  %v9011_v22 = vor.u32 %v10300_v50, %v9008_v56  ;;  %v10083_v50 = vld [vmem:[#allocation14 + $0x1d4] sm:$0xf] }
 0x378   :  { %6287 = vmatpush.bf16.msra.mxu3 %v8339_v55  ;;  %v9399_v27 = vor.u32 %v10401_v12, %v9398_v2  ;;  %v10387_v55 = vld [vmem:[#allocation14 + $0xb50] sm:$0xf0] }
 0x379   :  { %6275 = vmatpush.bf16.msra.mxu2 %v8059_v43  ;;  %v7975_v43 = vor.u32 %v10041_v57, %v7972_v44  ;;  %v5865_v34 = vadd.f32 %v5864_v45, %v5851_v14  ;;  %6239 = vmatmul.bf16.vlgmr.msrb.gmra.mxu3 %v11054_v63  ;;  %v10219_v57 = vld [vmem:[#allocation14 + $0x610] sm:$0xf0]  ;;  %v9342_v44 = vld [vmem:[#allocation14 + $0xb38] sm:$0xf] }
 0x37a   :  { %v8671_v4 = vor.u32 %v10219_v57, %v8670_v59  ;;  %v9343_v14 = vor.u32 %v10387_v55, %v9342_v44  ;;  %v8560_v57 = vld [vmem:[#allocation14 + $0x534] sm:$0xf0]  ;;  %v10356_v44 = vld [vmem:[#allocation14 + $0xa5c] sm:$0xf] }
 0x37b   :  { %v5879_v29 = vadd.f32 %v5878_v7, %v5865_v34  ;;  %6204 = vmatpush.bf16.msrb.mxu1 %v8755_v6  ;;  %6246 = vmatpush.bf16.msra.mxu0 %v9427_v13  ;;  %v8642_v7 = vld [vmem:[#allocation14 + $0x5c0] sm:$0xf]  ;;  %v5920_v6 = vpop.f32.mrf.mxu0  ;;  %v10097_v34 = vld [vmem:[#allocation14 + $0x244] sm:$0xf] }
 0x37c   :  { %6288 = vmatpush.bf16.msra.mxu3 %v8311_v30  ;;  %v8196_v13 = vld [vmem:[#allocation14 + $0x25c] sm:$0xf0]  ;;  %v8643_v12 = vor.u32 %v10212_v9, %v8642_v7  ;;  %v10464_v7 = vld [vmem:[#allocation14 + $0xdb8] sm:$0xf0]  ;;  %v10181_v9 = vld [vmem:[#allocation14 + $0x4e4] sm:$0xf] }
 0x37d   :  { %6276 = vmatpush.bf16.msra.mxu2 %v8031_v52  ;;  %v8698_v52 = vld [vmem:[#allocation14 + $0x630] sm:$0xf]  ;;  %v5893_v45 = vadd.f32 %v5892_v5, %v5879_v29  ;;  %v5932_v47 = vpop.f32.mrf.mxu1  ;;  %v8199_v42 = vor.u32 %v10097_v34, %v8196_v13  ;;  %v10258_v13 = vld [vmem:[#allocation14 + $0x74c] sm:$0xf] }
 0x37e   :  { %v8699_v31 = vor.u32 %v10226_v0, %v8698_v52  ;;  %v5933_v58 = vadd.f32 %v5932_v47, %v5919_v33  ;;  %v10279_v52 = vld [vmem:[#allocation14 + $0x7f4] sm:$0xf]  ;;  %v8924_v0 = vld [vmem:[#allocation14 + $0x80c] sm:$0xf0]  ;;  %v10366_v33 = vld [vmem:[#allocation14 + $0xaa8] sm:$0xf0] }
 0x37f   :  { %6205 = vmatpush.bf16.msrb.mxu1 %v8727_v26  ;;  %6247 = vmatpush.bf16.msra.mxu0 %v9399_v27  ;;  %v5907_v3 = vadd.f32 %v5906_v62, %v5893_v45  ;;  %v9286_v26 = vld [vmem:[#allocation14 + $0xac8] sm:$0xf]  ;;  %v10090_v27 = vld [vmem:[#allocation14 + $0x20c] sm:$0xf]  ;;  %v8586_v5 = vld [vmem:[#allocation14 + $0x550] sm:$0xf]  ;;  %v8927_v56 = vor.u32 %v10279_v52, %v8924_v0 }
 0x380   :  { %6289 = vmatpush.bf16.msra.mxu3 %v8283_v28  ;;  %10499 = vtanh.f32 %v5933_v58  ;;  %v8168_v28 = vld [vmem:[#allocation14 + $0x224] sm:$0xf0]  ;;  %v9258_v45 = vld [vmem:[#allocation14 + $0xa90] sm:$0xf]  ;;  %v10272_v47 = vld [vmem:[#allocation14 + $0x7bc] sm:$0xf]  ;;  %v8587_v59 = vor.u32 %v10198_v39, %v8586_v5 }
 0x381   :  { %6277 = vmatpush.bf16.msra.mxu2 %v8003_v37  ;;  %v8255_v37 = vor.u32 %v10111_v40, %v8252_v35  ;;  %v5921_v30 = vadd.f32 %v5920_v6, %v5907_v3  ;;  %v9287_v40 = vor.u32 %v10373_v49, %v9286_v26  ;;  %v8171_v35 = vor.u32 %v10090_v27, %v8168_v28  ;;  %v9678_v58 = vld [vmem:[#allocation14 + $0xdd8] sm:$0xf]  ;;  %v8868_v3 = vld [vmem:[#allocation14 + $0x79c] sm:$0xf0]  ;;  %v10349_v6 = vld [vmem:[#allocation14 + $0xa24] sm:$0xf] }
 0x382   :  { %v9232_v62 = vld [vmem:[#allocation14 + $0xa74] sm:$0xf0]  ;;  %v9259_v55 = vor.u32 %v10366_v33, %v9258_v45  ;;  %v10251_v26 = vld [vmem:[#allocation14 + $0x714] sm:$0xf]  ;;  %v8812_v49 = vld [vmem:[#allocation14 + $0x72c] sm:$0xf0] }
 0x383   :  { %6206 = vmatpush.bf16.msrb.mxu1 %v8699_v31  ;;  %6248 = vmatpush.bf16.msra.mxu0 %v9371_v54  ;;  %v8896_v31 = vld [vmem:[#allocation14 + $0x7d4] sm:$0xf0]  ;;  %v10471_v54 = vld [vmem:[#allocation14 + $0xdf0] sm:$0xf0]  ;;  %v9594_v28 = vld [vmem:[#allocation14 + $0xd30] sm:$0xf]  ;;  %v8815_v33 = vor.u32 %v10251_v26, %v8812_v49 }
 0x384   :  { %6290 = vmatpush.bf16.msra.mxu3 %v8255_v37  ;;  %v10188_v37 = vld [vmem:[#allocation14 + $0x51c] sm:$0xf]  ;;  %v8899_v46 = vor.u32 %v10272_v47, %v8896_v31  ;;  %v9679_v41 = vor.u32 %v10471_v54, %v9678_v58  ;;  %v10450_v52 = vld [vmem:[#allocation14 + $0xd48] sm:$0xf0]  ;;  %v10167_v0 = vld [vmem:[#allocation14 + $0x474] sm:$0xf] }
 0x385   :  { %6278 = vmatpush.bf16.msra.mxu2 %v7975_v43  ;;  %v9314_v43 = vld [vmem:[#allocation14 + $0xb00] sm:$0xf]  ;;  %v5934_v2 = vpop.f32.mrf.mxu1  ;;  %v10335_v5 = vld [vmem:[#allocation14 + $0x9b4] sm:$0xf]  ;;  %v9148_v39 = vld [vmem:[#allocation14 + $0x9cc] sm:$0xf0] }
 0x386   :  { %v10500_v20 = vpop.eup %10499  ;;  %v5935_v29 = vadd.f32 %v5934_v2, %v5921_v30  ;;  %v9315_v53 = vor.u32 %v10380_v38, %v9314_v43  ;;  %v8532_v43 = vld [vmem:[#allocation14 + $0x4fc] sm:$0xf0]  ;;  %v8871_v38 = vor.u32 %v10265_v1, %v8868_v3  ;;  %v8840_v30 = vld [vmem:[#allocation14 + $0x764] sm:$0xf0]  ;;  %v10080_v45 = vld [vmem:[#allocation14 + $0x1b8] sm:$0xf0] }
 0x387   :  { %6207 = vmatpush.bf16.msrb.mxu1 %v8671_v4  ;;  %6249 = vmatpush.bf16.msra.mxu0 %v9343_v14  ;;  %6512 = vst [vmem:[#allocation17 + $0x8] sm:$0xff] %v10500_v20  ;;  %v8563_v4 = vor.u32 %v10188_v37, %v8560_v57  ;;  %v9235_v14 = vor.u32 %v10356_v44, %v9232_v62  ;;  %v9622_v2 = vld [vmem:[#allocation14 + $0xd68] sm:$0xf]  ;;  %v9566_v47 = vld [vmem:[#allocation14 + $0xcf8] sm:$0xf]  ;;  %v5960_v44 = vpop.f32.mrf.mxu3 }
 0x388   :  { %6291 = vmatpush.bf16.msra.mxu3 %v8227_v23  ;;  %10501 = vtanh.f32 %v5935_v29  ;;  %v9650_v23 = vld [vmem:[#allocation14 + $0xda0] sm:$0xf]  ;;  %v8535_v15 = vor.u32 %v10181_v9, %v8532_v43  ;;  %v8504_v20 = vld [vmem:[#allocation14 + $0x4c4] sm:$0xf0]  ;;  %v10342_v29 = vld [vmem:[#allocation14 + $0x9ec] sm:$0xf]  ;;  %v5974_v43 = vpop.f32.mrf.mxu0 }
 0x389   :  { %6279 = vmatpush.bf16.msra.mxu2 %v7947_v25  ;;  %v10205_v25 = vld [vmem:[#allocation14 + $0x5a0] sm:$0xf0]  ;;  %v9651_v34 = vor.u32 %v10464_v7, %v9650_v23  ;;  %v10443_v31 = vld [vmem:[#allocation14 + $0xd10] sm:$0xf0]  ;;  %v10160_v58 = vld [vmem:[#allocation14 + $0x43c] sm:$0xf] }
 0x38a   :  { %v8615_v24 = vor.u32 %v10205_v25, %v8614_v11  ;;  %v10174_v11 = vld [vmem:[#allocation14 + $0x4ac] sm:$0xf]  ;;  %v8448_v37 = vld [vmem:[#allocation14 + $0x454] sm:$0xf0]  ;;  %v8090_v62 = vld [vmem:[#allocation14 + $0x168] sm:$0xf] }
 0x38b   :  { %6208 = vmatpush.bf16.msrb.mxu1 %v8643_v12  ;;  %6250 = vmatpush.bf16.msra.mxu0 %v9315_v53  ;;  %v10457_v12 = vld [vmem:[#allocation14 + $0xd80] sm:$0xf0]  ;;  %v9176_v53 = vld [vmem:[#allocation14 + $0xa04] sm:$0xf0]  ;;  %v9120_v57 = vld [vmem:[#allocation14 + $0x994] sm:$0xf0] }
 0x38c   :  { %6292 = vmatpush.bf16.msra.mxu3 %v8199_v42  ;;  %v8843_v42 = vor.u32 %v10258_v13, %v8840_v30  ;;  %v9623_v25 = vor.u32 %v10457_v12, %v9622_v2  ;;  %v9179_v27 = vor.u32 %v10342_v29, %v9176_v53  ;;  %v9538_v1 = vld [vmem:[#allocation14 + $0xcc0] sm:$0xf]  ;;  %v10436_v3 = vld [vmem:[#allocation14 + $0xcd8] sm:$0xf0]  ;;  %v10321_v7 = vld [vmem:[#allocation14 + $0x944] sm:$0xf] }
 0x38d   :  { %6280 = vmatpush.bf16.msra.mxu2 %v7919_v21  ;;  %v8140_v21 = vld [vmem:[#allocation14 + $0x1ec] sm:$0xf0]  ;;  %v8420_v23 = vld [vmem:[#allocation14 + $0x41c] sm:$0xf0]  ;;  %v10146_v2 = vld [vmem:[#allocation14 + $0x3cc] sm:$0xf] }
 0x38e   :  { %v8143_v36 = vor.u32 %v10083_v50, %v8140_v21  ;;  %v9595_v50 = vor.u32 %v10450_v52, %v9594_v28  ;;  %v9151_v21 = vor.u32 %v10335_v5, %v9148_v39  ;;  %v9092_v9 = vld [vmem:[#allocation14 + $0x95c] sm:$0xf0]  ;;  %v10314_v29 = vld [vmem:[#allocation14 + $0x90c] sm:$0xf]  ;;  %v9064_v53 = vld [vmem:[#allocation14 + $0x924] sm:$0xf0] }
 0x38f   :  { %6209 = vmatpush.bf16.msrb.mxu1 %v8615_v24  ;;  %6251 = vmatpush.bf16.msra.mxu0 %v9287_v40  ;;  %v8476_v24 = vld [vmem:[#allocation14 + $0x48c] sm:$0xf0]  ;;  %v5946_v40 = vpop.f32.mrf.mxu2  ;;  %v9095_v30 = vor.u32 %v10321_v7, %v9092_v9  ;;  %v10059_v26 = vld [vmem:[#allocation14 + $0x110] sm:$0xf0]  ;;  %v10422_v28 = vld [vmem:[#allocation14 + $0xc68] sm:$0xf0]  ;;  %v5962_v52 = vpop.f32.mrf.mxu3 }
 0x390   :  { %6281 = vmatmul.bf16.vlgmr.msra.gmra.mxu2 %v11030_v51  ;;  %6293 = vmatpush.bf16.msra.mxu3 %v8171_v35  ;;  %v8118_v35 = vld [vmem:[#allocation14 + $0x1a0] sm:$0xf]  ;;  %v10139_v5 = vld [vmem:[#allocation14 + $0x394] sm:$0xf]  ;;  %v8364_v39 = vld [vmem:[#allocation14 + $0x3ac] sm:$0xf0] }
 0x391   :  { %6329 = vmatpush.bf16.msrb.mxu2 %v9011_v22  ;;  %v10502_v22 = vpop.eup %10501  ;;  %v8119_v54 = vor.u32 %v10080_v45, %v8118_v35  ;;  %v10237_v7 = vld [vmem:[#allocation14 + $0x6a4] sm:$0xf]  ;;  %v8756_v9 = vld [vmem:[#allocation14 + $0x6bc] sm:$0xf0] }
 0x392   :  { %6519 = vst [vmem:[#allocation17 + $0x40] sm:$0xff] %v10502_v22  ;;  %v10073_v22 = vld [vmem:[#allocation14 + $0x180] sm:$0xf0] }
 0x393   :  { %6210 = vmatpush.bf16.msrb.mxu1 %v8587_v59  ;;  %6252 = vmatpush.bf16.msra.mxu0 %v9259_v55  ;;  %v10328_v59 = vld [vmem:[#allocation14 + $0x97c] sm:$0xf]  ;;  %v3397_v55 = vperm.slane %v11093_v8, 2 }
 0x394   :  { %6294 = vmatpush.bf16.msra.mxu3 %v8143_v36  ;;  %v9567_v36 = vor.u32 %v10443_v31, %v9566_v47  ;;  %v8784_v47 = vld [vmem:[#allocation14 + $0x6f4] sm:$0xf0]  ;;  %v10412_v31 = vld [vmem:[#allocation14 + $0xc1c] sm:$0xf] }
 0x395   :  { %6330 = vmatpush.bf16.msrb.mxu2 %v8983_v17  ;;  %v9204_v17 = vld [vmem:[#allocation14 + $0xa3c] sm:$0xf0]  ;;  %v5947_v12 = vadd.f32 %v5946_v40, %v3397_v55  ;;  %v10307_v40 = vld [vmem:[#allocation14 + $0x8d4] sm:$0xf] }
 0x396   :  { %v9207_v16 = vor.u32 %v10349_v6, %v9204_v17  ;;  %6211 = vmatmul.bf16.vlgmr.msrb.gmra.mxu1 %v11042_v32  ;;  %6253 = vmatmul.bf16.vlgmr.msra.gmra.mxu0 %v11062_v10  ;;  %v8062_v6 = vld [vmem:[#allocation14 + $0x130] sm:$0xf]  ;;  %v10066_v17 = vld [vmem:[#allocation14 + $0x148] sm:$0xf0] }
 0x397   :  { %6259 = vmatpush.bf16.msra.mxu1 %v9679_v41  ;;  %6301 = vmatpush.bf16.msrb.mxu0 %v8563_v4  ;;  %v9123_v41 = vor.u32 %v10328_v59, %v9120_v57  ;;  %v10153_v4 = vld [vmem:[#allocation14 + $0x404] sm:$0xf]  ;;  %v5961_v49 = vadd.f32 %v5960_v44, %v5947_v12  ;;  %v8342_v59 = vld [vmem:[#allocation14 + $0x360] sm:$0xf]  ;;  %v10136_v57 = vld [vmem:[#allocation14 + $0x378] sm:$0xf0] }
 0x398   :  { %6343 = vmatpush.bf16.msrb.mxu3 %v9235_v14  ;;  %v8091_v14 = vor.u32 %v10073_v22, %v8090_v62  ;;  %v8423_v13 = vor.u32 %v10153_v4, %v8420_v23  ;;  %v5976_v62 = vpop.f32.mrf.mxu0  ;;  %v8367_v22 = vor.u32 %v10139_v5, %v8364_v39  ;;  %v10045_v4 = vld [vmem:[#allocation14 + $0xa0] sm:$0xf0]  ;;  %v8343_v23 = vor.u32 %v10136_v57, %v8342_v59  ;;  %v10038_v12 = vld [vmem:[#allocation14 + $0x68] sm:$0xf0]  ;;  %v10031_v5 = vld [vmem:[#allocation14 + $0x30] sm:$0xf0] }
 0x399   :  { %6331 = vmatpush.bf16.msrb.mxu2 %v8955_v60  ;;  %6295 = vmatmul.bf16.vlgmr.msra.gmra.mxu3 %v11023_v18  ;;  %v8507_v60 = vor.u32 %v10174_v11, %v8504_v20  ;;  %v8063_v11 = vor.u32 %v10066_v17, %v8062_v6  ;;  %v8392_v20 = vld [vmem:[#allocation14 + $0x3e4] sm:$0xf0]  ;;  %v5975_v35 = vadd.f32 %v5974_v43, %v5961_v49  ;;  %v10405_v43 = vld [vmem:[#allocation14 + $0xbe4] sm:$0xf]  ;;  %v10304_v59 = vld [vmem:[#allocation14 + $0x8b8] sm:$0xf0] }
 0x39a   :  { %v9400_v49 = vld [vmem:[#allocation14 + $0xbc4] sm:$0xf0] }
 0x39b   :  { %6260 = vmatpush.bf16.msra.mxu1 %v9651_v34  ;;  %6302 = vmatpush.bf16.msrb.mxu0 %v8535_v15  ;;  %v5948_v34 = vpop.f32.mrf.mxu2  ;;  %v9510_v15 = vld [vmem:[#allocation14 + $0xc88] sm:$0xf] }
 0x39c   :  { %6344 = vmatpush.bf16.msrb.mxu3 %v9207_v16  ;;  %v10429_v16 = vld [vmem:[#allocation14 + $0xca0] sm:$0xf0] }
 0x39d   :  { %6332 = vmatpush.bf16.msrb.mxu2 %v8927_v56  ;;  %v8479_v56 = vor.u32 %v10167_v0, %v8476_v24  ;;  %v8395_v0 = vor.u32 %v10146_v2, %v8392_v20  ;;  %v9067_v24 = vor.u32 %v10314_v29, %v9064_v53  ;;  %v7950_v2 = vld [vmem:[#allocation14 + $0x50] sm:$0xf]  ;;  %v10230_v29 = vld [vmem:[#allocation14 + $0x66c] sm:$0xf]  ;;  %v8728_v53 = vld [vmem:[#allocation14 + $0x684] sm:$0xf0] }
 0x39f   :  { %6261 = vmatpush.bf16.msra.mxu1 %v9623_v25  ;;  %6303 = vmatpush.bf16.msrb.mxu0 %v8507_v60  ;;  %v8034_v25 = vld [vmem:[#allocation14 + $0xf8] sm:$0xf]  ;;  %v9511_v60 = vor.u32 %v10429_v16, %v9510_v15  ;;  %v6016_v15 = vpop.f32.mrf.mxu3 }
 0x3a0   :  { %6345 = vmatpush.bf16.msrb.mxu3 %v9179_v27  ;;  %v9482_v27 = vld [vmem:[#allocation14 + $0xc50] sm:$0xf]  ;;  %v8035_v45 = vor.u32 %v10059_v26, %v8034_v25 }
 0x3a1   :  { %6333 = vmatpush.bf16.msrb.mxu2 %v8899_v46  ;;  %v8451_v46 = vor.u32 %v10160_v58, %v8448_v37  ;;  %v9456_v37 = vld [vmem:[#allocation14 + $0xc34] sm:$0xf0] }
 0x3a3   :  { %6262 = vmatpush.bf16.msra.mxu1 %v9595_v50  ;;  %6304 = vmatpush.bf16.msrb.mxu0 %v8479_v56  ;;  %v8006_v50 = vld [vmem:[#allocation14 + $0xc0] sm:$0xf]  ;;  %v10052_v56 = vld [vmem:[#allocation14 + $0xd8] sm:$0xf0]  ;;  %v6002_v44 = vpop.f32.mrf.mxu2 }
 0x3a4   :  { %6346 = vmatpush.bf16.msrb.mxu3 %v9151_v21  ;;  %v10244_v21 = vld [vmem:[#allocation14 + $0x6dc] sm:$0xf] }
 0x3a5   :  { %6334 = vmatpush.bf16.msrb.mxu2 %v8871_v38  ;;  %v9539_v38 = vor.u32 %v10436_v3, %v9538_v1  ;;  %v8787_v1 = vor.u32 %v10244_v21, %v8784_v47  ;;  %v7978_v3 = vld [vmem:[#allocation14 + $0x88] sm:$0xf]  ;;  %v9372_v47 = vld [vmem:[#allocation14 + $0xb8c] sm:$0xf0] }
 0x3a7   :  { %6263 = vmatpush.bf16.msra.mxu1 %v9567_v36  ;;  %6305 = vmatpush.bf16.msrb.mxu0 %v8451_v46  ;;  %v5949_v46 = vadd.f32 %v5948_v34, %v3397_v55  ;;  %v7979_v55 = vor.u32 %v10045_v4, %v7978_v3  ;;  %v8759_v34 = vor.u32 %v10237_v7, %v8756_v9  ;;  %v10384_v3 = vld [vmem:[#allocation14 + $0xb3c] sm:$0xf]  ;;  %v8230_v7 = vld [vmem:[#allocation14 + $0x280] sm:$0xf] }
 0x3a8   :  { %6347 = vmatpush.bf16.msrb.mxu3 %v9123_v41  ;;  %v8007_v41 = vor.u32 %v10052_v56, %v8006_v50  ;;  %v10391_v50 = vld [vmem:[#allocation14 + $0xb74] sm:$0xf]  ;;  %v10108_v9 = vld [vmem:[#allocation14 + $0x298] sm:$0xf0] }
 0x3a9   :  { %6335 = vmatpush.bf16.msrb.mxu2 %v8843_v42  ;;  %v5988_v42 = vpop.f32.mrf.mxu1  ;;  %v5963_v6 = vadd.f32 %v5962_v52, %v5949_v46  ;;  %v7951_v52 = vor.u32 %v10038_v12, %v7950_v2  ;;  %v9316_v2 = vld [vmem:[#allocation14 + $0xb1c] sm:$0xf0]  ;;  %v8202_v12 = vld [vmem:[#allocation14 + $0x248] sm:$0xf] }
 0x3aa   :  { %v5989_v58 = vadd.f32 %v5988_v42, %v5975_v35  ;;  %v10398_v42 = vld [vmem:[#allocation14 + $0xbac] sm:$0xf] }
 0x3ab   :  { %6264 = vmatpush.bf16.msra.mxu1 %v9539_v38  ;;  %6306 = vmatpush.bf16.msrb.mxu0 %v8423_v13  ;;  %v9428_v38 = vld [vmem:[#allocation14 + $0xbfc] sm:$0xf0]  ;;  %v8314_v13 = vld [vmem:[#allocation14 + $0x328] sm:$0xf]  ;;  %v5977_v8 = vadd.f32 %v5976_v62, %v5963_v6  ;;  %v6004_v39 = vpop.f32.mrf.mxu2  ;;  %v10297_v6 = vld [vmem:[#allocation14 + $0x880] sm:$0xf0] }
 0x3ac   :  { %6348 = vmatpush.bf16.msrb.mxu3 %v9095_v30  ;;  %v6003_v17 = vadd.f32 %v6002_v44, %v5989_v58  ;;  %v10129_v30 = vld [vmem:[#allocation14 + $0x340] sm:$0xf0]  ;;  %v10115_v58 = vld [vmem:[#allocation14 + $0x2d0] sm:$0xf0] }
 0x3ad   :  { %6336 = vmatpush.bf16.msrb.mxu2 %v8815_v33  ;;  %v9036_v33 = vld [vmem:[#allocation14 + $0x8ec] sm:$0xf0]  ;;  %v8315_v20 = vor.u32 %v10129_v30, %v8314_v13  ;;  %v8231_v30 = vor.u32 %v10108_v9, %v8230_v7  ;;  %v8874_v7 = vld [vmem:[#allocation14 + $0x788] sm:$0xf]  ;;  %v10269_v9 = vld [vmem:[#allocation14 + $0x7a0] sm:$0xf0] }
 0x3ae   :  { %v9039_v36 = vor.u32 %v10307_v40, %v9036_v33  ;;  %v6017_v25 = vadd.f32 %v6016_v15, %v6003_v17  ;;  %v9403_v40 = vor.u32 %v10398_v42, %v9400_v49  ;;  %v8700_v33 = vld [vmem:[#allocation14 + $0x64c] sm:$0xf0]  ;;  %v10209_v15 = vld [vmem:[#allocation14 + $0x5c4] sm:$0xf]  ;;  %v10202_v49 = vld [vmem:[#allocation14 + $0x58c] sm:$0xf] }
 0x3af   :  { %6265 = vmatpush.bf16.msra.mxu1 %v9511_v60  ;;  %6307 = vmatpush.bf16.msrb.mxu0 %v8395_v0  ;;  %v8286_v60 = vld [vmem:[#allocation14 + $0x2f0] sm:$0xf]  ;;  %v8731_v0 = vor.u32 %v10230_v29, %v8728_v53  ;;  %v10290_v53 = vld [vmem:[#allocation14 + $0x848] sm:$0xf0] }
 0x3b0   :  { %6337 = vmatmul.bf16.vlgmr.msrb.gmra.mxu2 %v11049_v61  ;;  %6349 = vmatpush.bf16.msrb.mxu3 %v9067_v24  ;;  %v7922_v24 = vld [vmem:[#allocation14 + $0x18] sm:$0xf]  ;;  %v8958_v29 = vld [vmem:[#allocation14 + $0x830] sm:$0xf] }
 0x3b1   :  { %6385 = vmatpush.bf16.msra.mxu2 %v8119_v54  ;;  %v9483_v54 = vor.u32 %v10422_v28, %v9482_v27  ;;  %v5990_v16 = vpop.f32.mrf.mxu1  ;;  %v10122_v27 = vld [vmem:[#allocation14 + $0x308] sm:$0xf0]  ;;  %v6030_v28 = vpop.f32.mrf.mxu0  ;;  %v7923_v44 = vor.u32 %v10031_v5, %v7922_v24  ;;  %v9288_v24 = vld [vmem:[#allocation14 + $0xae4] sm:$0xf0] }
 0x3b2   :  { %v5991_v26 = vadd.f32 %v5990_v16, %v5977_v8  ;;  %v8287_v35 = vor.u32 %v10122_v27, %v8286_v60  ;;  %v6031_v56 = vadd.f32 %v6030_v28, %v6017_v25  ;;  %v8644_v16 = vld [vmem:[#allocation14 + $0x5dc] sm:$0xf0]  ;;  %v10377_v8 = vld [vmem:[#allocation14 + $0xb04] sm:$0xf]  ;;  %v8616_v28 = vld [vmem:[#allocation14 + $0x5a4] sm:$0xf0] }
 0x3b3   :  { %6266 = vmatpush.bf16.msra.mxu1 %v9483_v54  ;;  %6308 = vmatpush.bf16.msrb.mxu0 %v8367_v22  ;;  %v6018_v22 = vpop.f32.mrf.mxu3  ;;  %v9319_v60 = vor.u32 %v10377_v8, %v9316_v2  ;;  %v10094_v5 = vld [vmem:[#allocation14 + $0x228] sm:$0xf0]  ;;  %v8875_v8 = vor.u32 %v10269_v9, %v8874_v7 }
 0x3b4   :  { %6350 = vmatpush.bf16.msrb.mxu3 %v9039_v36  ;;  %v6005_v21 = vadd.f32 %v6004_v39, %v5991_v26  ;;  %v9375_v36 = vor.u32 %v10391_v50, %v9372_v47  ;;  %v8647_v26 = vor.u32 %v10209_v15, %v8644_v16  ;;  %v8930_v39 = vld [vmem:[#allocation14 + $0x7f8] sm:$0xf]  ;;  %v9260_v47 = vld [vmem:[#allocation14 + $0xaac] sm:$0xf0]  ;;  %v9210_v15 = vld [vmem:[#allocation14 + $0xa28] sm:$0xf] }
 0x3b5   :  { %6386 = vmatpush.bf16.msra.mxu2 %v8091_v14  ;;  %v9459_v14 = vor.u32 %v10412_v31, %v9456_v37  ;;  %v8258_v31 = vld [vmem:[#allocation14 + $0x2b8] sm:$0xf]  ;;  %v9014_v37 = vld [vmem:[#allocation14 + $0x8a0] sm:$0xf]  ;;  %v10353_v16 = vld [vmem:[#allocation14 + $0xa40] sm:$0xf0] }
 0x3b6   :  { %6267 = vmatmul.bf16.vlgmr.msra.gmra.mxu1 %v11069_v19  ;;  %6309 = vmatmul.bf16.vlgmr.msrb.gmra.mxu0 %v11045_v48  ;;  %v8259_v46 = vor.u32 %v10115_v58, %v8258_v31  ;;  %v6019_v4 = vadd.f32 %v6018_v22, %v6005_v21  ;;  %v10363_v21 = vld [vmem:[#allocation14 + $0xa94] sm:$0xf]  ;;  %v8146_v31 = vld [vmem:[#allocation14 + $0x1d8] sm:$0xf]  ;;  %v10262_v2 = vld [vmem:[#allocation14 + $0x768] sm:$0xf0] }
 0x3b7   :  { %6315 = vmatpush.bf16.msrb.mxu1 %v8787_v1  ;;  %6357 = vmatpush.bf16.msra.mxu0 %v9459_v14  ;;  %v8672_v1 = vld [vmem:[#allocation14 + $0x614] sm:$0xf0]  ;;  %v9015_v14 = vor.u32 %v10304_v59, %v9014_v37  ;;  %v8902_v37 = vld [vmem:[#allocation14 + $0x7c0] sm:$0xf]  ;;  %v10276_v59 = vld [vmem:[#allocation14 + $0x7d8] sm:$0xf0] }
 0x3b8   :  { %6399 = vmatpush.bf16.msra.mxu3 %v8343_v23  ;;  %v9344_v23 = vld [vmem:[#allocation14 + $0xb54] sm:$0xf0] }
 0x3b9   :  { %6387 = vmatpush.bf16.msra.mxu2 %v8063_v11  ;;  %v9431_v11 = vor.u32 %v10405_v43, %v9428_v38  ;;  %6351 = vmatmul.bf16.vlgmr.msrb.gmra.mxu3 %v11054_v63  ;;  %v6044_v54 = vpop.f32.mrf.mxu1  ;;  %v8986_v43 = vld [vmem:[#allocation14 + $0x868] sm:$0xf]  ;;  %v6032_v38 = vpop.f32.mrf.mxu0  ;;  %v9347_v13 = vor.u32 %v10384_v3, %v9344_v23  ;;  %v9263_v3 = vor.u32 %v10363_v21, %v9260_v47  ;;  %v10440_v21 = vld [vmem:[#allocation14 + $0xcfc] sm:$0xf]  ;;  %v9568_v47 = vld [vmem:[#allocation14 + $0xd14] sm:$0xf0] }
 0x3ba   :  { %v6045_v57 = vadd.f32 %v6044_v54, %v6031_v56  ;;  %v10087_v54 = vld [vmem:[#allocation14 + $0x1f0] sm:$0xf0] }
 0x3bb   :  { %6316 = vmatpush.bf16.msrb.mxu1 %v8759_v34  ;;  %6358 = vmatpush.bf16.msra.mxu0 %v9431_v11  ;;  %v8987_v34 = vor.u32 %v10297_v6, %v8986_v43  ;;  %v10101_v11 = vld [vmem:[#allocation14 + $0x260] sm:$0xf0] }
 0x3bc   :  { %6400 = vmatpush.bf16.msra.mxu3 %v8315_v20  ;;  %10503 = vtanh.f32 %v6045_v57  ;;  %v8203_v27 = vor.u32 %v10101_v11, %v8202_v12  ;;  %v10468_v57 = vld [vmem:[#allocation14 + $0xddc] sm:$0xf]  ;;  %v9211_v11 = vor.u32 %v10353_v16, %v9210_v15  ;;  %v10150_v15 = vld [vmem:[#allocation14 + $0x3e8] sm:$0xf0]  ;;  %v9070_v16 = vld [vmem:[#allocation14 + $0x910] sm:$0xf] }
 0x3bd   :  { %6388 = vmatpush.bf16.msra.mxu2 %v8035_v45  ;;  %v10223_v45 = vld [vmem:[#allocation14 + $0x634] sm:$0xf] }
 0x3be   :  { %v8703_v62 = vor.u32 %v10223_v45, %v8700_v33  ;;  %v10195_v45 = vld [vmem:[#allocation14 + $0x554] sm:$0xf]  ;;  %v8588_v33 = vld [vmem:[#allocation14 + $0x56c] sm:$0xf0] }
 0x3bf   :  { %6317 = vmatpush.bf16.msrb.mxu1 %v8731_v0  ;;  %6359 = vmatpush.bf16.msra.mxu0 %v9403_v40  ;;  %v8959_v0 = vor.u32 %v10290_v53, %v8958_v29  ;;  %v10283_v40 = vld [vmem:[#allocation14 + $0x810] sm:$0xf0]  ;;  %v9624_v29 = vld [vmem:[#allocation14 + $0xd84] sm:$0xf0]  ;;  %v8510_v53 = vld [vmem:[#allocation14 + $0x4b0] sm:$0xf] }
 0x3c0   :  { %6401 = vmatpush.bf16.msra.mxu3 %v8287_v35  ;;  %v8619_v35 = vor.u32 %v10202_v49, %v8616_v28  ;;  %v8931_v58 = vor.u32 %v10283_v40, %v8930_v39  ;;  %v10255_v28 = vld [vmem:[#allocation14 + $0x730] sm:$0xf0]  ;;  %v9154_v40 = vld [vmem:[#allocation14 + $0x9b8] sm:$0xf] }
 0x3c1   :  { %6389 = vmatpush.bf16.msra.mxu2 %v8007_v41  ;;  %v10216_v41 = vld [vmem:[#allocation14 + $0x5fc] sm:$0xf]  ;;  %v6046_v20 = vpop.f32.mrf.mxu1  ;;  %v10171_v39 = vld [vmem:[#allocation14 + $0x490] sm:$0xf0] }
 0x3c2   :  { %v8675_v17 = vor.u32 %v10216_v41, %v8672_v1  ;;  %v10504_v42 = vpop.eup %10503  ;;  %v9238_v41 = vld [vmem:[#allocation14 + $0xa60] sm:$0xf]  ;;  %v10360_v1 = vld [vmem:[#allocation14 + $0xa78] sm:$0xf0] }
 0x3c3   :  { %6318 = vmatpush.bf16.msrb.mxu1 %v8703_v62  ;;  %6360 = vmatpush.bf16.msra.mxu0 %v9375_v36  ;;  %6513 = vst [vmem:[#allocation17 + $0x10] sm:$0xff] %v10504_v42  ;;  %v8566_v62 = vld [vmem:[#allocation14 + $0x520] sm:$0xf]  ;;  %v8591_v36 = vor.u32 %v10195_v45, %v8588_v33  ;;  %v9239_v6 = vor.u32 %v10360_v1, %v9238_v41  ;;  %v10178_v42 = vld [vmem:[#allocation14 + $0x4c8] sm:$0xf0]  ;;  %v6058_v45 = vpop.f32.mrf.mxu2 }
 0x3c4   :  { %6402 = vmatpush.bf16.msra.mxu3 %v8259_v46  ;;  %v10192_v46 = vld [vmem:[#allocation14 + $0x538] sm:$0xf0]  ;;  %v9540_v41 = vld [vmem:[#allocation14 + $0xcdc] sm:$0xf0]  ;;  %v8426_v1 = vld [vmem:[#allocation14 + $0x408] sm:$0xf] }
 0x3c5   :  { %6390 = vmatpush.bf16.msra.mxu2 %v7979_v55  ;;  %v6033_v55 = vadd.f32 %v6032_v38, %v6019_v4  ;;  %v8147_v4 = vor.u32 %v10087_v54, %v8146_v31  ;;  %v8567_v43 = vor.u32 %v10192_v46, %v8566_v62  ;;  %v9652_v38 = vld [vmem:[#allocation14 + $0xdbc] sm:$0xf0]  ;;  %v9571_v62 = vor.u32 %v10440_v21, %v9568_v47  ;;  %v10433_v46 = vld [vmem:[#allocation14 + $0xcc4] sm:$0xf] }
 0x3c6   :  { %v8454_v31 = vld [vmem:[#allocation14 + $0x440] sm:$0xf]  ;;  %v9543_v7 = vor.u32 %v10433_v46, %v9540_v41  ;;  %v10409_v21 = vld [vmem:[#allocation14 + $0xc00] sm:$0xf0]  ;;  %v10402_v46 = vld [vmem:[#allocation14 + $0xbc8] sm:$0xf0] }
 0x3c7   :  { %6319 = vmatpush.bf16.msrb.mxu1 %v8675_v17  ;;  %v6047_v25 = vadd.f32 %v6046_v20, %v6033_v55  ;;  %6361 = vmatpush.bf16.msra.mxu0 %v9347_v13  ;;  %v10461_v17 = vld [vmem:[#allocation14 + $0xda4] sm:$0xf]  ;;  %v8538_v13 = vld [vmem:[#allocation14 + $0x4e8] sm:$0xf]  ;;  %v10454_v20 = vld [vmem:[#allocation14 + $0xd6c] sm:$0xf] }
 0x3c8   :  { %6403 = vmatpush.bf16.msra.mxu3 %v8231_v30  ;;  %v10185_v30 = vld [vmem:[#allocation14 + $0x500] sm:$0xf0]  ;;  %v9655_v55 = vor.u32 %v10461_v17, %v9652_v38  ;;  %v9126_v54 = vld [vmem:[#allocation14 + $0x980] sm:$0xf]  ;;  %v10426_v17 = vld [vmem:[#allocation14 + $0xc8c] sm:$0xf] }
 0x3c9   :  { %6391 = vmatpush.bf16.msra.mxu2 %v7951_v52  ;;  %v10370_v52 = vld [vmem:[#allocation14 + $0xacc] sm:$0xf]  ;;  %10505 = vtanh.f32 %v6047_v25  ;;  %v8539_v12 = vor.u32 %v10185_v30, %v8538_v13  ;;  %v9182_v25 = vld [vmem:[#allocation14 + $0x9f0] sm:$0xf]  ;;  %v9512_v38 = vld [vmem:[#allocation14 + $0xca4] sm:$0xf0] }
 0x3ca   :  { %v9291_v50 = vor.u32 %v10370_v52, %v9288_v24  ;;  %v8511_v52 = vor.u32 %v10178_v42, %v8510_v53  ;;  %v10447_v24 = vld [vmem:[#allocation14 + $0xd34] sm:$0xf]  ;;  %v8398_v13 = vld [vmem:[#allocation14 + $0x3d0] sm:$0xf]  ;;  %v8370_v53 = vld [vmem:[#allocation14 + $0x398] sm:$0xf] }
 0x3cb   :  { %6320 = vmatpush.bf16.msrb.mxu1 %v8647_v26  ;;  %6362 = vmatpush.bf16.msra.mxu0 %v9319_v60  ;;  %v10346_v26 = vld [vmem:[#allocation14 + $0xa08] sm:$0xf0]  ;;  %v9627_v60 = vor.u32 %v10454_v20, %v9624_v29  ;;  %v6060_v9 = vpop.f32.mrf.mxu2  ;;  %v9484_v29 = vld [vmem:[#allocation14 + $0xc6c] sm:$0xf0]  ;;  %v10143_v42 = vld [vmem:[#allocation14 + $0x3b0] sm:$0xf0] }
 0x3cc   :  { %6404 = vmatpush.bf16.msra.mxu3 %v8203_v27  ;;  %v8818_v27 = vld [vmem:[#allocation14 + $0x718] sm:$0xf] }
 0x3cd   :  { %6392 = vmatpush.bf16.msra.mxu2 %v7923_v44  ;;  %v9680_v44 = vld [vmem:[#allocation14 + $0xdf4] sm:$0xf0] }
 0x3ce   :  { %v9683_v23 = vor.u32 %v10468_v57, %v9680_v44  ;;  %v11145_v57 = vld [vmem:[#allocation16] sm:$0xff] }
 0x3cf   :  { %v10506_v22 = vpop.eup %10505  ;;  %6321 = vmatpush.bf16.msrb.mxu1 %v8619_v35  ;;  %6363 = vmatpush.bf16.msra.mxu0 %v9291_v50  ;;  %v10339_v35 = vld [vmem:[#allocation14 + $0x9d0] sm:$0xf0]  ;;  %v3398_v44 = vperm.slane %v11145_v57, 3 }
 0x3d0   :  { %6393 = vmatmul.bf16.vlgmr.msra.gmra.mxu2 %v11030_v51  ;;  %v8174_v51 = vld [vmem:[#allocation14 + $0x210] sm:$0xf]  ;;  %6520 = vst [vmem:[#allocation17 + $0x48] sm:$0xff] %v10506_v22 }
 0x3d1   :  { %6441 = vmatpush.bf16.msrb.mxu2 %v9015_v14  ;;  %v8175_v56 = vor.u32 %v10094_v5, %v8174_v51  ;;  %v8903_v14 = vor.u32 %v10276_v59, %v8902_v37  ;;  %v9596_v51 = vld [vmem:[#allocation14 + $0xd4c] sm:$0xf0]  ;;  %v8482_v5 = vld [vmem:[#allocation14 + $0x478] sm:$0xf]  ;;  %v10332_v37 = vld [vmem:[#allocation14 + $0x998] sm:$0xf0]  ;;  %v6072_v59 = vpop.f32.mrf.mxu3  ;;  %v6059_v30 = vadd.f32 %v6058_v45, %v3398_v44 }
 0x3d2   :  { %v9599_v33 = vor.u32 %v10447_v24, %v9596_v51  ;;  %v8483_v50 = vor.u32 %v10171_v39, %v8482_v5  ;;  %v8371_v39 = vor.u32 %v10143_v42, %v8370_v53  ;;  %v9322_v53 = vld [vmem:[#allocation14 + $0xb08] sm:$0xf]  ;;  %v10381_v42 = vld [vmem:[#allocation14 + $0xb20] sm:$0xf0] }
 0x3d3   :  { %6405 = vmatpush.bf16.msra.mxu3 %v8175_v56  ;;  %6322 = vmatpush.bf16.msrb.mxu1 %v8591_v36  ;;  %v9155_v56 = vor.u32 %v10339_v35, %v9154_v40  ;;  %v9127_v36 = vor.u32 %v10332_v37, %v9126_v54  ;;  %v6114_v51 = vpop.f32.mrf.mxu2  ;;  %v6061_v35 = vadd.f32 %v6060_v9, %v3398_v44  ;;  %v10234_v44 = vld [vmem:[#allocation14 + $0x688] sm:$0xf0]  ;;  %v10227_v9 = vld [vmem:[#allocation14 + $0x650] sm:$0xf0] }
 0x3d4   :  { %6364 = vmatpush.bf16.msra.mxu0 %v9263_v3  ;;  %v10157_v3 = vld [vmem:[#allocation14 + $0x420] sm:$0xf0] }
 0x3d5   :  { %6442 = vmatpush.bf16.msrb.mxu2 %v8987_v34  ;;  %v8846_v34 = vld [vmem:[#allocation14 + $0x750] sm:$0xf] }
 0x3d6   :  { %6323 = vmatmul.bf16.vlgmr.msrb.gmra.mxu1 %v11042_v32  ;;  %v8847_v49 = vor.u32 %v10262_v2, %v8846_v34  ;;  %v6073_v34 = vadd.f32 %v6072_v59, %v6059_v30  ;;  %v9515_v2 = vor.u32 %v10426_v17, %v9512_v38 }
 0x3d7   :  { %6406 = vmatpush.bf16.msra.mxu3 %v8147_v4  ;;  %6371 = vmatpush.bf16.msra.mxu1 %v9683_v23  ;;  %v9098_v4 = vld [vmem:[#allocation14 + $0x948] sm:$0xf]  ;;  %v6086_v23 = vpop.f32.mrf.mxu0 }
 0x3d8   :  { %6413 = vmatpush.bf16.msrb.mxu0 %v8567_v43  ;;  %v8427_v43 = vor.u32 %v10157_v3, %v8426_v1 }
 0x3d9   :  { %6443 = vmatpush.bf16.msrb.mxu2 %v8959_v0  ;;  %6365 = vmatmul.bf16.vlgmr.msra.gmra.mxu0 %v11062_v10  ;;  %v9183_v0 = vor.u32 %v10346_v26, %v9182_v25  ;;  %v6087_v25 = vadd.f32 %v6086_v23, %v6073_v34  ;;  %v9042_v26 = vld [vmem:[#allocation14 + $0x8d8] sm:$0xf]  ;;  %v10388_v34 = vld [vmem:[#allocation14 + $0xb58] sm:$0xf0] }
 0x3da   :  { %6407 = vmatmul.bf16.vlgmr.msra.gmra.mxu3 %v11023_v18  ;;  %v8819_v18 = vor.u32 %v10255_v28, %v8818_v27  ;;  %v10248_v27 = vld [vmem:[#allocation14 + $0x6f8] sm:$0xf0]  ;;  %v9462_v28 = vld [vmem:[#allocation14 + $0xc20] sm:$0xf]  ;;  %v8706_v23 = vld [vmem:[#allocation14 + $0x638] sm:$0xf] }
 0x3db   :  { %6455 = vmatpush.bf16.msrb.mxu3 %v9239_v6  ;;  %6372 = vmatpush.bf16.msra.mxu1 %v9655_v55  ;;  %v6100_v55 = vpop.f32.mrf.mxu1 }
 0x3dc   :  { %6414 = vmatpush.bf16.msrb.mxu0 %v8539_v12  ;;  %v10419_v12 = vld [vmem:[#allocation14 + $0xc54] sm:$0xf] }
 0x3dd   :  { %6444 = vmatpush.bf16.msrb.mxu2 %v8931_v58  ;;  %v10164_v58 = vld [vmem:[#allocation14 + $0x458] sm:$0xf0]  ;;  %v9487_v24 = vor.u32 %v10419_v12, %v9484_v29  ;;  %v10213_v29 = vld [vmem:[#allocation14 + $0x5e0] sm:$0xf0] }
 0x3de   :  { %v8455_v22 = vor.u32 %v10164_v58, %v8454_v31 }
 0x3df   :  { %6456 = vmatpush.bf16.msrb.mxu3 %v9211_v11  ;;  %6373 = vmatpush.bf16.msra.mxu1 %v9627_v60  ;;  %v8399_v11 = vor.u32 %v10150_v15, %v8398_v13  ;;  %v8790_v60 = vld [vmem:[#allocation14 + $0x6e0] sm:$0xf]  ;;  %v6088_v5 = vpop.f32.mrf.mxu0  ;;  %v8707_v15 = vor.u32 %v10227_v9, %v8706_v23  ;;  %v9546_v23 = vld [vmem:[#allocation14 + $0xcc8] sm:$0xf]  ;;  %v3399_v9 = vperm.slane %v11145_v57, 4 }
 0x3e0   :  { %6415 = vmatpush.bf16.msrb.mxu0 %v8511_v52  ;;  %v10416_v52 = vld [vmem:[#allocation14 + $0xc38] sm:$0xf0]  ;;  %v8791_v45 = vor.u32 %v10248_v27, %v8790_v60 }
 0x3e1   :  { %6445 = vmatpush.bf16.msrb.mxu2 %v8903_v14  ;;  %v10325_v14 = vld [vmem:[#allocation14 + $0x960] sm:$0xf0] }
 0x3e2   :  { %v9099_v6 = vor.u32 %v10325_v14, %v9098_v4 }
 0x3e3   :  { %6457 = vmatpush.bf16.msrb.mxu3 %v9183_v0  ;;  %6374 = vmatpush.bf16.msra.mxu1 %v9599_v33  ;;  %v6101_v0 = vadd.f32 %v6100_v55, %v6087_v25  ;;  %v8762_v33 = vld [vmem:[#allocation14 + $0x6a8] sm:$0xf]  ;;  %v6102_v54 = vpop.f32.mrf.mxu1  ;;  %v9350_v55 = vld [vmem:[#allocation14 + $0xb40] sm:$0xf] }
 0x3e4   :  { %6416 = vmatpush.bf16.msrb.mxu0 %v8483_v50  ;;  %v10241_v50 = vld [vmem:[#allocation14 + $0x6c0] sm:$0xf0] }
 0x3e5   :  { %6446 = vmatpush.bf16.msrb.mxu2 %v8875_v8  ;;  %v10318_v8 = vld [vmem:[#allocation14 + $0x928] sm:$0xf0]  ;;  %v6115_v31 = vadd.f32 %v6114_v51, %v6101_v0  ;;  %v8763_v59 = vor.u32 %v10241_v50, %v8762_v33  ;;  %v9686_v33 = vld [vmem:[#allocation14 + $0xde0] sm:$0xf]  ;;  %v10472_v50 = vld [vmem:[#allocation14 + $0xdf8] sm:$0xf0] }
 0x3e6   :  { %v9071_v20 = vor.u32 %v10318_v8, %v9070_v16  ;;  %v8678_v16 = vld [vmem:[#allocation14 + $0x600] sm:$0xf]  ;;  %v10220_v8 = vld [vmem:[#allocation14 + $0x618] sm:$0xf0]  ;;  %v10206_v0 = vld [vmem:[#allocation14 + $0x5a8] sm:$0xf0] }
 0x3e7   :  { %6458 = vmatpush.bf16.msrb.mxu3 %v9155_v56  ;;  %6375 = vmatpush.bf16.msra.mxu1 %v9571_v62  ;;  %v9434_v56 = vld [vmem:[#allocation14 + $0xbe8] sm:$0xf]  ;;  %v6142_v3 = vpop.f32.mrf.mxu0  ;;  %v8679_v12 = vor.u32 %v10220_v8, %v8678_v16  ;;  %v10374_v51 = vld [vmem:[#allocation14 + $0xae8] sm:$0xf0]  ;;  %v10423_v16 = vld [vmem:[#allocation14 + $0xc70] sm:$0xf0] }
 0x3e8   :  { %6417 = vmatpush.bf16.msrb.mxu0 %v8455_v22  ;;  %v9435_v62 = vor.u32 %v10409_v21, %v9434_v56  ;;  %v8734_v22 = vld [vmem:[#allocation14 + $0x670] sm:$0xf] }
 0x3e9   :  { %6447 = vmatpush.bf16.msrb.mxu2 %v8847_v49  ;;  %v10311_v49 = vld [vmem:[#allocation14 + $0x8f0] sm:$0xf0]  ;;  %v8735_v4 = vor.u32 %v10234_v44, %v8734_v22  ;;  %v9602_v44 = vld [vmem:[#allocation14 + $0xd38] sm:$0xf] }
 0x3ea   :  { %v9043_v40 = vor.u32 %v10311_v49, %v9042_v26 }
 0x3eb   :  { %6459 = vmatpush.bf16.msrb.mxu3 %v9127_v36  ;;  %6376 = vmatpush.bf16.msra.mxu1 %v9543_v7  ;;  %v9406_v36 = vld [vmem:[#allocation14 + $0xbb0] sm:$0xf]  ;;  %v6116_v7 = vpop.f32.mrf.mxu2 }
 0x3ec   :  { %6418 = vmatpush.bf16.msrb.mxu0 %v8427_v43  ;;  %v9407_v14 = vor.u32 %v10402_v46, %v9406_v36  ;;  %v9378_v43 = vld [vmem:[#allocation14 + $0xb78] sm:$0xf]  ;;  %v10451_v36 = vld [vmem:[#allocation14 + $0xd50] sm:$0xf0] }
 0x3ed   :  { %6448 = vmatpush.bf16.msrb.mxu2 %v8819_v18  ;;  %v9463_v18 = vor.u32 %v10416_v52, %v9462_v28  ;;  %v9323_v28 = vor.u32 %v10381_v42, %v9322_v53  ;;  %v8622_v52 = vld [vmem:[#allocation14 + $0x590] sm:$0xf] }
 0x3ef   :  { %6460 = vmatpush.bf16.msrb.mxu3 %v9099_v6  ;;  %6377 = vmatpush.bf16.msra.mxu1 %v9515_v2  ;;  %v10395_v6 = vld [vmem:[#allocation14 + $0xb90] sm:$0xf0] }
 0x3f0   :  { %6449 = vmatmul.bf16.vlgmr.msrb.gmra.mxu2 %v11049_v61  ;;  %v6074_v61 = vpop.f32.mrf.mxu3  ;;  %6419 = vmatpush.bf16.msrb.mxu0 %v8399_v11  ;;  %v8650_v11 = vld [vmem:[#allocation14 + $0x5c8] sm:$0xf] }
 0x3f1   :  { %v6075_v47 = vadd.f32 %v6074_v61, %v6061_v35  ;;  %v9351_v61 = vor.u32 %v10388_v34, %v9350_v55  ;;  %v8651_v27 = vor.u32 %v10213_v29, %v8650_v11  ;;  %v10199_v35 = vld [vmem:[#allocation14 + $0x570] sm:$0xf0] }
 0x3f3   :  { %6461 = vmatpush.bf16.msrb.mxu3 %v9071_v20  ;;  %6378 = vmatpush.bf16.msra.mxu1 %v9487_v24  ;;  %v6089_v37 = vadd.f32 %v6088_v5, %v6075_v47  ;;  %v6156_v13 = vpop.f32.mrf.mxu1  ;;  %v6144_v20 = vpop.f32.mrf.mxu0  ;;  %v9294_v24 = vld [vmem:[#allocation14 + $0xad0] sm:$0xf]  ;;  %v8623_v5 = vor.u32 %v10206_v0, %v8622_v52 }
 0x3f4   :  { %6420 = vmatpush.bf16.msrb.mxu0 %v8371_v39  ;;  %v9295_v39 = vor.u32 %v10374_v51, %v9294_v24  ;;  %v6170_v46 = vpop.f32.mrf.mxu2 }
 0x3f5   :  { %v6103_v1 = vadd.f32 %v6102_v54, %v6089_v37  ;;  %v10465_v54 = vld [vmem:[#allocation14 + $0xdc0] sm:$0xf0] }
 0x3f6   :  { %6379 = vmatmul.bf16.vlgmr.msra.gmra.mxu1 %v11069_v19 }
 0x3f7   :  { %6462 = vmatpush.bf16.msrb.mxu3 %v9043_v40  ;;  %6427 = vmatpush.bf16.msrb.mxu1 %v8791_v45  ;;  %v6117_v38 = vadd.f32 %v6116_v7, %v6103_v1  ;;  %v8594_v40 = vld [vmem:[#allocation14 + $0x558] sm:$0xf]  ;;  %v9574_v1 = vld [vmem:[#allocation14 + $0xd00] sm:$0xf]  ;;  %v10437_v7 = vld [vmem:[#allocation14 + $0xce0] sm:$0xf0] }
 0x3f8   :  { %v6128_v58 = vpop.f32.mrf.mxu3  ;;  %6469 = vmatpush.bf16.msra.mxu0 %v9463_v18  ;;  %v9266_v45 = vld [vmem:[#allocation14 + $0xa98] sm:$0xf]  ;;  %v10367_v18 = vld [vmem:[#allocation14 + $0xab0] sm:$0xf0]  ;;  %v8595_v21 = vor.u32 %v10199_v35, %v8594_v40 }
 0x3f9   :  { %v6129_v41 = vadd.f32 %v6128_v58, %v6115_v31  ;;  %6421 = vmatmul.bf16.vlgmr.msrb.gmra.mxu0 %v11045_v48  ;;  %v9379_v48 = vor.u32 %v10395_v6, %v9378_v43  ;;  %v9267_v47 = vor.u32 %v10367_v18, %v9266_v45  ;;  %v9687_v31 = vor.u32 %v10472_v50, %v9686_v33  ;;  %v9658_v58 = vld [vmem:[#allocation14 + $0xda8] sm:$0xf]  ;;  %v10430_v6 = vld [vmem:[#allocation14 + $0xca8] sm:$0xf0] }
 0x3fa   :  { %6463 = vmatmul.bf16.vlgmr.msrb.gmra.mxu3 %v11054_v63  ;;  %v9659_v37 = vor.u32 %v10465_v54, %v9658_v58  ;;  %v3400_v50 = vperm.slane %v11145_v57, 5 }
 0x3fb   :  { %6428 = vmatpush.bf16.msrb.mxu1 %v8763_v59  ;;  %v6143_v17 = vadd.f32 %v6142_v3, %v6129_v41  ;;  %v6158_v26 = vpop.f32.mrf.mxu1  ;;  %v9630_v59 = vld [vmem:[#allocation14 + $0xd70] sm:$0xf]  ;;  %v9603_v41 = vor.u32 %v10451_v36, %v9602_v44  ;;  %v10444_v3 = vld [vmem:[#allocation14 + $0xd18] sm:$0xf0]  ;;  %v6198_v43 = vpop.f32.mrf.mxu0 }
 0x3fc   :  { %6470 = vmatpush.bf16.msra.mxu0 %v9435_v62  ;;  %v10458_v62 = vld [vmem:[#allocation14 + $0xd88] sm:$0xf0] }
 0x3fd   :  { %v6157_v30 = vadd.f32 %v6156_v13, %v6143_v17  ;;  %v9631_v22 = vor.u32 %v10458_v62, %v9630_v59  ;;  %v6172_v17 = vpop.f32.mrf.mxu2 }
 0x3ff   :  { %6429 = vmatpush.bf16.msrb.mxu1 %v8735_v4  ;;  %10507 = vtanh.f32 %v6157_v30 }
 0x400   :  { %6471 = vmatpush.bf16.msra.mxu0 %v9407_v14  ;;  %v6130_v63 = vpop.f32.mrf.mxu3  ;;  %v9575_v14 = vor.u32 %v10444_v3, %v9574_v1 }
 0x401   :  { %v6131_v2 = vadd.f32 %v6130_v63, %v6117_v38  ;;  %v6171_v38 = vadd.f32 %v6170_v46, %v3399_v9 }
 0x403   :  { %6430 = vmatpush.bf16.msrb.mxu1 %v8707_v15  ;;  %v6145_v25 = vadd.f32 %v6144_v20, %v6131_v2 }
 0x404   :  { %6472 = vmatpush.bf16.msra.mxu0 %v9379_v48  ;;  %v9490_v48 = vld [vmem:[#allocation14 + $0xc58] sm:$0xf] }
 0x405   :  { %v10508_v49 = vpop.eup %10507  ;;  %v6159_v60 = vadd.f32 %v6158_v26, %v6145_v25  ;;  %v9491_v55 = vor.u32 %v10423_v16, %v9490_v48  ;;  %v6226_v2 = vpop.f32.mrf.mxu2 }
 0x406   :  { %6514 = vst [vmem:[#allocation17 + $0x18] sm:$0xff] %v10508_v49 }
 0x407   :  { %6431 = vmatpush.bf16.msrb.mxu1 %v8679_v12  ;;  %10509 = vtanh.f32 %v6159_v60  ;;  %v6200_v12 = vpop.f32.mrf.mxu0 }
 0x408   :  { %6473 = vmatpush.bf16.msra.mxu0 %v9351_v61  ;;  %v6184_v4 = vpop.f32.mrf.mxu3  ;;  %v6173_v61 = vadd.f32 %v6172_v17, %v3399_v9 }
 0x409   :  { %v6185_v15 = vadd.f32 %v6184_v4, %v6171_v38 }
 0x40b   :  { %6432 = vmatpush.bf16.msrb.mxu1 %v8651_v27  ;;  %v6199_v8 = vadd.f32 %v6198_v43, %v6185_v15 }
 0x40c   :  { %6474 = vmatpush.bf16.msra.mxu0 %v9323_v28 }
 0x40d   :  { %v10510_v56 = vpop.eup %10509  ;;  %v6228_v60 = vpop.f32.mrf.mxu2 }
 0x40e   :  { %6521 = vst [vmem:[#allocation17 + $0x50] sm:$0xff] %v10510_v56 }
 0x40f   :  { %6433 = vmatpush.bf16.msrb.mxu1 %v8623_v5 }
 0x410   :  { %6475 = vmatpush.bf16.msra.mxu0 %v9295_v39  ;;  %v6186_v63 = vpop.f32.mrf.mxu3 }
 0x411   :  { %v6187_v11 = vadd.f32 %v6186_v63, %v6173_v61 }
 0x413   :  { %6434 = vmatpush.bf16.msrb.mxu1 %v8595_v21  ;;  %v6212_v13 = vpop.f32.mrf.mxu1  ;;  %v6201_v42 = vadd.f32 %v6200_v12, %v6187_v11  ;;  %v6254_v49 = vpop.f32.mrf.mxu0 }
 0x414   :  { %6476 = vmatpush.bf16.msra.mxu0 %v9267_v47  ;;  %v6213_v34 = vadd.f32 %v6212_v13, %v6199_v8 }
 0x416   :  { %6435 = vmatmul.bf16.vlgmr.msrb.gmra.mxu1 %v11042_v32  ;;  %v9547_v32 = vor.u32 %v10437_v7, %v9546_v23  ;;  %v6227_v20 = vadd.f32 %v6226_v2, %v6213_v34 }
 0x417   :  { %6483 = vmatpush.bf16.msra.mxu1 %v9687_v31  ;;  %6477 = vmatmul.bf16.vlgmr.msra.gmra.mxu0 %v11062_v10  ;;  %v9518_v10 = vld [vmem:[#allocation14 + $0xc90] sm:$0xf] }
 0x418   :  { %v9519_v30 = vor.u32 %v10430_v6, %v9518_v10  ;;  %v6240_v29 = vpop.f32.mrf.mxu3 }
 0x419   :  { %v6241_v25 = vadd.f32 %v6240_v29, %v6227_v20 }
 0x41b   :  { %6484 = vmatpush.bf16.msra.mxu1 %v9659_v37  ;;  %v6214_v53 = vpop.f32.mrf.mxu1  ;;  %v6255_v27 = vadd.f32 %v6254_v49, %v6241_v25  ;;  %v6256_v5 = vpop.f32.mrf.mxu0 }
 0x41c   :  { %v6215_v26 = vadd.f32 %v6214_v53, %v6201_v42 }
 0x41e   :  { %v6229_v28 = vadd.f32 %v6228_v60, %v6215_v26 }
 0x41f   :  { %6485 = vmatpush.bf16.msra.mxu1 %v9631_v22 }
 0x420   :  { %v6242_v24 = vpop.f32.mrf.mxu3 }
 0x421   :  { %v6243_v51 = vadd.f32 %v6242_v24, %v6229_v28 }
 0x423   :  { %6486 = vmatpush.bf16.msra.mxu1 %v9603_v41  ;;  %v6257_v39 = vadd.f32 %v6256_v5, %v6243_v51 }
 0x427   :  { %6487 = vmatpush.bf16.msra.mxu1 %v9575_v14 }
 0x428   :  { %v6296_v33 = vpop.f32.mrf.mxu3 }
 0x42b   :  { %6488 = vmatpush.bf16.msra.mxu1 %v9547_v32 }
 0x42f   :  { %6489 = vmatpush.bf16.msra.mxu1 %v9519_v30 }
 0x430   :  { %v6298_v54 = vpop.f32.mrf.mxu3 }
 0x433   :  { %6490 = vmatpush.bf16.msra.mxu1 %v9491_v55  ;;  %v6268_v52 = vpop.f32.mrf.mxu1  ;;  %v6310_v56 = vpop.f32.mrf.mxu0  ;;  %v3401_v55 = vperm.slane %v11145_v57, 6 }
 0x434   :  { %v6269_v0 = vadd.f32 %v6268_v52, %v6255_v27 }
 0x436   :  { %6491 = vmatmul.bf16.vlgmr.msra.gmra.mxu1 %v11069_v19  ;;  %10511 = vtanh.f32 %v6269_v0  ;;  %v6282_v19 = vpop.f32.mrf.mxu2 }
 0x437   :  { %v6283_v47 = vadd.f32 %v6282_v19, %v3400_v50 }
 0x439   :  { %v6297_v58 = vadd.f32 %v6296_v33, %v6283_v47 }
 0x43b   :  { %v6270_v40 = vpop.f32.mrf.mxu1  ;;  %v6311_v37 = vadd.f32 %v6310_v56, %v6297_v58  ;;  %v6312_v22 = vpop.f32.mrf.mxu0 }
 0x43c   :  { %v10512_v35 = vpop.eup %10511  ;;  %v6271_v45 = vadd.f32 %v6270_v40, %v6257_v39  ;;  %v6352_v41 = vpop.f32.mrf.mxu3 }
 0x43d   :  { %6515 = vst [vmem:[#allocation17 + $0x20] sm:$0xff] %v10512_v35 }
 0x43e   :  { %10513 = vtanh.f32 %v6271_v45  ;;  %v6284_v21 = vpop.f32.mrf.mxu2 }
 0x43f   :  { %v6285_v44 = vadd.f32 %v6284_v21, %v3400_v50 }
 0x441   :  { %v6299_v36 = vadd.f32 %v6298_v54, %v6285_v44 }
 0x443   :  { %v6313_v3 = vadd.f32 %v6312_v22, %v6299_v36 }
 0x444   :  { %v10514_v18 = vpop.eup %10513  ;;  %v6354_v6 = vpop.f32.mrf.mxu3 }
 0x445   :  { %6522 = vst [vmem:[#allocation17 + $0x58] sm:$0xff] %v10514_v18 }
 0x446   :  { %v6338_v62 = vpop.f32.mrf.mxu2 }
 0x44e   :  { %v6340_v7 = vpop.f32.mrf.mxu2 }
 0x453   :  { %v6324_v31 = vpop.f32.mrf.mxu1 }
 0x454   :  { %v6325_v59 = vadd.f32 %v6324_v31, %v6311_v37 }
 0x456   :  { %v6339_v46 = vadd.f32 %v6338_v62, %v6325_v59  ;;  %v6366_v23 = vpop.f32.mrf.mxu0  ;;  %v6394_v63 = vpop.f32.mrf.mxu2 }
 0x457   :  { %v6395_v12 = vadd.f32 %v6394_v63, %v3401_v55 }
 0x458   :  { %v6353_v4 = vadd.f32 %v6352_v41, %v6339_v46 }
 0x45a   :  { %v6367_v9 = vadd.f32 %v6366_v23, %v6353_v4 }
 0x45b   :  { %v6326_v1 = vpop.f32.mrf.mxu1 }
 0x45c   :  { %v6327_v14 = vadd.f32 %v6326_v1, %v6313_v3 }
 0x45d   :  { %v6408_v8 = vpop.f32.mrf.mxu3 }
 0x45e   :  { %v6341_v43 = vadd.f32 %v6340_v7, %v6327_v14  ;;  %v6368_v38 = vpop.f32.mrf.mxu0  ;;  %v6396_v2 = vpop.f32.mrf.mxu2  ;;  %v6409_v11 = vadd.f32 %v6408_v8, %v6395_v12 }
 0x45f   :  { %v6397_v26 = vadd.f32 %v6396_v2, %v3401_v55 }
 0x460   :  { %v6355_v17 = vadd.f32 %v6354_v6, %v6341_v43 }
 0x462   :  { %v6369_v13 = vadd.f32 %v6368_v38, %v6355_v17 }
 0x465   :  { %v6410_v20 = vpop.f32.mrf.mxu3 }
 0x466   :  { %v6411_v49 = vadd.f32 %v6410_v20, %v6397_v26 }
 0x473   :  { %v6380_v32 = vpop.f32.mrf.mxu1  ;;  %v6450_v42 = vpop.f32.mrf.mxu2 }
 0x474   :  { %v6381_v10 = vadd.f32 %v6380_v32, %v6367_v9 }
 0x476   :  { %10515 = vtanh.f32 %v6381_v10  ;;  %v6422_v34 = vpop.f32.mrf.mxu0 }
 0x477   :  { %v6423_v29 = vadd.f32 %v6422_v34, %v6409_v11 }
 0x47b   :  { %v6382_v30 = vpop.f32.mrf.mxu1  ;;  %v6452_v57 = vpop.f32.mrf.mxu2 }
 0x47c   :  { %v10516_v15 = vpop.eup %10515  ;;  %v6383_v48 = vadd.f32 %v6382_v30, %v6369_v13 }
 0x47d   :  { %6516 = vst [vmem:[#allocation17 + $0x28] sm:$0xff] %v10516_v15  ;;  %v6464_v27 = vpop.f32.mrf.mxu3 }
 0x47e   :  { %10517 = vtanh.f32 %v6383_v48  ;;  %v6424_v25 = vpop.f32.mrf.mxu0 }
 0x47f   :  { %v6425_v52 = vadd.f32 %v6424_v25, %v6411_v49 }
 0x484   :  { %v10518_v16 = vpop.eup %10517 }
 0x485   :  { %6523 = vst [vmem:[#allocation17 + $0x60] sm:$0xff] %v10518_v16  ;;  %v6466_v45 = vpop.f32.mrf.mxu3 }
 0x493   :  { %v6436_v61 = vpop.f32.mrf.mxu1 }
 0x494   :  { %v6437_v53 = vadd.f32 %v6436_v61, %v6423_v29  ;;  %v6478_v51 = vpop.f32.mrf.mxu0 }
 0x496   :  { %v6451_v60 = vadd.f32 %v6450_v42, %v6437_v53 }
 0x498   :  { %v6465_v0 = vadd.f32 %v6464_v27, %v6451_v60 }
 0x49a   :  { %v6479_v5 = vadd.f32 %v6478_v51, %v6465_v0 }
 0x49b   :  { %v6438_v28 = vpop.f32.mrf.mxu1 }
 0x49c   :  { %v6439_v24 = vadd.f32 %v6438_v28, %v6425_v52  ;;  %v6480_v19 = vpop.f32.mrf.mxu0 }
 0x49e   :  { %v6453_v39 = vadd.f32 %v6452_v57, %v6439_v24 }
 0x4a0   :  { %v6467_v18 = vadd.f32 %v6466_v45, %v6453_v39 }
 0x4a2   :  { %v6481_v33 = vadd.f32 %v6480_v19, %v6467_v18 }
 0x4b3   :  { %v6492_v40 = vpop.f32.mrf.mxu1 }
 0x4b4   :  { %v6493_v35 = vadd.f32 %v6492_v40, %v6479_v5 }
 0x4b6   :  { %10519 = vtanh.f32 %v6493_v35 }
 0x4bb   :  { %v6494_v50 = vpop.f32.mrf.mxu1 }
 0x4bc   :  { %v10520_v56 = vpop.eup %10519  ;;  %v6495_v21 = vadd.f32 %v6494_v50, %v6481_v33 }
 0x4bd   :  { %6517 = vst [vmem:[#allocation17 + $0x30] sm:$0xff] %v10520_v56 }
 0x4be   :  { %10521 = vtanh.f32 %v6495_v21 }
 0x4c4   :  { %v10522_v47 = vpop.eup %10521 }
 0x4c5   :  { %6524 = vst [vmem:[#allocation17 + $0x68] sm:$0xff] %v10522_v47 }
 0x4c6   :  { %6537 = dma.vmem_to_hbm [thread:$0]  %s6530_s8, 1792, %s6532_s5, [#allocation4], %s10797_s15, %s10797_s15, %s10798_s16  }
 0x4c7   :  { %10775 = dma.done.wait [#allocation4], 1792  }
 0x4c8   :  { %10776 = vsyncadd [#allocation4], 4294965504 }
 0x4c9   :  { %6542 = vsyncpa [#allocation3], 1 }
 0x4ca   :  { %6543 = vsyncpa [#allocation6], 1 }
 0x4cb   :  { %6544 = vsyncpa [#allocation9], 1 }
 0x4cc   :  { %6545 = vsyncpa [#allocation12], 1 }
 0x4cd   :  { %6546 = vsyncpa [#allocation15], 1 }
 0x4ce   :  { %6547 = vsyncpa [#allocation4], 1 }

</bundles_post_ra>
